<compile_context>
chip_gen: v7x
topology: tpu7x:2x2x1
jax: 0.10.0
libtpu: 0.0.40
codegen_flags: <defaults>
</compile_context>

<pallas_src>
import jax
import jax.numpy as jnp
from jax import lax
from jax.experimental import pallas as pl
from jax.experimental.pallas import tpu as pltpu


# ----------------------------------------------------------------------------
# In-kernel helpers (operate on VMEM values; activations f32, matmul operands bf16)
# ----------------------------------------------------------------------------
def _conv3x3(x_hwc, w_ref, bias_row, halo_masks, tap_concat=True):
    """3x3 'SAME' conv.

    x_hwc:   (H, W, Cin) f32 activation.
    w_ref:   (3, 3*Cin, Cout) bf16 BN-folded weights (per kernel-row, taps dx=-1,0,+1).
    bias_row:(1, Cout) f32 folded BN bias.
    halo_masks: (col >= 1, col < W-1) boolean masks, shape (H, W, Cin), hoisted.
    tap_concat: True  -> one (H*W, 3*Cin) @ (3*Cin, Cout) matmul per kernel row.
                False -> three K=Cin matmuls per kernel row (no concat buffer; use for
                         Cin >= 128 where K already fills the MXU).
    Returns (H*W, Cout) f32.
    """
    H_, W_, Cin_ = x_hwc.shape
    Cout_ = w_ref.shape[-1]
    mask_l, mask_r = halo_masks
    zrow = jnp.zeros((1, W_, Cin_), x_hwc.dtype)
    acc = jnp.zeros((H_ * W_, Cout_), jnp.float32)

    for ty in range(3):
        dy = ty - 1
        # vertical shift hoisted out of the tap loop: one copy per kernel row
        if dy > 0:
            xs = jnp.concatenate([x_hwc[dy:], zrow], axis=0)
        elif dy < 0:
            xs = jnp.concatenate([zrow, x_hwc[:H_ + dy]], axis=0)
        else:
            xs = x_hwc
        # dx = -1 : y[w] = x[w-1]  -> roll shift=+1,  mask w >= 1
        xm1 = jnp.where(mask_l, pltpu.roll(xs, shift=1, axis=1), 0.0)
        # dx = +1 : y[w] = x[w+1]  -> roll shift=W-1, mask w < W-1
        xp1 = jnp.where(mask_r, pltpu.roll(xs, shift=W_ - 1, axis=1), 0.0)
        taps = (xm1, xs, xp1)                                   # tx = 0, 1, 2
        w_ty = w_ref[ty]                                        # (3*Cin, Cout) bf16

        if tap_concat:
            patches = jnp.concatenate(
                [t.reshape(H_ * W_, Cin_) for t in taps], axis=-1
            ).astype(jnp.bfloat16)                              # (H*W, 3*Cin) bf16
            acc = acc + jnp.dot(patches, w_ty, preferred_element_type=jnp.float32)
        else:
            for tx, t in enumerate(taps):
                acc = acc + jnp.dot(
                    t.reshape(H_ * W_, Cin_).astype(jnp.bfloat16),
                    w_ty[tx * Cin_:(tx + 1) * Cin_],
                    preferred_element_type=jnp.float32)
    return acc + bias_row


def _reverse_cummax_h(x):
    """TopPool: y[h] = max_{k >= h} x[k]. log2-step scan; identity 0 (post-ReLU input)."""
    L = x.shape[0]
    zpad = jnp.zeros_like(x)        # single preallocated pad reused across all steps
    y = x
    off = 1
    while off < L:
        y = jnp.maximum(y, jnp.concatenate([y[off:], zpad[:off]], axis=0))
        off *= 2
    return y


def _reverse_cummax_w(x, col):
    """LeftPool: y[:, w] = max_{k >= w} x[:, k]. log2 XLU-roll scan; identity 0."""
    _, W_, _ = x.shape
    y = x
    off = 1
    while off < W_:
        rolled = pltpu.roll(y, shift=W_ - off, axis=1)      # rolled[w] = y[(w + off) % W]
        y = jnp.maximum(y, jnp.where(col < W_ - off, rolled, 0.0))
        off *= 2
    return y


# ----------------------------------------------------------------------------
# Fused kernel: whole CornerPoolPack forward for one batch element
# ----------------------------------------------------------------------------
def _fused_corner_pool_kernel(x_ref, w1_ref, b1_ref, wp12_ref, bp12_ref,
                              wp_ref, bp_ref, w2_ref, b2_ref, o_ref):
    _, H, W, Cin = x_ref.shape
    _, _, _, Coutp = o_ref.shape
    C2cor = wp12_ref.shape[-1]          # 2 * corner_dim (fused p1||p2)
    Ccor = C2cor // 2
    Cmid = wp_ref.shape[-1]

    x_bf = x_ref[0]                      # (H, W, Cin) bf16 straight from HBM
    x = x_bf.astype(jnp.float32)         # f32 working copy for halo shifts

    # --- iota / mask hoisting: built once per kernel invocation and cached by C ------
    _iota, _masks = {}, {}

    def col_iota(C):
        if C not in _iota:
            _iota[C] = lax.broadcasted_iota(jnp.int32, (H, W, C), 1)
        return _iota[C]

    def halo_masks(C):
        if C not in _masks:
            col = col_iota(C)
            _masks[C] = (col >= 1, col < W - 1)
        return _masks[C]

    # --- conv1: 1x1 conv + folded BN + relu (residual branch), bf16 MXU operands ----
    xm_bf = x_bf.reshape(H * W, Cin)
    conv1 = jnp.maximum(
        jnp.dot(xm_bf, w1_ref[...], preferred_element_type=jnp.float32) + b1_ref[...],
        0.0)                                                       # (H*W, Cmid) f32

    # --- fused p1 || p2 3x3 conv: one im2col, one matmul with N = 2*corner_dim ------
    p12 = jnp.maximum(_conv3x3(x, wp12_ref, bp12_ref[...], halo_masks(Cin)), 0.0)
    p12 = p12.reshape(H, W, C2cor)
    p1 = p12[:, :, :Ccor]                # 128-aligned lane slices: free
    p2 = p12[:, :, Ccor:]

    # --- corner pool: TopPool(p1) + LeftPool(p2), register/VMEM-resident scans -------
    pooled = _reverse_cummax_h(p1) + _reverse_cummax_w(p2, col_iota(Ccor))

    # --- p_conv1 (3x3, folded BN) + residual conv1, relu; per-tap K=128 matmuls ------
    mid = jnp.maximum(
        _conv3x3(pooled, wp_ref, bp_ref[...], halo_masks(Ccor), tap_concat=False)
        + conv1, 0.0)
    mid = mid.reshape(H, W, Cmid)

    # --- conv2 (3x3, folded BN) + relu; lane-dense (Cout padded to 128) store --------
    out = jnp.maximum(_conv3x3(mid, w2_ref, b2_ref[...], halo_masks(Cmid)), 0.0)
    o_ref[...] = out.reshape(1, H, W, Coutp)


# ----------------------------------------------------------------------------
# Wrapper: BN folding, bf16 weight packing, single pallas_call over the batch
# ----------------------------------------------------------------------------
def corner_pool_pack_forward(x_nchw, params):
    # NCHW -> NHWC; activations ship to the kernel as bf16 (half the input DMA bytes)
    x = jnp.transpose(x_nchw, (0, 2, 3, 1)).astype(jnp.bfloat16)
    B, H, W, Cin = x.shape
    Ccor = params['p1_w'].shape[-1]
    Cmid = params['p_w'].shape[-1]          # = dim
    Cout = params['conv2_w'].shape[-1]      # = dim
    LANE = 128
    Coutp = max(LANE, ((Cout + LANE - 1) // LANE) * LANE)
    bf = jnp.bfloat16

    def fold3(w, scale):
        """(3,3,Ci,Co) HWIO weights, BN scale folded (f32), reshaped to (3, 3*Ci, Co)."""
        w = w.astype(jnp.float32) * scale.reshape(1, 1, 1, -1)
        _, _, ci, co = w.shape
        return w.reshape(3, 3 * ci, co)

    # conv1 (1x1) -----------------------------------------------------------------
    w1 = (params['conv1_w'].astype(jnp.float32)
          * params['conv1_bn'][0].reshape(1, -1)).astype(bf)
    b1 = params['conv1_bn'][1].reshape(1, -1).astype(jnp.float32)
    # fused p1 || p2 (output channels concatenated -> single N=2*Ccor matmul) ------
    wp12 = jnp.concatenate([fold3(params['p1_w'], params['p1_bn'][0]),
                            fold3(params['p2_w'], params['p2_bn'][0])],
                           axis=-1).astype(bf)
    bp12 = jnp.concatenate([params['p1_bn'][1], params['p2_bn'][1]]
                           ).reshape(1, -1).astype(jnp.float32)
    # p_conv1 ----------------------------------------------------------------------
    wp = fold3(params['p_w'], params['p_bn'][0]).astype(bf)
    bp = params['p_bn'][1].reshape(1, -1).astype(jnp.float32)
    # conv2: pad Cout up to a multiple of 128 -> unmasked lane-dense output store ---
    w2f = (params['conv2_w'].astype(jnp.float32)
           * params['conv2_bn'][0].reshape(1, 1, 1, -1))
    w2f = jnp.pad(w2f, ((0, 0), (0, 0), (0, 0), (0, Coutp - Cout)))
    w2 = w2f.reshape(3, 3 * Cmid, Coutp).astype(bf)
    b2 = jnp.pad(params['conv2_bn'][1].astype(jnp.float32),
                 (0, Coutp - Cout)).reshape(1, Coutp)

    consts = (w1, b1, wp12, bp12, wp, bp, w2, b2)
    flops = 2 * B * H * W * (Cin * Cmid + 9 * Cin * 2 * Ccor
                             + 9 * Ccor * Cmid + 9 * Cmid * Coutp)
    bytes_accessed = (x.size * x.dtype.itemsize
                      + sum(a.size * a.dtype.itemsize for a in consts)
                      + B * H * W * Coutp * 4)

    def const_spec(shape):
        # batch-invariant operand: block == full array, block index fixed at 0
        return pl.BlockSpec(tuple(shape), lambda i: (0,) * len(shape))

    out_full = pl.pallas_call(
        _fused_corner_pool_kernel,
        grid=(B,),
        in_specs=[
            pl.BlockSpec((1, H, W, Cin), lambda i: (i, 0, 0, 0)),
            const_spec(w1.shape), const_spec(b1.shape),
            const_spec(wp12.shape), const_spec(bp12.shape),
            const_spec(wp.shape), const_spec(bp.shape),
            const_spec(w2.shape), const_spec(b2.shape),
        ],
        out_specs=pl.BlockSpec((1, H, W, Coutp), lambda i: (i, 0, 0, 0)),
        out_shape=jax.ShapeDtypeStruct((B, H, W, Coutp), jnp.float32),
        compiler_params=pltpu.CompilerParams(
            dimension_semantics=("parallel",),          # v7x: one batch elem per core
            vmem_limit_bytes=32 * 1024 * 1024),
        cost_estimate=pl.CostEstimate(flops=flops, transcendentals=0,
                                      bytes_accessed=bytes_accessed),
    )(x, *consts)

    out = out_full[..., :Cout]                       # drop lane padding
    return jnp.transpose(out, (0, 3, 1, 2))          # NHWC -> NCHW


# ----------------------------------------------------------------------------
# Pure-JAX reference (independent of the kernel's weight packing).
# mxu_dtype=float32  -> exact module math.
# mxu_dtype=bfloat16 -> same bf16-operand / f32-accumulate math as the TPU kernel,
#                       so the comparison isolates kernel structure from MXU rounding.
# ----------------------------------------------------------------------------
def reference_forward(x_nchw, params, mxu_dtype=jnp.float32):
    dim = x_nchw.shape[1]
    x = jnp.transpose(x_nchw, (0, 2, 3, 1)).astype(jnp.float32)

    def conv(xx, w_hwio, scale, bias, relu):
        wf = w_hwio.astype(jnp.float32) * scale.reshape(1, 1, 1, -1)   # fold BN scale
        y = lax.conv_general_dilated(
            xx.astype(mxu_dtype), wf.astype(mxu_dtype), (1, 1), 'SAME',
            dimension_numbers=('NHWC', 'HWIO', 'NHWC'),
            preferred_element_type=jnp.float32)
        y = y + bias.reshape(1, 1, 1, -1).astype(jnp.float32)
        return jnp.maximum(y, 0.0) if relu else y

    conv1 = conv(x, params['conv1_w'].reshape(1, 1, dim, dim), *params['conv1_bn'], True)
    p1 = conv(x, params['p1_w'], *params['p1_bn'], True)
    p2 = conv(x, params['p2_w'], *params['p2_bn'], True)
    pool1 = lax.cummax(p1, axis=1, reverse=True)   # TopPool
    pool2 = lax.cummax(p2, axis=2, reverse=True)   # LeftPool
    pconv = conv(pool1 + pool2, params['p_w'], *params['p_bn'], False)
    mid = jnp.maximum(pconv + conv1, 0.0)
    out = conv(mid, params['conv2_w'], *params['conv2_bn'], True)
    return jnp.transpose(out, (0, 3, 1, 2))


# ----------------------------------------------------------------------------
# Deterministic parameter init (eval-mode BN folded into scale/bias)
# ----------------------------------------------------------------------------
def bn_fold(key, c, eps=1e-5):
    k1, k2, k3, k4 = jax.random.split(key, 4)
    gamma = jax.random.uniform(k1, (c,), jnp.float32, 0.5, 1.5)
    beta = jax.random.normal(k2, (c,), jnp.float32) * 0.1
    mean = jax.random.normal(k3, (c,), jnp.float32) * 0.1
    var = jax.random.uniform(k4, (c,), jnp.float32, 0.5, 1.5)
    scale = gamma / jnp.sqrt(var + eps)
    bias = beta - mean * scale
    return scale, bias


if __name__ == "__main__":
    B, dim, H, W = 2, 4, 16, 16
    corner_dim = 128  # module default

    key = jax.random.PRNGKey(0)
    keys = jax.random.split(key, 11)
    x = jax.random.normal(keys[0], (B, dim, H, W), jnp.float32)  # PyTorch-style NCHW input

    params = {
        'p1_w': jax.random.normal(keys[1], (3, 3, dim, corner_dim), jnp.float32) * 0.1,
        'p1_bn': bn_fold(keys[2], corner_dim),
        'p2_w': jax.random.normal(keys[3], (3, 3, dim, corner_dim), jnp.float32) * 0.1,
        'p2_bn': bn_fold(keys[4], corner_dim),
        'p_w': jax.random.normal(keys[5], (3, 3, corner_dim, dim), jnp.float32) * 0.05,
        'p_bn': bn_fold(keys[6], dim),
        'conv1_w': jax.random.normal(keys[7], (dim, dim), jnp.float32) * 0.1,
        'conv1_bn': bn_fold(keys[8], dim),
        'conv2_w': jax.random.normal(keys[9], (3, 3, dim, dim), jnp.float32) * 0.1,
        'conv2_bn': bn_fold(keys[10], dim),
    }

    out = corner_pool_pack_forward(x, params)
    out = jax.block_until_ready(out)
    assert out.shape == (B, dim, H, W) and out.dtype == jnp.float32

    # Compare against the lax.conv/lax.cummax reference using the same bf16-operand /
    # f32-accumulate arithmetic the kernel uses -> only accumulation-order differences.
    ref = jax.block_until_ready(reference_forward(x, params, mxu_dtype=jnp.bfloat16))
    max_err = float(jnp.max(jnp.abs(out - ref)))
    assert max_err < 2e-3, f"mismatch vs reference: {max_err}"

    print("KERNEL_OK")
</pallas_src>

<mosaic_0001>
module attributes {stable_mosaic.version = 11 : i64} {
  func.func @_fused_corner_pool_kernel(%arg0: i32, %arg1: memref<1x16x16x4xbf16, #tpu.memory_space<vmem>>, %arg2: memref<4x4xbf16, #tpu.memory_space<vmem>>, %arg3: memref<1x4xf32, #tpu.memory_space<vmem>>, %arg4: memref<3x12x256xbf16, #tpu.memory_space<vmem>>, %arg5: memref<1x256xf32, #tpu.memory_space<vmem>>, %arg6: memref<3x384x4xbf16, #tpu.memory_space<vmem>>, %arg7: memref<1x4xf32, #tpu.memory_space<vmem>>, %arg8: memref<3x12x128xbf16, #tpu.memory_space<vmem>>, %arg9: memref<1x128xf32, #tpu.memory_space<vmem>>, %arg10: memref<1x16x16x128xf32, #tpu.memory_space<vmem>>) attributes {dimension_semantics = [#tpu.dimension_semantics<parallel>], iteration_bounds = array<i64: 2>, scalar_prefetch = 0 : i64, scratch_operands = 0 : i64, tpu.core_type = #tpu.core_type<tc>, window_params = [{transform_indices = @transform_0, window_bounds = array<i64: 1, 16, 16, 4>}, {pipeline_mode = #tpu.pipeline_mode<synchronous>, transform_indices = @transform_1, window_bounds = array<i64: 4, 4>}, {pipeline_mode = #tpu.pipeline_mode<synchronous>, transform_indices = @transform_2, window_bounds = array<i64: 1, 4>}, {pipeline_mode = #tpu.pipeline_mode<synchronous>, transform_indices = @transform_3, window_bounds = array<i64: 3, 12, 256>}, {pipeline_mode = #tpu.pipeline_mode<synchronous>, transform_indices = @transform_4, window_bounds = array<i64: 1, 256>}, {pipeline_mode = #tpu.pipeline_mode<synchronous>, transform_indices = @transform_5, window_bounds = array<i64: 3, 384, 4>}, {pipeline_mode = #tpu.pipeline_mode<synchronous>, transform_indices = @transform_6, window_bounds = array<i64: 1, 4>}, {pipeline_mode = #tpu.pipeline_mode<synchronous>, transform_indices = @transform_7, window_bounds = array<i64: 3, 12, 128>}, {pipeline_mode = #tpu.pipeline_mode<synchronous>, transform_indices = @transform_8, window_bounds = array<i64: 1, 128>}, {transform_indices = @transform_9, window_bounds = array<i64: 1, 16, 16, 128>}]} {
    %c0 = arith.constant 0 : index
    %c0_0 = arith.constant 0 : index
    %c0_1 = arith.constant 0 : index
    %c0_2 = arith.constant 0 : index
    %0 = vector.load %arg1[%c0, %c0_0, %c0_1, %c0_2] : memref<1x16x16x4xbf16, #tpu.memory_space<vmem>>, vector<1x16x16x4xbf16>
    %1 = vector.shape_cast %0 : vector<1x16x16x4xbf16> to vector<16x16x4xbf16>
    %2 = arith.extf %1 : vector<16x16x4xbf16> to vector<16x16x4xf32>
    %3 = vector.shape_cast %1 : vector<16x16x4xbf16> to vector<256x4xbf16>
    %c0_3 = arith.constant 0 : index
    %c0_4 = arith.constant 0 : index
    %4 = vector.load %arg2[%c0_3, %c0_4] : memref<4x4xbf16, #tpu.memory_space<vmem>>, vector<4x4xbf16>
    %cst = arith.constant dense<0.000000e+00> : vector<256x4xf32>
    %5 = tpu.matmul %3, %4, %cst {dimension_numbers = #tpu.dot_dimension_numbers<[1], [0], [0], [1], [0, 0, 1, 1], [], []>} : vector<256x4xbf16>, vector<4x4xbf16>, vector<256x4xf32> -> vector<256x4xf32>
    %c0_5 = arith.constant 0 : index
    %c0_6 = arith.constant 0 : index
    %6 = vector.load %arg3[%c0_5, %c0_6] : memref<1x4xf32, #tpu.memory_space<vmem>>, vector<1x4xf32>
    %7 = vector.broadcast %6 : vector<1x4xf32> to vector<256x4xf32>
    %8 = arith.addf %5, %7 : vector<256x4xf32>
    %cst_7 = arith.constant 0.000000e+00 : f32
    %9 = vector.broadcast %cst_7 : f32 to vector<256x4xf32>
    %10 = arith.maximumf %8, %9 : vector<256x4xf32>
    %c0_8 = arith.constant 0 : index
    %c0_9 = arith.constant 0 : index
    %11 = vector.load %arg5[%c0_8, %c0_9] : memref<1x256xf32, #tpu.memory_space<vmem>>, vector<1x256xf32>
    %12 = tpu.iota {dimensions = array<i32: 1>} : vector<16x16x4xi32>
    %c1_i32 = arith.constant 1 : i32
    %13 = vector.broadcast %c1_i32 : i32 to vector<16x16x4xi32>
    %14 = arith.cmpi sge, %12, %13 : vector<16x16x4xi32>
    %c15_i32 = arith.constant 15 : i32
    %15 = vector.broadcast %c15_i32 : i32 to vector<16x16x4xi32>
    %16 = arith.cmpi slt, %12, %15 : vector<16x16x4xi32>
    %cst_10 = arith.constant 0.000000e+00 : f32
    %17 = vector.broadcast %cst_10 : f32 to vector<1x16x4xf32>
    %cst_11 = arith.constant 0.000000e+00 : f32
    %18 = vector.broadcast %cst_11 : f32 to vector<256x256xf32>
    %19 = vector.extract_strided_slice %2 {offsets = [0, 0, 0], sizes = [15, 16, 4], strides = [1, 1, 1]} : vector<16x16x4xf32> to vector<15x16x4xf32>
    %20 = tpu.concatenate %17, %19 in 0 : vector<1x16x4xf32>, vector<15x16x4xf32> -> vector<16x16x4xf32>
    %c1_i32_12 = arith.constant 1 : i32
    %21 = tpu.dynamic_rotate %20 by %c1_i32_12 dim 1 : vector<16x16x4xf32>, i32 -> vector<16x16x4xf32>
    %cst_13 = arith.constant 0.000000e+00 : f32
    %22 = vector.broadcast %cst_13 : f32 to vector<16x16x4xf32>
    %23 = arith.select %14, %21, %22 : vector<16x16x4xi1>, vector<16x16x4xf32>
    %c15_i32_14 = arith.constant 15 : i32
    %24 = tpu.dynamic_rotate %20 by %c15_i32_14 dim 1 : vector<16x16x4xf32>, i32 -> vector<16x16x4xf32>
    %cst_15 = arith.constant 0.000000e+00 : f32
    %25 = vector.broadcast %cst_15 : f32 to vector<16x16x4xf32>
    %26 = arith.select %16, %24, %25 : vector<16x16x4xi1>, vector<16x16x4xf32>
    %c0_16 = arith.constant 0 : index
    %c0_17 = arith.constant 0 : index
    %c0_18 = arith.constant 0 : index
    %27 = vector.load %arg4[%c0_16, %c0_17, %c0_18] : memref<3x12x256xbf16, #tpu.memory_space<vmem>>, vector<1x12x256xbf16>
    %28 = vector.shape_cast %27 : vector<1x12x256xbf16> to vector<12x256xbf16>
    %29 = vector.shape_cast %23 : vector<16x16x4xf32> to vector<256x4xf32>
    %30 = vector.shape_cast %20 : vector<16x16x4xf32> to vector<256x4xf32>
    %31 = vector.shape_cast %26 : vector<16x16x4xf32> to vector<256x4xf32>
    %32 = tpu.concatenate %29, %30, %31 in 1 : vector<256x4xf32>, vector<256x4xf32>, vector<256x4xf32> -> vector<256x12xf32>
    %33 = arith.truncf %32 : vector<256x12xf32> to vector<256x12xbf16>
    %cst_19 = arith.constant dense<0.000000e+00> : vector<256x256xf32>
    %34 = tpu.matmul %33, %28, %cst_19 {dimension_numbers = #tpu.dot_dimension_numbers<[1], [0], [0], [1], [0, 0, 1, 1], [], []>} : vector<256x12xbf16>, vector<12x256xbf16>, vector<256x256xf32> -> vector<256x256xf32>
    %35 = arith.addf %18, %34 : vector<256x256xf32>
    %c1_i32_20 = arith.constant 1 : i32
    %36 = tpu.dynamic_rotate %2 by %c1_i32_20 dim 1 : vector<16x16x4xf32>, i32 -> vector<16x16x4xf32>
    %cst_21 = arith.constant 0.000000e+00 : f32
    %37 = vector.broadcast %cst_21 : f32 to vector<16x16x4xf32>
    %38 = arith.select %14, %36, %37 : vector<16x16x4xi1>, vector<16x16x4xf32>
    %c15_i32_22 = arith.constant 15 : i32
    %39 = tpu.dynamic_rotate %2 by %c15_i32_22 dim 1 : vector<16x16x4xf32>, i32 -> vector<16x16x4xf32>
    %cst_23 = arith.constant 0.000000e+00 : f32
    %40 = vector.broadcast %cst_23 : f32 to vector<16x16x4xf32>
    %41 = arith.select %16, %39, %40 : vector<16x16x4xi1>, vector<16x16x4xf32>
    %c1 = arith.constant 1 : index
    %c0_24 = arith.constant 0 : index
    %c0_25 = arith.constant 0 : index
    %42 = vector.load %arg4[%c1, %c0_24, %c0_25] : memref<3x12x256xbf16, #tpu.memory_space<vmem>>, vector<1x12x256xbf16>
    %43 = vector.shape_cast %42 : vector<1x12x256xbf16> to vector<12x256xbf16>
    %44 = vector.shape_cast %38 : vector<16x16x4xf32> to vector<256x4xf32>
    %45 = vector.shape_cast %2 : vector<16x16x4xf32> to vector<256x4xf32>
    %46 = vector.shape_cast %41 : vector<16x16x4xf32> to vector<256x4xf32>
    %47 = tpu.concatenate %44, %45, %46 in 1 : vector<256x4xf32>, vector<256x4xf32>, vector<256x4xf32> -> vector<256x12xf32>
    %48 = arith.truncf %47 : vector<256x12xf32> to vector<256x12xbf16>
    %cst_26 = arith.constant dense<0.000000e+00> : vector<256x256xf32>
    %49 = tpu.matmul %48, %43, %cst_26 {dimension_numbers = #tpu.dot_dimension_numbers<[1], [0], [0], [1], [0, 0, 1, 1], [], []>} : vector<256x12xbf16>, vector<12x256xbf16>, vector<256x256xf32> -> vector<256x256xf32>
    %50 = arith.addf %35, %49 : vector<256x256xf32>
    %51 = vector.extract_strided_slice %2 {offsets = [1, 0, 0], sizes = [15, 16, 4], strides = [1, 1, 1]} : vector<16x16x4xf32> to vector<15x16x4xf32>
    %52 = tpu.concatenate %51, %17 in 0 : vector<15x16x4xf32>, vector<1x16x4xf32> -> vector<16x16x4xf32>
    %c1_i32_27 = arith.constant 1 : i32
    %53 = tpu.dynamic_rotate %52 by %c1_i32_27 dim 1 : vector<16x16x4xf32>, i32 -> vector<16x16x4xf32>
    %cst_28 = arith.constant 0.000000e+00 : f32
    %54 = vector.broadcast %cst_28 : f32 to vector<16x16x4xf32>
    %55 = arith.select %14, %53, %54 : vector<16x16x4xi1>, vector<16x16x4xf32>
    %c15_i32_29 = arith.constant 15 : i32
    %56 = tpu.dynamic_rotate %52 by %c15_i32_29 dim 1 : vector<16x16x4xf32>, i32 -> vector<16x16x4xf32>
    %cst_30 = arith.constant 0.000000e+00 : f32
    %57 = vector.broadcast %cst_30 : f32 to vector<16x16x4xf32>
    %58 = arith.select %16, %56, %57 : vector<16x16x4xi1>, vector<16x16x4xf32>
    %c2 = arith.constant 2 : index
    %c0_31 = arith.constant 0 : index
    %c0_32 = arith.constant 0 : index
    %59 = vector.load %arg4[%c2, %c0_31, %c0_32] : memref<3x12x256xbf16, #tpu.memory_space<vmem>>, vector<1x12x256xbf16>
    %60 = vector.shape_cast %59 : vector<1x12x256xbf16> to vector<12x256xbf16>
    %61 = vector.shape_cast %55 : vector<16x16x4xf32> to vector<256x4xf32>
    %62 = vector.shape_cast %52 : vector<16x16x4xf32> to vector<256x4xf32>
    %63 = vector.shape_cast %58 : vector<16x16x4xf32> to vector<256x4xf32>
    %64 = tpu.concatenate %61, %62, %63 in 1 : vector<256x4xf32>, vector<256x4xf32>, vector<256x4xf32> -> vector<256x12xf32>
    %65 = arith.truncf %64 : vector<256x12xf32> to vector<256x12xbf16>
    %cst_33 = arith.constant dense<0.000000e+00> : vector<256x256xf32>
    %66 = tpu.matmul %65, %60, %cst_33 {dimension_numbers = #tpu.dot_dimension_numbers<[1], [0], [0], [1], [0, 0, 1, 1], [], []>} : vector<256x12xbf16>, vector<12x256xbf16>, vector<256x256xf32> -> vector<256x256xf32>
    %67 = arith.addf %50, %66 : vector<256x256xf32>
    %68 = vector.broadcast %11 : vector<1x256xf32> to vector<256x256xf32>
    %69 = arith.addf %67, %68 : vector<256x256xf32>
    %cst_34 = arith.constant 0.000000e+00 : f32
    %70 = vector.broadcast %cst_34 : f32 to vector<256x256xf32>
    %71 = arith.maximumf %69, %70 : vector<256x256xf32>
    %72 = vector.shape_cast %71 : vector<256x256xf32> to vector<16x16x256xf32>
    %73 = vector.extract_strided_slice %72 {offsets = [0, 0, 0], sizes = [16, 16, 128], strides = [1, 1, 1]} : vector<16x16x256xf32> to vector<16x16x128xf32>
    %74 = vector.extract_strided_slice %72 {offsets = [0, 0, 128], sizes = [16, 16, 128], strides = [1, 1, 1]} : vector<16x16x256xf32> to vector<16x16x128xf32>
    %cst_35 = arith.constant 0.000000e+00 : f32
    %75 = vector.broadcast %cst_35 : f32 to vector<16x16x128xf32>
    %76 = vector.extract_strided_slice %73 {offsets = [1, 0, 0], sizes = [15, 16, 128], strides = [1, 1, 1]} : vector<16x16x128xf32> to vector<15x16x128xf32>
    %77 = vector.extract_strided_slice %75 {offsets = [0, 0, 0], sizes = [1, 16, 128], strides = [1, 1, 1]} : vector<16x16x128xf32> to vector<1x16x128xf32>
    %78 = tpu.concatenate %76, %77 in 0 : vector<15x16x128xf32>, vector<1x16x128xf32> -> vector<16x16x128xf32>
    %79 = arith.maximumf %73, %78 : vector<16x16x128xf32>
    %80 = vector.extract_strided_slice %79 {offsets = [2, 0, 0], sizes = [14, 16, 128], strides = [1, 1, 1]} : vector<16x16x128xf32> to vector<14x16x128xf32>
    %81 = vector.extract_strided_slice %75 {offsets = [0, 0, 0], sizes = [2, 16, 128], strides = [1, 1, 1]} : vector<16x16x128xf32> to vector<2x16x128xf32>
    %82 = tpu.concatenate %80, %81 in 0 : vector<14x16x128xf32>, vector<2x16x128xf32> -> vector<16x16x128xf32>
    %83 = arith.maximumf %79, %82 : vector<16x16x128xf32>
    %84 = vector.extract_strided_slice %83 {offsets = [4, 0, 0], sizes = [12, 16, 128], strides = [1, 1, 1]} : vector<16x16x128xf32> to vector<12x16x128xf32>
    %85 = vector.extract_strided_slice %75 {offsets = [0, 0, 0], sizes = [4, 16, 128], strides = [1, 1, 1]} : vector<16x16x128xf32> to vector<4x16x128xf32>
    %86 = tpu.concatenate %84, %85 in 0 : vector<12x16x128xf32>, vector<4x16x128xf32> -> vector<16x16x128xf32>
    %87 = arith.maximumf %83, %86 : vector<16x16x128xf32>
    %88 = vector.extract_strided_slice %87 {offsets = [8, 0, 0], sizes = [8, 16, 128], strides = [1, 1, 1]} : vector<16x16x128xf32> to vector<8x16x128xf32>
    %89 = vector.extract_strided_slice %75 {offsets = [0, 0, 0], sizes = [8, 16, 128], strides = [1, 1, 1]} : vector<16x16x128xf32> to vector<8x16x128xf32>
    %90 = tpu.concatenate %88, %89 in 0 : vector<8x16x128xf32>, vector<8x16x128xf32> -> vector<16x16x128xf32>
    %91 = arith.maximumf %87, %90 : vector<16x16x128xf32>
    %92 = tpu.iota {dimensions = array<i32: 1>} : vector<16x16x128xi32>
    %c15_i32_36 = arith.constant 15 : i32
    %93 = tpu.dynamic_rotate %74 by %c15_i32_36 dim 1 : vector<16x16x128xf32>, i32 -> vector<16x16x128xf32>
    %c15_i32_37 = arith.constant 15 : i32
    %94 = vector.broadcast %c15_i32_37 : i32 to vector<16x16x128xi32>
    %95 = arith.cmpi slt, %92, %94 : vector<16x16x128xi32>
    %cst_38 = arith.constant 0.000000e+00 : f32
    %96 = vector.broadcast %cst_38 : f32 to vector<16x16x128xf32>
    %97 = arith.select %95, %93, %96 : vector<16x16x128xi1>, vector<16x16x128xf32>
    %98 = arith.maximumf %74, %97 : vector<16x16x128xf32>
    %c14_i32 = arith.constant 14 : i32
    %99 = tpu.dynamic_rotate %98 by %c14_i32 dim 1 : vector<16x16x128xf32>, i32 -> vector<16x16x128xf32>
    %c14_i32_39 = arith.constant 14 : i32
    %100 = vector.broadcast %c14_i32_39 : i32 to vector<16x16x128xi32>
    %101 = arith.cmpi slt, %92, %100 : vector<16x16x128xi32>
    %cst_40 = arith.constant 0.000000e+00 : f32
    %102 = vector.broadcast %cst_40 : f32 to vector<16x16x128xf32>
    %103 = arith.select %101, %99, %102 : vector<16x16x128xi1>, vector<16x16x128xf32>
    %104 = arith.maximumf %98, %103 : vector<16x16x128xf32>
    %c12_i32 = arith.constant 12 : i32
    %105 = tpu.dynamic_rotate %104 by %c12_i32 dim 1 : vector<16x16x128xf32>, i32 -> vector<16x16x128xf32>
    %c12_i32_41 = arith.constant 12 : i32
    %106 = vector.broadcast %c12_i32_41 : i32 to vector<16x16x128xi32>
    %107 = arith.cmpi slt, %92, %106 : vector<16x16x128xi32>
    %cst_42 = arith.constant 0.000000e+00 : f32
    %108 = vector.broadcast %cst_42 : f32 to vector<16x16x128xf32>
    %109 = arith.select %107, %105, %108 : vector<16x16x128xi1>, vector<16x16x128xf32>
    %110 = arith.maximumf %104, %109 : vector<16x16x128xf32>
    %c8_i32 = arith.constant 8 : i32
    %111 = tpu.dynamic_rotate %110 by %c8_i32 dim 1 : vector<16x16x128xf32>, i32 -> vector<16x16x128xf32>
    %c8_i32_43 = arith.constant 8 : i32
    %112 = vector.broadcast %c8_i32_43 : i32 to vector<16x16x128xi32>
    %113 = arith.cmpi slt, %92, %112 : vector<16x16x128xi32>
    %cst_44 = arith.constant 0.000000e+00 : f32
    %114 = vector.broadcast %cst_44 : f32 to vector<16x16x128xf32>
    %115 = arith.select %113, %111, %114 : vector<16x16x128xi1>, vector<16x16x128xf32>
    %116 = arith.maximumf %110, %115 : vector<16x16x128xf32>
    %117 = arith.addf %91, %116 : vector<16x16x128xf32>
    %c0_45 = arith.constant 0 : index
    %c0_46 = arith.constant 0 : index
    %118 = vector.load %arg7[%c0_45, %c0_46] : memref<1x4xf32, #tpu.memory_space<vmem>>, vector<1x4xf32>
    %c1_i32_47 = arith.constant 1 : i32
    %119 = vector.broadcast %c1_i32_47 : i32 to vector<16x16x128xi32>
    %120 = arith.cmpi sge, %92, %119 : vector<16x16x128xi32>
    %c15_i32_48 = arith.constant 15 : i32
    %121 = vector.broadcast %c15_i32_48 : i32 to vector<16x16x128xi32>
    %122 = arith.cmpi slt, %92, %121 : vector<16x16x128xi32>
    %cst_49 = arith.constant 0.000000e+00 : f32
    %123 = vector.broadcast %cst_49 : f32 to vector<1x16x128xf32>
    %cst_50 = arith.constant 0.000000e+00 : f32
    %124 = vector.broadcast %cst_50 : f32 to vector<256x4xf32>
    %125 = vector.extract_strided_slice %117 {offsets = [0, 0, 0], sizes = [15, 16, 128], strides = [1, 1, 1]} : vector<16x16x128xf32> to vector<15x16x128xf32>
    %126 = tpu.concatenate %123, %125 in 0 : vector<1x16x128xf32>, vector<15x16x128xf32> -> vector<16x16x128xf32>
    %c1_i32_51 = arith.constant 1 : i32
    %127 = tpu.dynamic_rotate %126 by %c1_i32_51 dim 1 : vector<16x16x128xf32>, i32 -> vector<16x16x128xf32>
    %cst_52 = arith.constant 0.000000e+00 : f32
    %128 = vector.broadcast %cst_52 : f32 to vector<16x16x128xf32>
    %129 = arith.select %120, %127, %128 : vector<16x16x128xi1>, vector<16x16x128xf32>
    %c15_i32_53 = arith.constant 15 : i32
    %130 = tpu.dynamic_rotate %126 by %c15_i32_53 dim 1 : vector<16x16x128xf32>, i32 -> vector<16x16x128xf32>
    %cst_54 = arith.constant 0.000000e+00 : f32
    %131 = vector.broadcast %cst_54 : f32 to vector<16x16x128xf32>
    %132 = arith.select %122, %130, %131 : vector<16x16x128xi1>, vector<16x16x128xf32>
    %c0_55 = arith.constant 0 : index
    %c0_56 = arith.constant 0 : index
    %c0_57 = arith.constant 0 : index
    %133 = vector.load %arg6[%c0_55, %c0_56, %c0_57] : memref<3x384x4xbf16, #tpu.memory_space<vmem>>, vector<1x384x4xbf16>
    %134 = vector.shape_cast %133 : vector<1x384x4xbf16> to vector<384x4xbf16>
    %135 = vector.shape_cast %129 : vector<16x16x128xf32> to vector<256x128xf32>
    %136 = arith.truncf %135 : vector<256x128xf32> to vector<256x128xbf16>
    %137 = vector.extract_strided_slice %134 {offsets = [0, 0], sizes = [128, 4], strides = [1, 1]} : vector<384x4xbf16> to vector<128x4xbf16>
    %cst_58 = arith.constant dense<0.000000e+00> : vector<256x4xf32>
    %138 = tpu.matmul %136, %137, %cst_58 {dimension_numbers = #tpu.dot_dimension_numbers<[1], [0], [0], [1], [0, 0, 1, 1], [], []>} : vector<256x128xbf16>, vector<128x4xbf16>, vector<256x4xf32> -> vector<256x4xf32>
    %139 = arith.addf %124, %138 : vector<256x4xf32>
    %140 = vector.shape_cast %126 : vector<16x16x128xf32> to vector<256x128xf32>
    %141 = arith.truncf %140 : vector<256x128xf32> to vector<256x128xbf16>
    %142 = vector.extract_strided_slice %134 {offsets = [128, 0], sizes = [128, 4], strides = [1, 1]} : vector<384x4xbf16> to vector<128x4xbf16>
    %cst_59 = arith.constant dense<0.000000e+00> : vector<256x4xf32>
    %143 = tpu.matmul %141, %142, %cst_59 {dimension_numbers = #tpu.dot_dimension_numbers<[1], [0], [0], [1], [0, 0, 1, 1], [], []>} : vector<256x128xbf16>, vector<128x4xbf16>, vector<256x4xf32> -> vector<256x4xf32>
    %144 = arith.addf %139, %143 : vector<256x4xf32>
    %145 = vector.shape_cast %132 : vector<16x16x128xf32> to vector<256x128xf32>
    %146 = arith.truncf %145 : vector<256x128xf32> to vector<256x128xbf16>
    %147 = vector.extract_strided_slice %134 {offsets = [256, 0], sizes = [128, 4], strides = [1, 1]} : vector<384x4xbf16> to vector<128x4xbf16>
    %cst_60 = arith.constant dense<0.000000e+00> : vector<256x4xf32>
    %148 = tpu.matmul %146, %147, %cst_60 {dimension_numbers = #tpu.dot_dimension_numbers<[1], [0], [0], [1], [0, 0, 1, 1], [], []>} : vector<256x128xbf16>, vector<128x4xbf16>, vector<256x4xf32> -> vector<256x4xf32>
    %149 = arith.addf %144, %148 : vector<256x4xf32>
    %c1_i32_61 = arith.constant 1 : i32
    %150 = tpu.dynamic_rotate %117 by %c1_i32_61 dim 1 : vector<16x16x128xf32>, i32 -> vector<16x16x128xf32>
    %cst_62 = arith.constant 0.000000e+00 : f32
    %151 = vector.broadcast %cst_62 : f32 to vector<16x16x128xf32>
    %152 = arith.select %120, %150, %151 : vector<16x16x128xi1>, vector<16x16x128xf32>
    %c15_i32_63 = arith.constant 15 : i32
    %153 = tpu.dynamic_rotate %117 by %c15_i32_63 dim 1 : vector<16x16x128xf32>, i32 -> vector<16x16x128xf32>
    %cst_64 = arith.constant 0.000000e+00 : f32
    %154 = vector.broadcast %cst_64 : f32 to vector<16x16x128xf32>
    %155 = arith.select %122, %153, %154 : vector<16x16x128xi1>, vector<16x16x128xf32>
    %c1_65 = arith.constant 1 : index
    %c0_66 = arith.constant 0 : index
    %c0_67 = arith.constant 0 : index
    %156 = vector.load %arg6[%c1_65, %c0_66, %c0_67] : memref<3x384x4xbf16, #tpu.memory_space<vmem>>, vector<1x384x4xbf16>
    %157 = vector.shape_cast %156 : vector<1x384x4xbf16> to vector<384x4xbf16>
    %158 = vector.shape_cast %152 : vector<16x16x128xf32> to vector<256x128xf32>
    %159 = arith.truncf %158 : vector<256x128xf32> to vector<256x128xbf16>
    %160 = vector.extract_strided_slice %157 {offsets = [0, 0], sizes = [128, 4], strides = [1, 1]} : vector<384x4xbf16> to vector<128x4xbf16>
    %cst_68 = arith.constant dense<0.000000e+00> : vector<256x4xf32>
    %161 = tpu.matmul %159, %160, %cst_68 {dimension_numbers = #tpu.dot_dimension_numbers<[1], [0], [0], [1], [0, 0, 1, 1], [], []>} : vector<256x128xbf16>, vector<128x4xbf16>, vector<256x4xf32> -> vector<256x4xf32>
    %162 = arith.addf %149, %161 : vector<256x4xf32>
    %163 = vector.shape_cast %117 : vector<16x16x128xf32> to vector<256x128xf32>
    %164 = arith.truncf %163 : vector<256x128xf32> to vector<256x128xbf16>
    %165 = vector.extract_strided_slice %157 {offsets = [128, 0], sizes = [128, 4], strides = [1, 1]} : vector<384x4xbf16> to vector<128x4xbf16>
    %cst_69 = arith.constant dense<0.000000e+00> : vector<256x4xf32>
    %166 = tpu.matmul %164, %165, %cst_69 {dimension_numbers = #tpu.dot_dimension_numbers<[1], [0], [0], [1], [0, 0, 1, 1], [], []>} : vector<256x128xbf16>, vector<128x4xbf16>, vector<256x4xf32> -> vector<256x4xf32>
    %167 = arith.addf %162, %166 : vector<256x4xf32>
    %168 = vector.shape_cast %155 : vector<16x16x128xf32> to vector<256x128xf32>
    %169 = arith.truncf %168 : vector<256x128xf32> to vector<256x128xbf16>
    %170 = vector.extract_strided_slice %157 {offsets = [256, 0], sizes = [128, 4], strides = [1, 1]} : vector<384x4xbf16> to vector<128x4xbf16>
    %cst_70 = arith.constant dense<0.000000e+00> : vector<256x4xf32>
    %171 = tpu.matmul %169, %170, %cst_70 {dimension_numbers = #tpu.dot_dimension_numbers<[1], [0], [0], [1], [0, 0, 1, 1], [], []>} : vector<256x128xbf16>, vector<128x4xbf16>, vector<256x4xf32> -> vector<256x4xf32>
    %172 = arith.addf %167, %171 : vector<256x4xf32>
    %173 = vector.extract_strided_slice %117 {offsets = [1, 0, 0], sizes = [15, 16, 128], strides = [1, 1, 1]} : vector<16x16x128xf32> to vector<15x16x128xf32>
    %174 = tpu.concatenate %173, %123 in 0 : vector<15x16x128xf32>, vector<1x16x128xf32> -> vector<16x16x128xf32>
    %c1_i32_71 = arith.constant 1 : i32
    %175 = tpu.dynamic_rotate %174 by %c1_i32_71 dim 1 : vector<16x16x128xf32>, i32 -> vector<16x16x128xf32>
    %cst_72 = arith.constant 0.000000e+00 : f32
    %176 = vector.broadcast %cst_72 : f32 to vector<16x16x128xf32>
    %177 = arith.select %120, %175, %176 : vector<16x16x128xi1>, vector<16x16x128xf32>
    %c15_i32_73 = arith.constant 15 : i32
    %178 = tpu.dynamic_rotate %174 by %c15_i32_73 dim 1 : vector<16x16x128xf32>, i32 -> vector<16x16x128xf32>
    %cst_74 = arith.constant 0.000000e+00 : f32
    %179 = vector.broadcast %cst_74 : f32 to vector<16x16x128xf32>
    %180 = arith.select %122, %178, %179 : vector<16x16x128xi1>, vector<16x16x128xf32>
    %c2_75 = arith.constant 2 : index
    %c0_76 = arith.constant 0 : index
    %c0_77 = arith.constant 0 : index
    %181 = vector.load %arg6[%c2_75, %c0_76, %c0_77] : memref<3x384x4xbf16, #tpu.memory_space<vmem>>, vector<1x384x4xbf16>
    %182 = vector.shape_cast %181 : vector<1x384x4xbf16> to vector<384x4xbf16>
    %183 = vector.shape_cast %177 : vector<16x16x128xf32> to vector<256x128xf32>
    %184 = arith.truncf %183 : vector<256x128xf32> to vector<256x128xbf16>
    %185 = vector.extract_strided_slice %182 {offsets = [0, 0], sizes = [128, 4], strides = [1, 1]} : vector<384x4xbf16> to vector<128x4xbf16>
    %cst_78 = arith.constant dense<0.000000e+00> : vector<256x4xf32>
    %186 = tpu.matmul %184, %185, %cst_78 {dimension_numbers = #tpu.dot_dimension_numbers<[1], [0], [0], [1], [0, 0, 1, 1], [], []>} : vector<256x128xbf16>, vector<128x4xbf16>, vector<256x4xf32> -> vector<256x4xf32>
    %187 = arith.addf %172, %186 : vector<256x4xf32>
    %188 = vector.shape_cast %174 : vector<16x16x128xf32> to vector<256x128xf32>
    %189 = arith.truncf %188 : vector<256x128xf32> to vector<256x128xbf16>
    %190 = vector.extract_strided_slice %182 {offsets = [128, 0], sizes = [128, 4], strides = [1, 1]} : vector<384x4xbf16> to vector<128x4xbf16>
    %cst_79 = arith.constant dense<0.000000e+00> : vector<256x4xf32>
    %191 = tpu.matmul %189, %190, %cst_79 {dimension_numbers = #tpu.dot_dimension_numbers<[1], [0], [0], [1], [0, 0, 1, 1], [], []>} : vector<256x128xbf16>, vector<128x4xbf16>, vector<256x4xf32> -> vector<256x4xf32>
    %192 = arith.addf %187, %191 : vector<256x4xf32>
    %193 = vector.shape_cast %180 : vector<16x16x128xf32> to vector<256x128xf32>
    %194 = arith.truncf %193 : vector<256x128xf32> to vector<256x128xbf16>
    %195 = vector.extract_strided_slice %182 {offsets = [256, 0], sizes = [128, 4], strides = [1, 1]} : vector<384x4xbf16> to vector<128x4xbf16>
    %cst_80 = arith.constant dense<0.000000e+00> : vector<256x4xf32>
    %196 = tpu.matmul %194, %195, %cst_80 {dimension_numbers = #tpu.dot_dimension_numbers<[1], [0], [0], [1], [0, 0, 1, 1], [], []>} : vector<256x128xbf16>, vector<128x4xbf16>, vector<256x4xf32> -> vector<256x4xf32>
    %197 = arith.addf %192, %196 : vector<256x4xf32>
    %198 = vector.broadcast %118 : vector<1x4xf32> to vector<256x4xf32>
    %199 = arith.addf %197, %198 : vector<256x4xf32>
    %200 = arith.addf %199, %10 : vector<256x4xf32>
    %cst_81 = arith.constant 0.000000e+00 : f32
    %201 = vector.broadcast %cst_81 : f32 to vector<256x4xf32>
    %202 = arith.maximumf %200, %201 : vector<256x4xf32>
    %203 = vector.shape_cast %202 : vector<256x4xf32> to vector<16x16x4xf32>
    %c0_82 = arith.constant 0 : index
    %c0_83 = arith.constant 0 : index
    %204 = vector.load %arg9[%c0_82, %c0_83] : memref<1x128xf32, #tpu.memory_space<vmem>>, vector<1x128xf32>
    %cst_84 = arith.constant 0.000000e+00 : f32
    %205 = vector.broadcast %cst_84 : f32 to vector<1x16x4xf32>
    %cst_85 = arith.constant 0.000000e+00 : f32
    %206 = vector.broadcast %cst_85 : f32 to vector<256x128xf32>
    %207 = vector.extract_strided_slice %203 {offsets = [0, 0, 0], sizes = [15, 16, 4], strides = [1, 1, 1]} : vector<16x16x4xf32> to vector<15x16x4xf32>
    %208 = tpu.concatenate %205, %207 in 0 : vector<1x16x4xf32>, vector<15x16x4xf32> -> vector<16x16x4xf32>
    %c1_i32_86 = arith.constant 1 : i32
    %209 = tpu.dynamic_rotate %208 by %c1_i32_86 dim 1 : vector<16x16x4xf32>, i32 -> vector<16x16x4xf32>
    %cst_87 = arith.constant 0.000000e+00 : f32
    %210 = vector.broadcast %cst_87 : f32 to vector<16x16x4xf32>
    %211 = arith.select %14, %209, %210 : vector<16x16x4xi1>, vector<16x16x4xf32>
    %c15_i32_88 = arith.constant 15 : i32
    %212 = tpu.dynamic_rotate %208 by %c15_i32_88 dim 1 : vector<16x16x4xf32>, i32 -> vector<16x16x4xf32>
    %cst_89 = arith.constant 0.000000e+00 : f32
    %213 = vector.broadcast %cst_89 : f32 to vector<16x16x4xf32>
    %214 = arith.select %16, %212, %213 : vector<16x16x4xi1>, vector<16x16x4xf32>
    %c0_90 = arith.constant 0 : index
    %c0_91 = arith.constant 0 : index
    %c0_92 = arith.constant 0 : index
    %215 = vector.load %arg8[%c0_90, %c0_91, %c0_92] : memref<3x12x128xbf16, #tpu.memory_space<vmem>>, vector<1x12x128xbf16>
    %216 = vector.shape_cast %215 : vector<1x12x128xbf16> to vector<12x128xbf16>
    %217 = vector.shape_cast %211 : vector<16x16x4xf32> to vector<256x4xf32>
    %218 = vector.shape_cast %208 : vector<16x16x4xf32> to vector<256x4xf32>
    %219 = vector.shape_cast %214 : vector<16x16x4xf32> to vector<256x4xf32>
    %220 = tpu.concatenate %217, %218, %219 in 1 : vector<256x4xf32>, vector<256x4xf32>, vector<256x4xf32> -> vector<256x12xf32>
    %221 = arith.truncf %220 : vector<256x12xf32> to vector<256x12xbf16>
    %cst_93 = arith.constant dense<0.000000e+00> : vector<256x128xf32>
    %222 = tpu.matmul %221, %216, %cst_93 {dimension_numbers = #tpu.dot_dimension_numbers<[1], [0], [0], [1], [0, 0, 1, 1], [], []>} : vector<256x12xbf16>, vector<12x128xbf16>, vector<256x128xf32> -> vector<256x128xf32>
    %223 = arith.addf %206, %222 : vector<256x128xf32>
    %c1_i32_94 = arith.constant 1 : i32
    %224 = tpu.dynamic_rotate %203 by %c1_i32_94 dim 1 : vector<16x16x4xf32>, i32 -> vector<16x16x4xf32>
    %cst_95 = arith.constant 0.000000e+00 : f32
    %225 = vector.broadcast %cst_95 : f32 to vector<16x16x4xf32>
    %226 = arith.select %14, %224, %225 : vector<16x16x4xi1>, vector<16x16x4xf32>
    %c15_i32_96 = arith.constant 15 : i32
    %227 = tpu.dynamic_rotate %203 by %c15_i32_96 dim 1 : vector<16x16x4xf32>, i32 -> vector<16x16x4xf32>
    %cst_97 = arith.constant 0.000000e+00 : f32
    %228 = vector.broadcast %cst_97 : f32 to vector<16x16x4xf32>
    %229 = arith.select %16, %227, %228 : vector<16x16x4xi1>, vector<16x16x4xf32>
    %c1_98 = arith.constant 1 : index
    %c0_99 = arith.constant 0 : index
    %c0_100 = arith.constant 0 : index
    %230 = vector.load %arg8[%c1_98, %c0_99, %c0_100] : memref<3x12x128xbf16, #tpu.memory_space<vmem>>, vector<1x12x128xbf16>
    %231 = vector.shape_cast %230 : vector<1x12x128xbf16> to vector<12x128xbf16>
    %232 = vector.shape_cast %226 : vector<16x16x4xf32> to vector<256x4xf32>
    %233 = vector.shape_cast %203 : vector<16x16x4xf32> to vector<256x4xf32>
    %234 = vector.shape_cast %229 : vector<16x16x4xf32> to vector<256x4xf32>
    %235 = tpu.concatenate %232, %233, %234 in 1 : vector<256x4xf32>, vector<256x4xf32>, vector<256x4xf32> -> vector<256x12xf32>
    %236 = arith.truncf %235 : vector<256x12xf32> to vector<256x12xbf16>
    %cst_101 = arith.constant dense<0.000000e+00> : vector<256x128xf32>
    %237 = tpu.matmul %236, %231, %cst_101 {dimension_numbers = #tpu.dot_dimension_numbers<[1], [0], [0], [1], [0, 0, 1, 1], [], []>} : vector<256x12xbf16>, vector<12x128xbf16>, vector<256x128xf32> -> vector<256x128xf32>
    %238 = arith.addf %223, %237 : vector<256x128xf32>
    %239 = vector.extract_strided_slice %203 {offsets = [1, 0, 0], sizes = [15, 16, 4], strides = [1, 1, 1]} : vector<16x16x4xf32> to vector<15x16x4xf32>
    %240 = tpu.concatenate %239, %205 in 0 : vector<15x16x4xf32>, vector<1x16x4xf32> -> vector<16x16x4xf32>
    %c1_i32_102 = arith.constant 1 : i32
    %241 = tpu.dynamic_rotate %240 by %c1_i32_102 dim 1 : vector<16x16x4xf32>, i32 -> vector<16x16x4xf32>
    %cst_103 = arith.constant 0.000000e+00 : f32
    %242 = vector.broadcast %cst_103 : f32 to vector<16x16x4xf32>
    %243 = arith.select %14, %241, %242 : vector<16x16x4xi1>, vector<16x16x4xf32>
    %c15_i32_104 = arith.constant 15 : i32
    %244 = tpu.dynamic_rotate %240 by %c15_i32_104 dim 1 : vector<16x16x4xf32>, i32 -> vector<16x16x4xf32>
    %cst_105 = arith.constant 0.000000e+00 : f32
    %245 = vector.broadcast %cst_105 : f32 to vector<16x16x4xf32>
    %246 = arith.select %16, %244, %245 : vector<16x16x4xi1>, vector<16x16x4xf32>
    %c2_106 = arith.constant 2 : index
    %c0_107 = arith.constant 0 : index
    %c0_108 = arith.constant 0 : index
    %247 = vector.load %arg8[%c2_106, %c0_107, %c0_108] : memref<3x12x128xbf16, #tpu.memory_space<vmem>>, vector<1x12x128xbf16>
    %248 = vector.shape_cast %247 : vector<1x12x128xbf16> to vector<12x128xbf16>
    %249 = vector.shape_cast %243 : vector<16x16x4xf32> to vector<256x4xf32>
    %250 = vector.shape_cast %240 : vector<16x16x4xf32> to vector<256x4xf32>
    %251 = vector.shape_cast %246 : vector<16x16x4xf32> to vector<256x4xf32>
    %252 = tpu.concatenate %249, %250, %251 in 1 : vector<256x4xf32>, vector<256x4xf32>, vector<256x4xf32> -> vector<256x12xf32>
    %253 = arith.truncf %252 : vector<256x12xf32> to vector<256x12xbf16>
    %cst_109 = arith.constant dense<0.000000e+00> : vector<256x128xf32>
    %254 = tpu.matmul %253, %248, %cst_109 {dimension_numbers = #tpu.dot_dimension_numbers<[1], [0], [0], [1], [0, 0, 1, 1], [], []>} : vector<256x12xbf16>, vector<12x128xbf16>, vector<256x128xf32> -> vector<256x128xf32>
    %255 = arith.addf %238, %254 : vector<256x128xf32>
    %256 = vector.broadcast %204 : vector<1x128xf32> to vector<256x128xf32>
    %257 = arith.addf %255, %256 : vector<256x128xf32>
    %cst_110 = arith.constant 0.000000e+00 : f32
    %258 = vector.broadcast %cst_110 : f32 to vector<256x128xf32>
    %259 = arith.maximumf %257, %258 : vector<256x128xf32>
    %260 = vector.shape_cast %259 : vector<256x128xf32> to vector<1x16x16x128xf32>
    %c0_111 = arith.constant 0 : index
    %c0_112 = arith.constant 0 : index
    %c0_113 = arith.constant 0 : index
    %c0_114 = arith.constant 0 : index
    %261 = vector.load %arg10[%c0_111, %c0_112, %c0_113, %c0_114] : memref<1x16x16x128xf32, #tpu.memory_space<vmem>>, vector<1x16x16x128xf32>
    tpu.vector_store %arg10[%c0_111, %c0_112, %c0_113, %c0_114], %260 {strides = array<i32>} : memref<1x16x16x128xf32, #tpu.memory_space<vmem>>, vector<1x16x16x128xf32>,
    return
  }
  func.func @transform_0(%arg0: i32) -> (i32, i32, i32, i32) {
    %c0_i32 = arith.constant 0 : i32
    %c0_i32_0 = arith.constant 0 : i32
    %c0_i32_1 = arith.constant 0 : i32
    %c0_i32_2 = arith.constant 0 : i32
    return %arg0, %c0_i32, %c0_i32_0, %c0_i32_1 : i32, i32, i32, i32
  }
  func.func @transform_1(%arg0: i32) -> (i32, i32) {
    %c0_i32 = arith.constant 0 : i32
    %c0_i32_0 = arith.constant 0 : i32
    %c0_i32_1 = arith.constant 0 : i32
    return %c0_i32, %c0_i32_0 : i32, i32
  }
  func.func @transform_2(%arg0: i32) -> (i32, i32) {
    %c0_i32 = arith.constant 0 : i32
    %c0_i32_0 = arith.constant 0 : i32
    %c0_i32_1 = arith.constant 0 : i32
    return %c0_i32, %c0_i32_0 : i32, i32
  }
  func.func @transform_3(%arg0: i32) -> (i32, i32, i32) {
    %c0_i32 = arith.constant 0 : i32
    %c0_i32_0 = arith.constant 0 : i32
    %c0_i32_1 = arith.constant 0 : i32
    %c0_i32_2 = arith.constant 0 : i32
    return %c0_i32, %c0_i32_0, %c0_i32_1 : i32, i32, i32
  }
  func.func @transform_4(%arg0: i32) -> (i32, i32) {
    %c0_i32 = arith.constant 0 : i32
    %c0_i32_0 = arith.constant 0 : i32
    %c0_i32_1 = arith.constant 0 : i32
    return %c0_i32, %c0_i32_0 : i32, i32
  }
  func.func @transform_5(%arg0: i32) -> (i32, i32, i32) {
    %c0_i32 = arith.constant 0 : i32
    %c0_i32_0 = arith.constant 0 : i32
    %c0_i32_1 = arith.constant 0 : i32
    %c0_i32_2 = arith.constant 0 : i32
    return %c0_i32, %c0_i32_0, %c0_i32_1 : i32, i32, i32
  }
  func.func @transform_6(%arg0: i32) -> (i32, i32) {
    %c0_i32 = arith.constant 0 : i32
    %c0_i32_0 = arith.constant 0 : i32
    %c0_i32_1 = arith.constant 0 : i32
    return %c0_i32, %c0_i32_0 : i32, i32
  }
  func.func @transform_7(%arg0: i32) -> (i32, i32, i32) {
    %c0_i32 = arith.constant 0 : i32
    %c0_i32_0 = arith.constant 0 : i32
    %c0_i32_1 = arith.constant 0 : i32
    %c0_i32_2 = arith.constant 0 : i32
    return %c0_i32, %c0_i32_0, %c0_i32_1 : i32, i32, i32
  }
  func.func @transform_8(%arg0: i32) -> (i32, i32) {
    %c0_i32 = arith.constant 0 : i32
    %c0_i32_0 = arith.constant 0 : i32
    %c0_i32_1 = arith.constant 0 : i32
    return %c0_i32, %c0_i32_0 : i32, i32
  }
  func.func @transform_9(%arg0: i32) -> (i32, i32, i32, i32) {
    %c0_i32 = arith.constant 0 : i32
    %c0_i32_0 = arith.constant 0 : i32
    %c0_i32_1 = arith.constant 0 : i32
    %c0_i32_2 = arith.constant 0 : i32
    return %arg0, %c0_i32, %c0_i32_0, %c0_i32_1 : i32, i32, i32, i32
  }
}

</mosaic_0001>

<bundles_post_ra>
// kernel: tpu_custom_call.1
= control target key start
LH: loop header
LB: loop body
LE: loop exit
PB: predicated region body
PF: predicated region fallthrough
CT: control target
= control target key end

     0   :  { %14 = vsyncpa [#allocation3], 0  ;;  %s13085_s0 = inlined_call_operand.vmem [shape: bf16[2,16,16,4], index: 0, kind: input, shape index: {}]   ;;  %s13086_s1 = inlined_call_operand.vmem [shape: bf16[4,4], index: 1, kind: input, shape index: {}]   ;;  %s13087_s2 = inlined_call_operand.vmem [shape: f32[1,4], index: 2, kind: input, shape index: {}]   ;;  %s13088_s3 = inlined_call_operand.vmem [shape: bf16[3,12,256], index: 3, kind: input, shape index: {}]   ;;  %s13089_s4 = inlined_call_operand.vmem [shape: f32[1,256], index: 4, kind: input, shape index: {}]   ;;  %s13090_s5 = inlined_call_operand.vmem [shape: bf16[3,384,4], index: 5, kind: input, shape index: {}]   ;;  %s13091_s6 = inlined_call_operand.vmem [shape: f32[1,4], index: 6, kind: input, shape index: {}]   ;;  %s13092_s7 = inlined_call_operand.vmem [shape: bf16[3,12,128], index: 7, kind: input, shape index: {}]   ;;  %s13093_s8 = inlined_call_operand.vmem [shape: f32[1,128], index: 8, kind: input, shape index: {}]   ;;  %s13094_s9 = inlined_call_operand.hbm [shape: f32[2,16,16,128], index: 9, kind: output, shape index: {}]  }
   0x1   :  { %16 = vsyncpa [#allocation3 + $0x1], 0  ;;  %s9223_s30 = smov 0   ;;  %s9225_s10 = smov 0  }
   0x2   :  { %s9227_s11 = smov 0   ;;  %s9229_s12 = smov 0  }
   0x3 LB: > { %s9244_s13 = sadd.s32 4294967295, %s9163_s12   ;;  %s6690_s14 = sadd.s32 4294967294, %s9163_s12   ;;  %s9163_s12 = sphi %s9229_s12, %s13334_s12   ;;  %s9159_s11 = sphi %s9227_s11, %s13333_s11   ;;  %s9155_s10 = sphi %s9225_s10, %s13332_s10   ;;  %s9151_s30 = sphi %s9223_s30, %s13331_s30  }
   0x4   : > { %s9248_s15 = sadd.s32 1, %s9163_s12   ;;  %s223_s16 = sadd.s32 1, %s9159_s11 }
   0x5   : > { %s220_s17 = ssub.s32 %s9163_s12, %s9248_s15  ;;  %p233_p0 = scmp.ne.s32.totalorder %s9159_s11, %s9155_s10 }
   0x6   : > { %p221_p1 = scmp.eq.s32.totalorder %s220_s17, 0  ;;  %p234_p2 = scmp.eq.s32.totalorder %s9244_s13, 1 }
   0x7   : > { %p239_p3 = scmp.ne.s32.totalorder %s9155_s10, %s9151_s30  ;;  %p240_p4 = scmp.eq.s32.totalorder %s6690_s14, 1 }
   0x8   : > { %s9259_s18 = scalar_select %p221_p1, %s9159_s11, %s223_s16  }
   0x9   : > { %p9261_p5 = por %p234_p2, %p233_p0  ;;  %p9265_p6 = por %p240_p4, %p239_p3 }
   0xa   : > { %p6693_p7 = scmp.ge.s32.totalorder %s9163_s12, 1  ;;  %p290_p8 = scmp.lt.s32.totalorder %s9163_s12, 3 }
   0xc   : > { %p291_p9 = pnand %p6693_p7, %p290_p8 }
   0xe   : > { %294 = sbr.rel (%p291_p9) target bundleno = 2073 (0x819), region = 56 }
  0x15   : > { %p326_p10 = scmp.lt.s32.totalorder %s9244_s13, 1  ;;  %v731_v0 = vlaneseq  ;;  %v396_v1 = vld [vmem:[%s13086_s1] sm:$0x3]  ;;  %vm533_vm0 = vcmask 1041408   ;;  %vm1352_vm1 = vcmask 1045504   ;;  %s9165_s17 = smov 4  }
  0x16   : > { %8602 = vmatprep.subr.msk.bf16.mxu1 %vm533_vm0, %v396_v1  ;;  %v535_v2 = vsel %vm533_vm0, %v396_v1, 0  ;;  %8601 = vmatprep.subr.msk.bf16.mxu0 %vm533_vm0, %v396_v1  ;;  %v8979_v4 = vld [vmem:[%s13088_s3 + $0x14] ss:$8 sps:$4 sm:$0x3f]   ;;  %s9166_s21 = smov 8   ;;  %vm484_vm4 = vcmask 31744  }
  0x17   : > { %s327_s23 = scalar_select %p326_p10, %s9244_s13, 1  ;;  %v9276_v3 = vshrl.u32 %v731_v0, 7  ;;  %8152 = vmatpush3.bf16.msra.mxu1 %v535_v2  ;;  %7584 = vmatpush3.bf16.msra.mxu0 %v535_v2  ;;  %v8981_v16 = vld [vmem:[%s13088_s3 + $0x10] ss:$8 sps:$4 sm:$0x3f]   ;;  %vm1210_vm7 = vcmask 64512  }
  0x18   : > { %6734 = vmatprep.subr.msk.bf16.mxu1 %vm1352_vm1, %v8979_v4  ;;  %v9333_v30 = vsel %vm1352_vm1, %v8981_v16, 0  ;;  %vm1303_vm8 = vcmask 97280   ;;  %vm9170_vm13 = vmmov 1   ;;  %s323_s27 = sand.u32 1, %s9155_s10   ;;  %s7298_s22 = sshll.u32 %s9244_s13, 12 }
  0x19   : > { %13140 = vst [vmem:[#allocation5_spill] sm:$0xff] %v9276_v3  ;;  %s7297_s26 = sshll.u32 %s327_s23, 7  ;;  %v9289_v6 = vadd.s32 8, %v9276_v3  ;;  %vm861_vm2 = vcmp.lt.s32.totalorder %v9276_v3, 7  ;;  %vm768_vm5 = vcmp.lt.s32.totalorder %v9276_v3, 1  ;;  %vm734_vm6 = vcmp.ge.s32.totalorder %v9276_v3, 1 }
  0x1a   : > { %s9285_s29 = scalar_lea.vmem %s13085_s0, %s7297_s26  ;;  %vm2463_vm9 = vcmp.lt.s32.totalorder %v9276_v3, 6  ;;  %vm2594_vm11 = vcmp.lt.s32.totalorder %v9276_v3, 4  ;;  %vm11527_vm14 = vmpackc.low %vm9170_vm13, %vm734_vm6  ;;  %s13043_s13 = scalar_lea.sflag [#allocation3], %s323_s27 }
  0x1b   : > { %v332_v5 = vld [vmem:[%s9285_s29] sm:$0xff]   ;;  %13141 = vst [vmem:[#allocation6_spill] sm:$0xff] %v9289_v6  ;;  %v334_v7 = vld [vmem:[%s9285_s29 + $0x8] sm:$0xff]   ;;  %v336_v8 = vld [vmem:[%s9285_s29 + $0x10] sm:$0xff]   ;;  %vm737_vm3 = vcmp.lt.s32.totalorder %v9289_v6, 15  ;;  %vm2497_vm10 = vcmp.lt.s32.totalorder %v9289_v6, 14 }
  0x1c   : > { %v9293_v9 = vunpack.c.l.bf16 %v332_v5  ;;  %v9295_v10 = vunpack.c.h.bf16 %v332_v5  ;;  %v9297_v11 = vunpack.c.l.bf16 %v334_v7  ;;  %v9299_v12 = vunpack.c.h.bf16 %v334_v7  ;;  %v338_v13 = vld [vmem:[%s9285_s29 + $0x18] sm:$0xff]   ;;  %v340_v29 = vld [vmem:[%s9285_s29 + $0x20] sm:$0xff]   ;;  %v342_v35 = vld [vmem:[%s9285_s29 + $0x28] sm:$0xff]   ;;  %s9171_s28 = smov [#allocation2]  }
  0x1d   : > { %v9302_v14 = vunpack.c.l.bf16 %v336_v8  ;;  %v9304_v15 = vunpack.c.h.bf16 %v336_v8  ;;  %v9313_v19 = vunpack.c.l.bf16 %v338_v13  ;;  %v9323_v25 = vunpack.c.h.bf16 %v338_v13  ;;  %v344_v40 = vld [vmem:[%s9285_s29 + $0x30] sm:$0xff]   ;;  %v346_v53 = vld [vmem:[%s9285_s29 + $0x38] sm:$0xff]   ;;  %v348_v0 = vld [vmem:[%s9285_s29 + $0x40] sm:$0xff]   ;;  %s9105_s14 = sshll.u32 %s9171_s28, 4  ;;  %s9106_s14 = int_to_ptr.vmem [resolvable:$false] %s9105_s14 }
  0x1e   : > { %v8652_v17 = vpack.i.bf16 %v9295_v10, %v9293_v9  ;;  %v831_v18 = vrot.slane %v9293_v9, 1  ;;  %v846_v20 = vrot.slane %v9295_v10, 1  ;;  %v8662_v21 = vpack.i.bf16 %v9299_v12, %v9297_v11  ;;  %7601 = vmatprep.mubr.msk.bf16.mxu1 %vm484_vm4, %v348_v0  ;;  %vm11619_vm15 = vmpackc.low %vm737_vm3, %vm9170_vm13 }
  0x1f   : > { %v832_v22 = vrot.slane %v9297_v11, 1  ;;  %v847_v23 = vrot.slane %v9299_v12, 1  ;;  %v833_v24 = vrot.slane %v9302_v14, 1  ;;  %v848_v28 = vrot.slane %v9304_v15, 1 }
  0x20   : > { %8653 = vrot.lane.b32.xlu0 %v8652_v17, %s9165_s17  ;;  %v862_v26 = vsel %vm861_vm2, %v831_v18, %v846_v20  ;;  %v877_v27 = vsel %vm861_vm2, %v846_v20, %v831_v18  ;;  %8663 = vrot.lane.b32.xlu1 %v8662_v21, %s9165_s17  ;;  %v834_v34 = vrot.slane %v9313_v19, 1  ;;  %v849_v43 = vrot.slane %v9323_v25, 1 }
  0x21   : > { %v895_v31 = vsel %vm737_vm3, %v877_v27, 0.0  ;;  %v863_v32 = vsel %vm861_vm2, %v832_v22, %v847_v23  ;;  %v878_v33 = vsel %vm861_vm2, %v847_v23, %v832_v22  ;;  %v864_v38 = vsel %vm861_vm2, %v833_v24, %v848_v28 }
  0x22   : > { %v8657_v36 = vpack.i.bf16 %v895_v31, %v862_v26  ;;  %v897_v37 = vsel %vm737_vm3, %v878_v33, 0.0  ;;  %v879_v39 = vsel %vm861_vm2, %v848_v28, %v833_v24  ;;  %v9353_v44 = vunpack.c.l.bf16 %v340_v29  ;;  %v350_v24 = vld [vmem:[%s9285_s29 + $0x48] sm:$0xff]   ;;  %v352_v31 = vld [vmem:[%s9285_s29 + $0x50] sm:$0xff]  }
  0x23   : > { %v8667_v41 = vpack.i.bf16 %v897_v37, %v863_v32  ;;  %v899_v42 = vsel %vm737_vm3, %v879_v39, 0.0  ;;  %v8672_v45 = vpack.i.bf16 %v9304_v15, %v9302_v14  ;;  %v9358_v46 = vunpack.c.h.bf16 %v340_v29  ;;  %7602 = vmatmul.mubr.msk.bf16.vlgmr.msra.gmra.mrb[0].mxu1 %vm484_vm4, %v350_v24 }
  0x24   : > { %8658 = vrot.lane.b32.xlu0 %v8657_v36, %s9166_s21  ;;  %v9360_v47 = vunpack.c.l.bf16 %v342_v35  ;;  %v9362_v48 = vunpack.c.h.bf16 %v342_v35  ;;  %v8677_v49 = vpack.i.bf16 %v899_v42, %v864_v38  ;;  %v880_v50 = vsel %vm861_vm2, %v849_v43, %v834_v34  ;;  %v354_v36 = vld [vmem:[%s9285_s29 + $0x58] sm:$0xff]   ;;  %1360 = vmatpush1.bf16.msra.mxu1 %v9333_v30 }
  0x25   : > { %8668 = vrot.lane.b32.xlu1 %v8667_v41, %s9166_s21  ;;  %v835_v51 = vrot.slane %v9353_v44, 1  ;;  %v9368_v52 = vunpack.c.l.bf16 %v344_v40  ;;  %v865_v54 = vsel %vm861_vm2, %v834_v34, %v849_v43  ;;  %v901_v55 = vsel %vm737_vm3, %v880_v50, 0.0  ;;  %7605 = vmatprep.mubr.msk.bf16.mxu1 %vm484_vm4, %v352_v31 }
  0x26   : > { %v850_v56 = vrot.slane %v9358_v46, 1  ;;  %v836_v57 = vrot.slane %v9360_v47, 1  ;;  %v851_v58 = vrot.slane %v9362_v48, 1  ;;  %v9378_v59 = vunpack.c.h.bf16 %v344_v40 }
  0x27   : > { %v753_v60 = vrot.slane %v9295_v10, 7  ;;  %v8682_v61 = vpack.i.bf16 %v9323_v25, %v9313_v19  ;;  %v9386_v63 = vunpack.c.l.bf16 %v346_v53  ;;  %v8687_v1 = vpack.i.bf16 %v901_v55, %v865_v54 }
  0x28   : > { %8673 = vrot.lane.b32.xlu0 %v8672_v45, %s9165_s17  ;;  %v881_v62 = vsel %vm861_vm2, %v850_v56, %v835_v51  ;;  %v866_v2 = vsel %vm861_vm2, %v835_v51, %v850_v56  ;;  %v837_v5 = vrot.slane %v9368_v52, 1  ;;  %v738_v7 = vrot.slane %v9293_v9, 7  ;;  %v356_v56 = vld [vmem:[%s9285_s29 + $0x60] sm:$0xff]  }
  0x29   : > { %8678 = vrot.lane.b32.xlu1 %v8677_v49, %s9166_s21  ;;  %v903_v4 = vsel %vm737_vm3, %v881_v62, 0.0  ;;  %v882_v8 = vsel %vm861_vm2, %v851_v58, %v836_v57  ;;  %v852_v13 = vrot.slane %v9378_v59, 1  ;;  %v9399_v16 = vunpack.c.h.bf16 %v346_v53  ;;  %v8988_v49 = vld [vmem:[%s13088_s3 + $0x4] ss:$8 sps:$4 sm:$0x3f]  }
  0x2a   : > { %v754_v17 = vrot.slane %v9299_v12, 7  ;;  %v838_v18 = vrot.slane %v9386_v63, 1  ;;  %v8692_v20 = vpack.i.bf16 %v9358_v46, %v9353_v44  ;;  %v8697_v21 = vpack.i.bf16 %v903_v4, %v866_v2  ;;  %v358_v2 = vld [vmem:[%s9285_s29 + $0x68] sm:$0xff]   ;;  %6753 = vmatprep.subr.msk.bf16.mxu1 %vm1352_vm1, %v8988_v49 }
  0x2b   : > { %v867_v22 = vsel %vm861_vm2, %v836_v57, %v851_v58  ;;  %v853_v23 = vrot.slane %v9399_v16, 1  ;;  %v905_v26 = vsel %vm737_vm3, %v882_v8, 0.0  ;;  %v883_v27 = vsel %vm861_vm2, %v852_v13, %v837_v5  ;;  %7606 = vmatmul.mubr.msk.bf16.gmra.mrb[4].mxu1 %vm484_vm4, %v354_v36 }
  0x2c   : > { %8683 = vrot.lane.b32.xlu0 %v8682_v61, %s9165_s17  ;;  %v9415_v28 = vunpack.c.l.bf16 %v348_v0  ;;  %v9417_v29 = vunpack.c.h.bf16 %v348_v0  ;;  %v739_v32 = vrot.slane %v9297_v11, 7  ;;  %v9423_v34 = vunpack.c.l.bf16 %v350_v24  ;;  %7609 = vmatprep.mubr.msk.bf16.mxu1 %vm484_vm4, %v356_v56 }
  0x2d   : > { %8688 = vrot.lane.b32.xlu1 %v8687_v1, %s9166_s21  ;;  %v884_v33 = vsel %vm861_vm2, %v853_v23, %v838_v18  ;;  %v9425_v35 = vunpack.c.h.bf16 %v350_v24  ;;  %v8702_v37 = vpack.i.bf16 %v9362_v48, %v9360_v47  ;;  %v8707_v38 = vpack.i.bf16 %v905_v26, %v867_v22 }
  0x2e   : > { %v907_v39 = vsel %vm737_vm3, %v883_v27, 0.0  ;;  %v9433_v40 = vunpack.c.l.bf16 %v352_v31  ;;  %v868_v41 = vsel %vm861_vm2, %v837_v5, %v852_v13  ;;  %v839_v42 = vrot.slane %v9415_v28, 1 }
  0x2f   : > { %v854_v43 = vrot.slane %v9417_v29, 1  ;;  %v9441_v45 = vunpack.c.h.bf16 %v352_v31  ;;  %v909_v50 = vsel %vm737_vm3, %v884_v33, 0.0  ;;  %v9448_v51 = vunpack.c.l.bf16 %v354_v36 }
  0x30   : > { %8693 = vrot.lane.b32.xlu0 %v8692_v20, %s9165_s17  ;;  %v8712_v53 = vpack.i.bf16 %v9378_v59, %v9368_v52  ;;  %v840_v54 = vrot.slane %v9423_v34, 1  ;;  %v855_v55 = vrot.slane %v9425_v35, 1  ;;  %v841_v57 = vrot.slane %v9433_v40, 1 }
  0x31   : > { %8698 = vrot.lane.b32.xlu1 %v8697_v21, %s9166_s21  ;;  %v856_v58 = vrot.slane %v9441_v45, 1  ;;  %v9459_v61 = vunpack.c.h.bf16 %v354_v36  ;;  %v8717_v62 = vpack.i.bf16 %v907_v39, %v868_v41  ;;  %v869_v1 = vsel %vm861_vm2, %v838_v18, %v853_v23 }
  0x32   : > { %v885_v4 = vsel %vm861_vm2, %v854_v43, %v839_v42  ;;  %v842_v5 = vrot.slane %v9448_v51, 1  ;;  %v8722_v8 = vpack.i.bf16 %v9399_v16, %v9386_v63  ;;  %v8727_v13 = vpack.i.bf16 %v909_v50, %v869_v1 }
  0x33   : > { %v857_v0 = vrot.slane %v9459_v61, 1  ;;  %v870_v18 = vsel %vm861_vm2, %v839_v42, %v854_v43  ;;  %v886_v30 = vsel %vm861_vm2, %v855_v55, %v840_v54  ;;  %v9480_v20 = vunpack.c.l.bf16 %v356_v56  ;;  %7610 = vmatmul.mubr.msk.bf16.gmra.mrb[8].mxu1 %vm484_vm4, %v358_v2 }
  0x34   : > { %8703 = vrot.lane.b32.xlu0 %v8702_v37, %s9165_s17  ;;  %v911_v21 = vsel %vm737_vm3, %v885_v4, 0.0  ;;  %v887_v22 = vsel %vm861_vm2, %v856_v58, %v841_v57  ;;  %v9487_v23 = vunpack.c.h.bf16 %v356_v56  ;;  %v9491_v26 = vunpack.c.l.bf16 %v358_v2  ;;  %v360_v37 = vld [vmem:[%s9285_s29 + $0x70] sm:$0xff]  }
  0x35   : > { %8708 = vrot.lane.b32.xlu1 %v8707_v38, %s9166_s21  ;;  %v888_v24 = vsel %vm861_vm2, %v857_v0, %v842_v5  ;;  %v9493_v27 = vunpack.c.h.bf16 %v358_v2  ;;  %v8732_v31 = vpack.i.bf16 %v9417_v29, %v9415_v28  ;;  %v913_v33 = vsel %vm737_vm3, %v886_v30, 0.0  ;;  %7613 = vmatprep.mubr.msk.bf16.mxu1 %vm484_vm4, %v360_v37 }
  0x36   : > { %v915_v38 = vsel %vm737_vm3, %v887_v22, 0.0  ;;  %v843_v39 = vrot.slane %v9480_v20, 1  ;;  %v9510_v41 = vsel %vm768_vm5, %v738_v7, %v753_v60  ;;  %v9518_v42 = vsel %vm768_vm5, %v753_v60, %v738_v7 }
  0x37   : > { %v8737_v43 = vpack.i.bf16 %v911_v21, %v870_v18  ;;  %v9523_v49 = vsel %vm737_vm3, %v888_v24, 0.0  ;;  %v858_v50 = vrot.slane %v9487_v23, 1  ;;  %v871_v9 = vsel %vm861_vm2, %v840_v54, %v855_v55 }
  0x38   : > { %8713 = vrot.lane.b32.xlu0 %v8712_v53, %s9165_s17  ;;  %v844_v10 = vrot.slane %v9491_v26, 1  ;;  %v859_v60 = vrot.slane %v9493_v27, 1  ;;  %v9538_v7 = vsel %vm768_vm5, %v739_v32, %v754_v17  ;;  %v872_v36 = vsel %vm861_vm2, %v841_v57, %v856_v58  ;;  %v362_v57 = vld [vmem:[%s9285_s29 + $0x78] sm:$0xff]  }
  0x39   : > { %8718 = vrot.lane.b32.xlu1 %v8717_v62, %s9166_s21  ;;  %v873_v53 = vsel %vm861_vm2, %v842_v5, %v857_v0  ;;  %v9550_v54 = vsel %vm768_vm5, %v754_v17, %v739_v32  ;;  %v8742_v55 = vpack.i.bf16 %v9425_v35, %v9423_v34  ;;  %v8752_v56 = vpack.i.bf16 %v9441_v45, %v9433_v40 }
  0x3a   : > { %v9558_v58 = vunpack.c.l.bf16 %v360_v37  ;;  %v8747_v11 = vpack.i.bf16 %v913_v33, %v871_v9  ;;  %v8762_v12 = vpack.i.bf16 %v9459_v61, %v9448_v51  ;;  %v9563_v62 = vunpack.c.h.bf16 %v360_v37 }
  0x3b   : > { %v8757_v17 = vpack.i.bf16 %v915_v38, %v872_v36  ;;  %v8767_v32 = vpack.i.bf16 %v9523_v49, %v873_v53  ;;  %v740_v1 = vrot.slane %v9302_v14, 7  ;;  %v889_v4 = vsel %vm861_vm2, %v858_v50, %v843_v39  ;;  %7614 = vmatmul.mubr.msk.bf16.gmra.mrb[12].mxu1 %vm484_vm4, %v362_v57 }
  0x3c   : > { %8723 = vrot.lane.b32.xlu0 %v8722_v8, %s9165_s17  ;;  %v890_v5 = vsel %vm861_vm2, %v859_v60, %v844_v10  ;;  %v9575_v0 = vunpack.c.l.bf16 %v362_v57  ;;  %v845_v8 = vrot.slane %v9558_v58, 1  ;;  %v755_v14 = vrot.slane %v9304_v15, 7 }
  0x3d   : > { %8728 = vrot.lane.b32.xlu1 %v8727_v13, %s9166_s21  ;;  %v9579_v13 = vunpack.c.h.bf16 %v362_v57  ;;  %v741_v18 = vrot.slane %v9313_v19, 7  ;;  %v860_v30 = vrot.slane %v9563_v62, 1  ;;  %v756_v21 = vrot.slane %v9323_v25, 7 }
  0x3e   : > { %v742_v22 = vrot.slane %v9353_v44, 7  ;;  %v757_v24 = vrot.slane %v9358_v46, 7  ;;  %v9596_v15 = vsel %vm768_vm5, %v755_v14, %v740_v1  ;;  %v743_v19 = vrot.slane %v9360_v47, 7 }
  0x3f   : > { %v758_v2 = vrot.slane %v9362_v48, 7  ;;  %v1265_v25 = vrot.slane %v9575_v0, 1  ;;  %v9603_v44 = vsel %vm768_vm5, %v741_v18, %v756_v21  ;;  %v9607_v46 = vsel %vm768_vm5, %v756_v21, %v741_v18 }
  0x40   : > { %8733 = vrot.lane.b32.xlu0 %v8732_v31, %s9165_s17  ;;  %v9592_v31 = vsel %vm768_vm5, %v740_v1, %v755_v14  ;;  %v9611_v33 = vsel %vm768_vm5, %v742_v22, %v757_v24  ;;  %v1266_v47 = vrot.slane %v9579_v13, 1  ;;  %v9617_v48 = vsel %vm768_vm5, %v757_v24, %v742_v22 }
  0x41   : > { %8738 = vrot.lane.b32.xlu1 %v8737_v43, %s9166_s21  ;;  %v9621_v37 = vsel %vm768_vm5, %v743_v19, %v758_v2  ;;  %v9625_v38 = vsel %vm768_vm5, %v758_v2, %v743_v19  ;;  %v919_v43 = vsel %vm737_vm3, %v889_v4, 0.0  ;;  %v921_v49 = vsel %vm737_vm3, %v890_v5, 0.0 }
  0x42   : > { %v744_v9 = vrot.slane %v9368_v52, 7  ;;  %v759_v36 = vrot.slane %v9378_v59, 7  ;;  %v874_v53 = vsel %vm861_vm2, %v843_v39, %v858_v50  ;;  %v891_v52 = vsel %vm861_vm2, %v860_v30, %v845_v8 }
  0x43   : > { %v1268_v59 = vsel %vm861_vm2, %v1266_v47, %v1265_v25  ;;  %v745_v39 = vrot.slane %v9386_v63, 7  ;;  %v760_v50 = vrot.slane %v9399_v16, 7  ;;  %v9167_v1 = vmov 0  }
  0x44   : > { %8743 = vrot.lane.b32.xlu0 %v8742_v55, %s9165_s17  ;;  %v8772_v55 = vpack.i.bf16 %v9487_v23, %v9480_v20  ;;  %1391 = vmatprep.mubr.bf16.mxu1 %v9167_v1  ;;  %v923_v57 = vsel %vm737_vm3, %v891_v52, 0.0  ;;  %v876_v4 = vsel %vm861_vm2, %v845_v8, %v860_v30  ;;  %v8792_v5 = vpack.i.bf16 %v9563_v62, %v9558_v58 }
  0x45   : > { %8748 = vrot.lane.b32.xlu1 %v8747_v11, %s9166_s21  ;;  %v9644_v11 = vsel %vm768_vm5, %v759_v36, %v744_v9  ;;  %v9664_v63 = vsel %vm768_vm5, %v745_v39, %v760_v50  ;;  %v9668_v16 = vsel %vm768_vm5, %v760_v50, %v745_v39  ;;  %v746_v14 = vrot.slane %v9415_v28, 7 }
  0x46   : > { %v761_v18 = vrot.slane %v9417_v29, 7  ;;  %v8797_v21 = vpack.i.bf16 %v923_v57, %v876_v4  ;;  %v1267_v22 = vsel %vm861_vm2, %v1265_v25, %v1266_v47  ;;  %v8802_v28 = vpack.i.bf16 %v9579_v13, %v9575_v0  ;;  %v8990_v57 = vld [vmem:[%s13088_s3] ss:$8 sps:$4 sm:$0x3f]  }
  0x47   : > { %v747_v30 = vrot.slane %v9423_v34, 7  ;;  %v762_v19 = vrot.slane %v9425_v35, 7  ;;  %v9168_v47 = vmov 0.0   ;;  %v763_v34 = vrot.slane %v9441_v45, 7 }
  0x48   : > { %8753 = vrot.lane.b32.xlu0 %v8752_v56, %s9165_s17  ;;  %v9640_v56 = vsel %vm768_vm5, %v744_v9, %v759_v36  ;;  %v9690_v24 = vsel %vm768_vm5, %v746_v14, %v761_v18  ;;  %v9694_v8 = vsel %vm768_vm5, %v761_v18, %v746_v14  ;;  %v749_v9 = vrot.slane %v9448_v51, 7 }
  0x49   : > { %8758 = vrot.lane.b32.xlu1 %v8757_v17, %s9166_s21  ;;  %v8777_v17 = vpack.i.bf16 %v919_v43, %v874_v53  ;;  %v9706_v2 = vsel %vm768_vm5, %v747_v30, %v762_v19  ;;  %v9710_v25 = vsel %vm768_vm5, %v762_v19, %v747_v30  ;;  %v748_v43 = vrot.slane %v9433_v40, 7 }
  0x4a   : > { %v764_v36 = vrot.slane %v9459_v61, 7  ;;  %v750_v45 = vrot.slane %v9480_v20, 7  ;;  %v803_v20 = vsel %vm734_vm6, %v9550_v54, 0.0  ;;  %vm2628_vm12 = vcmp.lt.s32.totalorder %v9289_v6, 12 }
  0x4b   : > { %v9718_v35 = vsel %vm768_vm5, %v748_v43, %v763_v34 }
  0x4c   : > { %8763 = vrot.lane.b32.xlu0 %v8762_v12, %s9165_s17  ;;  %v875_v12 = vsel %vm861_vm2, %v844_v10, %v859_v60  ;;  %v8782_v10 = vpack.i.bf16 %v9493_v27, %v9491_v26  ;;  %v9728_v53 = vsel %vm768_vm5, %v749_v9, %v764_v36  ;;  %v9732_v40 = vsel %vm768_vm5, %v764_v36, %v749_v9 }
  0x4d   : > { %8768 = vrot.lane.b32.xlu1 %v8767_v32, %s9166_s21  ;;  %v1270_v32 = vsel %vm737_vm3, %v1268_v59, 0.0  ;;  %v8787_v60 = vpack.i.bf16 %v921_v49, %v875_v12  ;;  %v9722_v49 = vsel %vm768_vm5, %v763_v34, %v748_v43  ;;  %v8991_v43 = vld [vmem:[%s13088_s3 + $0x24] ss:$8 sps:$4 sm:$0x3f]  }
  0x4e   : > { %v8807_v29 = vpack.i.bf16 %v1270_v32, %v1267_v22 }
  0x50   : > { %8773 = vrot.lane.b32.xlu0 %v8772_v55, %s9165_s17  ;;  %v765_v55 = vrot.slane %v9487_v23, 7  ;;  %v801_v23 = vsel %vm734_vm6, %v9518_v42, 0.0 }
  0x51   : > { %8778 = vrot.lane.b32.xlu1 %v8777_v17, %s9166_s21 }
  0x52   : > { %v9738_v52 = vsel %vm768_vm5, %v750_v45, %v765_v55  ;;  %v9742_v51 = vsel %vm768_vm5, %v765_v55, %v750_v45 }
  0x54   : > { %8783 = vrot.lane.b32.xlu0 %v8782_v10, %s9165_s17 }
  0x55   : > { %8788 = vrot.lane.b32.xlu1 %v8787_v60, %s9166_s21 }
  0x58   : > { %8793 = vrot.lane.b32.xlu0 %v8792_v5, %s9165_s17 }
  0x59   : > { %8798 = vrot.lane.b32.xlu1 %v8797_v21, %s9166_s21 }
  0x5c   : > { %8803 = vrot.lane.b32.xlu0 %v8802_v28, %s9165_s17 }
  0x5d   : > { %8808 = vrot.lane.b32.xlu1 %v8807_v29, %s9166_s21  ;;  %v1564_v29 = vsel %vm1352_vm1, %v8990_v57, 0 }
  0x60   : > { %957 = vrot.lane.b32.xlu0 %v9168_v47, %s9165_s17 }
  0x61   : > { %8813 = vrot.lane.b32.xlu1 %v9168_v47, %s9166_s21  ;;  %v805_v47 = vsel %vm734_vm6, %v9596_v15, 0.0 }
  0x92   : > { %v8654_v61 = vpop.permute.xlu0 %8653  ;;  %v8664_v59 = vpop.permute.xlu1 %8663 }
  0x93   : > { %v8666_v39 = vunpack.i.h.bf16 %v8664_v59  ;;  %v8665_v50 = vunpack.i.l.bf16 %v8664_v59  ;;  %v8656_v17 = vunpack.i.h.bf16 %v8654_v61  ;;  %v8655_v12 = vunpack.i.l.bf16 %v8654_v61 }
  0x95   : > { %v1182_v4 = vsel %vm484_vm4, %v803_v20, %v8665_v50  ;;  %v1183_v5 = vsel %vm484_vm4, %v9538_v7, %v8666_v39  ;;  %v1180_v54 = vsel %vm484_vm4, %v801_v23, %v8655_v12  ;;  %v1181_v18 = vsel %vm484_vm4, %v9510_v41, %v8656_v17 }
  0x96   : > { %v8659_v32 = vpop.permute.xlu0 %8658  ;;  %v807_v17 = vsel %vm734_vm6, %v9607_v46, 0.0  ;;  %v809_v46 = vsel %vm734_vm6, %v9617_v48, 0.0 }
  0x97   : > { %v8661_v10 = vunpack.i.h.bf16 %v8659_v32  ;;  %v8660_v60 = vunpack.i.l.bf16 %v8659_v32  ;;  %v8669_v14 = vpop.permute.xlu1 %8668 }
  0x98   : > { %v8671_v42 = vunpack.i.h.bf16 %v8669_v14  ;;  %v8670_v21 = vunpack.i.l.bf16 %v8669_v14 }
  0x99   : > { %v1213_v22 = vsel %vm1210_vm7, %v1180_v54, %v8660_v60  ;;  %v1214_v28 = vsel %vm1210_vm7, %v1181_v18, %v8661_v10 }
  0x9a   : > { %v9763_v30 = vpack.c.bf16 %v1214_v28, %v1213_v22  ;;  %v1215_v19 = vsel %vm1210_vm7, %v1182_v4, %v8670_v21  ;;  %v1216_v7 = vsel %vm1210_vm7, %v1183_v5, %v8671_v42  ;;  %v8674_v41 = vpop.permute.xlu0 %8673 }
  0x9b   : > { %v9773_v34 = vpack.c.bf16 %v1216_v7, %v1215_v19  ;;  %v8676_v9 = vunpack.i.h.bf16 %v8674_v41  ;;  %v8675_v36 = vunpack.i.l.bf16 %v8674_v41  ;;  %v8679_v45 = vpop.permute.xlu1 %8678 }
  0x9c   : > { %6735 = vmatmul.mubr.msk.bf16.vlgmr.msra.gmra.mrb[16].mxu1 %vm1303_vm8, %v9763_v30  ;;  %v8681_v55 = vunpack.i.h.bf16 %v8679_v45  ;;  %v8680_v61 = vunpack.i.l.bf16 %v8679_v45 }
  0x9d   : > { %1570 = vmatpush1.bf16.msra.mxu1 %v1564_v29  ;;  %1401 = vmatprep.mubr.bf16.mxu1 %v9167_v1  ;;  %v1185_v15 = vsel %vm484_vm4, %v9592_v31, %v8676_v9  ;;  %v1184_v59 = vsel %vm484_vm4, %v805_v47, %v8675_v36  ;;  %v811_v47 = vsel %vm734_vm6, %v9625_v38, 0.0  ;;  %v813_v38 = vsel %vm734_vm6, %v9644_v11, 0.0 }
  0x9e   : > { %v1217_v39 = vsel %vm1210_vm7, %v1184_v59, %v8680_v61  ;;  %v1218_v50 = vsel %vm1210_vm7, %v1185_v15, %v8681_v55  ;;  %v8684_v12 = vpop.permute.xlu0 %8683  ;;  %6774 = vmatprep.subr.msk.bf16.mxu1 %vm1352_vm1, %v8991_v43 }
  0x9f   : > { %v9787_v20 = vpack.c.bf16 %v1218_v50, %v1217_v39  ;;  %v8686_v23 = vunpack.i.h.bf16 %v8684_v12  ;;  %v8685_v57 = vunpack.i.l.bf16 %v8684_v12  ;;  %v8689_v32 = vpop.permute.xlu1 %8688 }
  0xa0   : > { %v8691_v10 = vunpack.i.h.bf16 %v8689_v32  ;;  %v8690_v31 = vunpack.i.l.bf16 %v8689_v32 }
  0xa1   : > { %v1187_v60 = vsel %vm484_vm4, %v9603_v44, %v8686_v23  ;;  %v1186_v4 = vsel %vm484_vm4, %v807_v17, %v8685_v57 }
  0xa2   : > { %v1219_v5 = vsel %vm1210_vm7, %v1186_v4, %v8690_v31  ;;  %v1220_v14 = vsel %vm1210_vm7, %v1187_v60, %v8691_v10  ;;  %v8694_v54 = vpop.permute.xlu0 %8693  ;;  %v815_v4 = vsel %vm734_vm6, %v9668_v16, 0.0  ;;  %v817_v16 = vsel %vm734_vm6, %v9694_v8, 0.0 }
  0xa3   : > { %v9797_v18 = vpack.c.bf16 %v1220_v14, %v1219_v5  ;;  %v8696_v42 = vunpack.i.h.bf16 %v8694_v54  ;;  %v8695_v21 = vunpack.i.l.bf16 %v8694_v54  ;;  %v8699_v22 = vpop.permute.xlu1 %8698 }
  0xa4   : > { %6736 = vmatmul.mubr.msk.bf16.gmra.mrb[20].mxu1 %vm1303_vm8, %v9773_v34  ;;  %v8701_v44 = vunpack.i.h.bf16 %v8699_v22  ;;  %v8700_v28 = vunpack.i.l.bf16 %v8699_v22 }
  0xa5   : > { %1411 = vmatprep.mubr.bf16.mxu1 %v9167_v1  ;;  %v1189_v29 = vsel %vm484_vm4, %v9611_v33, %v8696_v42  ;;  %v1188_v19 = vsel %vm484_vm4, %v809_v46, %v8695_v21 }
  0xa6   : > { %v1221_v48 = vsel %vm1210_vm7, %v1188_v19, %v8700_v28  ;;  %v1222_v7 = vsel %vm1210_vm7, %v1189_v29, %v8701_v44  ;;  %v8704_v41 = vpop.permute.xlu0 %8703 }
  0xa7   : > { %v9810_v43 = vpack.c.bf16 %v1222_v7, %v1221_v48  ;;  %v8706_v9 = vunpack.i.h.bf16 %v8704_v41  ;;  %v8705_v36 = vunpack.i.l.bf16 %v8704_v41  ;;  %v8709_v45 = vpop.permute.xlu1 %8708 }
  0xa8   : > { %v8711_v55 = vunpack.i.h.bf16 %v8709_v45  ;;  %v8710_v61 = vunpack.i.l.bf16 %v8709_v45 }
  0xa9   : > { %v1191_v33 = vsel %vm484_vm4, %v9621_v37, %v8706_v9  ;;  %v1190_v15 = vsel %vm484_vm4, %v811_v47, %v8705_v36 }
  0xaa   : > { %v1223_v59 = vsel %vm1210_vm7, %v1190_v15, %v8710_v61  ;;  %v1224_v39 = vsel %vm1210_vm7, %v1191_v33, %v8711_v55  ;;  %v8714_v50 = vpop.permute.xlu0 %8713  ;;  %v819_v61 = vsel %vm734_vm6, %v9710_v25, 0.0  ;;  %v821_v25 = vsel %vm734_vm6, %v9722_v49, 0.0 }
  0xab   : > { %v9820_v17 = vpack.c.bf16 %v1224_v39, %v1223_v59  ;;  %v8716_v12 = vunpack.i.h.bf16 %v8714_v50  ;;  %v8715_v23 = vunpack.i.l.bf16 %v8714_v50  ;;  %v8719_v57 = vpop.permute.xlu1 %8718 }
  0xac   : > { %6737 = vmatmul.mubr.msk.bf16.gmra.mrb[24].mxu1 %vm1303_vm8, %v9787_v20  ;;  %v8721_v37 = vunpack.i.h.bf16 %v8719_v57  ;;  %v8720_v32 = vunpack.i.l.bf16 %v8719_v57 }
  0xad   : > { %1421 = vmatprep.mubr.bf16.mxu1 %v9167_v1  ;;  %v1193_v10 = vsel %vm484_vm4, %v9640_v56, %v8716_v12  ;;  %v1192_v31 = vsel %vm484_vm4, %v813_v38, %v8715_v23 }
  0xae   : > { %v1225_v11 = vsel %vm1210_vm7, %v1192_v31, %v8720_v32  ;;  %v1226_v60 = vsel %vm1210_vm7, %v1193_v10, %v8721_v37  ;;  %v8724_v5 = vpop.permute.xlu0 %8723 }
  0xaf   : > { %v9833_v14 = vpack.c.bf16 %v1226_v60, %v1225_v11  ;;  %v8726_v46 = vunpack.i.h.bf16 %v8724_v5  ;;  %v8725_v54 = vunpack.i.l.bf16 %v8724_v5  ;;  %v8729_v42 = vpop.permute.xlu1 %8728 }
  0xb0   : > { %v8731_v21 = vunpack.i.h.bf16 %v8729_v42  ;;  %v8730_v22 = vunpack.i.l.bf16 %v8729_v42  ;;  %v823_v42 = vsel %vm734_vm6, %v9732_v40, 0.0  ;;  %v825_v40 = vsel %vm734_vm6, %v9742_v51, 0.0 }
  0xb1   : > { %v1195_v56 = vsel %vm484_vm4, %v9664_v63, %v8726_v46  ;;  %v1194_v44 = vsel %vm484_vm4, %v815_v4, %v8725_v54 }
  0xb2   : > { %v1227_v28 = vsel %vm1210_vm7, %v1194_v44, %v8730_v22  ;;  %v1228_v29 = vsel %vm1210_vm7, %v1195_v56, %v8731_v21  ;;  %v8734_v19 = vpop.permute.xlu0 %8733 }
  0xb3   : > { %v9843_v48 = vpack.c.bf16 %v1228_v29, %v1227_v28  ;;  %v8736_v7 = vunpack.i.h.bf16 %v8734_v19  ;;  %v8735_v47 = vunpack.i.l.bf16 %v8734_v19  ;;  %v8739_v41 = vpop.permute.xlu1 %8738 }
  0xb4   : > { %6738 = vmatmul.mubr.msk.bf16.gmra.mrb[28].mxu1 %vm1303_vm8, %v9797_v18  ;;  %v8741_v63 = vunpack.i.h.bf16 %v8739_v41  ;;  %v8740_v9 = vunpack.i.l.bf16 %v8739_v41 }
  0xb5   : > { %1431 = vmatprep.mubr.bf16.mxu1 %v9167_v1  ;;  %v1197_v36 = vsel %vm484_vm4, %v9690_v24, %v8736_v7  ;;  %v1196_v45 = vsel %vm484_vm4, %v817_v16, %v8735_v47 }
  0xb6   : > { %v1229_v8 = vsel %vm1210_vm7, %v1196_v45, %v8740_v9  ;;  %v1230_v55 = vsel %vm1210_vm7, %v1197_v36, %v8741_v63  ;;  %v8744_v33 = vpop.permute.xlu0 %8743 }
  0xb7   : > { %v9856_v15 = vpack.c.bf16 %v1230_v55, %v1229_v8  ;;  %v8746_v59 = vunpack.i.h.bf16 %v8744_v33  ;;  %v8745_v39 = vunpack.i.l.bf16 %v8744_v33  ;;  %v8749_v38 = vpop.permute.xlu1 %8748 }
  0xb8   : > { %v8751_v50 = vunpack.i.h.bf16 %v8749_v38  ;;  %v8750_v12 = vunpack.i.l.bf16 %v8749_v38 }
  0xb9   : > { %v1199_v24 = vsel %vm484_vm4, %v9706_v2, %v8746_v59  ;;  %v1198_v23 = vsel %vm484_vm4, %v819_v61, %v8745_v39  ;;  %v766_v39 = vrot.slane %v9493_v27, 7  ;;  %v752_v27 = vrot.slane %v9558_v58, 7 }
  0xba   : > { %v1231_v57 = vsel %vm1210_vm7, %v1198_v23, %v8750_v12  ;;  %v1232_v37 = vsel %vm1210_vm7, %v1199_v24, %v8751_v50  ;;  %v8754_v32 = vpop.permute.xlu0 %8753 }
  0xbb   : > { %v9866_v10 = vpack.c.bf16 %v1232_v37, %v1231_v57  ;;  %v8756_v31 = vunpack.i.h.bf16 %v8754_v32  ;;  %v8755_v11 = vunpack.i.l.bf16 %v8754_v32  ;;  %v8759_v60 = vpop.permute.xlu1 %8758  ;;  %v767_v37 = vrot.slane %v9563_v62, 7 }
  0xbc   : > { %6739 = vmatmul.mubr.msk.bf16.gmra.mrb[32].mxu1 %vm1303_vm8, %v9810_v43  ;;  %v8761_v2 = vunpack.i.h.bf16 %v8759_v60  ;;  %v8760_v4 = vunpack.i.l.bf16 %v8759_v60 }
  0xbd   : > { %1441 = vmatprep.mubr.bf16.mxu1 %v9167_v1  ;;  %v1201_v5 = vsel %vm484_vm4, %v9718_v35, %v8756_v31  ;;  %v1200_v46 = vsel %vm484_vm4, %v821_v25, %v8755_v11 }
  0xbe   : > { %v1233_v49 = vsel %vm1210_vm7, %v1200_v46, %v8760_v4  ;;  %v1234_v54 = vsel %vm1210_vm7, %v1201_v5, %v8761_v2  ;;  %v8764_v21 = vpop.permute.xlu0 %8763  ;;  %v798_v2 = vsel %vm768_vm5, %v767_v37, %v752_v27 }
  0xbf   : > { %v9879_v22 = vpack.c.bf16 %v1234_v54, %v1233_v49  ;;  %v8766_v56 = vunpack.i.h.bf16 %v8764_v21  ;;  %v8765_v44 = vunpack.i.l.bf16 %v8764_v21  ;;  %v8769_v28 = vpop.permute.xlu1 %8768  ;;  %v783_v49 = vsel %vm768_vm5, %v752_v27, %v767_v37 }
  0xc0   : > { %v8771_v29 = vunpack.i.h.bf16 %v8769_v28  ;;  %v8770_v16 = vunpack.i.l.bf16 %v8769_v28  ;;  %v829_v54 = vsel %vm734_vm6, %v798_v2, 0.0  ;;  %v1259_v21 = vrot.slane %v9575_v0, 7 }
  0xc1   : > { %v1203_v35 = vsel %vm484_vm4, %v9728_v53, %v8766_v56  ;;  %v1202_v19 = vsel %vm484_vm4, %v823_v42, %v8765_v44  ;;  %v1260_v56 = vrot.slane %v9579_v13, 7 }
  0xc2   : > { %v1235_v7 = vsel %vm1210_vm7, %v1202_v19, %v8770_v16  ;;  %v1236_v47 = vsel %vm1210_vm7, %v1203_v35, %v8771_v29  ;;  %v8774_v41 = vpop.permute.xlu0 %8773 }
  0xc3   : > { %v9889_v63 = vpack.c.bf16 %v1236_v47, %v1235_v7  ;;  %v8776_v9 = vunpack.i.h.bf16 %v8774_v41  ;;  %v8775_v36 = vunpack.i.l.bf16 %v8774_v41  ;;  %v8779_v45 = vpop.permute.xlu1 %8778  ;;  %v1262_v19 = vsel %vm768_vm5, %v1260_v56, %v1259_v21 }
  0xc4   : > { %6740 = vmatmul.mubr.msk.bf16.gmra.mrb[36].mxu1 %vm1303_vm8, %v9820_v17  ;;  %v8781_v53 = vunpack.i.h.bf16 %v8779_v45  ;;  %v8780_v8 = vunpack.i.l.bf16 %v8779_v45  ;;  %v1261_v41 = vsel %vm768_vm5, %v1259_v21, %v1260_v56 }
  0xc5   : > { %1451 = vmatprep.mubr.bf16.mxu1 %v9167_v1  ;;  %v1205_v55 = vsel %vm484_vm4, %v9738_v52, %v8776_v9  ;;  %v1204_v61 = vsel %vm484_vm4, %v825_v40, %v8775_v36  ;;  %v751_v52 = vrot.slane %v9491_v26, 7  ;;  %v1263_v9 = vsel %vm734_vm6, %v1262_v19, 0.0  ;;  %v9097_v19 = vld [vmem:[%s9285_s29 + $0x20] sm:$0xff]  }
  0xc6   : > { %v1237_v51 = vsel %vm1210_vm7, %v1204_v61, %v8780_v8  ;;  %v1238_v33 = vsel %vm1210_vm7, %v1205_v55, %v8781_v53  ;;  %v8784_v38 = vpop.permute.xlu0 %8783 }
  0xc7   : > { %v9899_v59 = vpack.c.bf16 %v1238_v33, %v1237_v51  ;;  %v797_v50 = vsel %vm768_vm5, %v766_v39, %v751_v52  ;;  %v8786_v12 = vunpack.i.h.bf16 %v8784_v38  ;;  %v8785_v24 = vunpack.i.l.bf16 %v8784_v38  ;;  %v8789_v23 = vpop.permute.xlu1 %8788 }
  0xc8   : > { %v782_v57 = vsel %vm768_vm5, %v751_v52, %v766_v39  ;;  %v827_v26 = vsel %vm734_vm6, %v797_v50, 0.0  ;;  %v8791_v25 = vunpack.i.h.bf16 %v8789_v23  ;;  %v8790_v32 = vunpack.i.l.bf16 %v8789_v23 }
  0xc9   : > { %v1207_v31 = vsel %vm484_vm4, %v782_v57, %v8786_v12  ;;  %v1206_v11 = vsel %vm484_vm4, %v827_v26, %v8785_v24 }
  0xca   : > { %v8794_v60 = vpop.permute.xlu0 %8793  ;;  %v1239_v4 = vsel %vm1210_vm7, %v1206_v11, %v8790_v32  ;;  %v1240_v5 = vsel %vm1210_vm7, %v1207_v31, %v8791_v25 }
  0xcb   : > { %v8796_v58 = vunpack.i.h.bf16 %v8794_v60  ;;  %v8795_v62 = vunpack.i.l.bf16 %v8794_v60  ;;  %v8799_v46 = vpop.permute.xlu1 %8798  ;;  %v9942_v42 = vpack.c.bf16 %v1240_v5, %v1239_v4  ;;  %v8993_v60 = vld [vmem:[%s13088_s3 + $0x20] ss:$8 sps:$4 sm:$0x3f]  }
  0xcc   : > { %6741 = vmatmul.mubr.msk.bf16.gmra.mrb[40].mxu1 %vm1303_vm8, %v9833_v14  ;;  %v8801_v44 = vunpack.i.h.bf16 %v8799_v46  ;;  %v8800_v28 = vunpack.i.l.bf16 %v8799_v46 }
  0xcd   : > { %1461 = vmatprep.mubr.bf16.mxu1 %v9167_v1  ;;  %v1209_v29 = vsel %vm484_vm4, %v783_v49, %v8796_v58  ;;  %v1208_v16 = vsel %vm484_vm4, %v829_v54, %v8795_v62  ;;  %v1774_v58 = vsel %vm1352_vm1, %v8993_v60, 0 }
  0xce   : > { %v8804_v35 = vpop.permute.xlu0 %8803  ;;  %v1241_v7 = vsel %vm1210_vm7, %v1208_v16, %v8800_v28  ;;  %v1242_v47 = vsel %vm1210_vm7, %v1209_v29, %v8801_v44 }
  0xcf   : > { %v8806_v0 = vunpack.i.h.bf16 %v8804_v35  ;;  %v8805_v13 = vunpack.i.l.bf16 %v8804_v35  ;;  %v8809_v40 = vpop.permute.xlu1 %8808  ;;  %v9959_v36 = vpack.c.bf16 %v1242_v47, %v1241_v7  ;;  %v9001_v35 = vld [vmem:[%s13090_s5 + $0x58] sm:$0xff]  }
  0xd0   : > { %v8811_v53 = vunpack.i.h.bf16 %v8809_v40  ;;  %v8810_v8 = vunpack.i.l.bf16 %v8809_v40 }
  0xd1   : > { %v1291_v61 = vsel %vm484_vm4, %v1261_v41, %v8806_v0  ;;  %v1290_v51 = vsel %vm484_vm4, %v1263_v9, %v8805_v13  ;;  %v9098_v0 = vld [vmem:[%s9285_s29 + $0x28] sm:$0xff]  }
  0xd2   : > { %v1292_v39 = vsel %vm1210_vm7, %v1290_v51, %v8810_v8  ;;  %v1293_v38 = vsel %vm1210_vm7, %v1291_v61, %v8811_v53  ;;  %v958_v12 = vpop.permute.xlu0 %957 }
  0xd3   : > { %v8814_v50 = vpop.permute.xlu1 %8813  ;;  %v9976_v24 = vpack.c.bf16 %v1293_v38, %v1292_v39  ;;  %v1178_v37 = vsel %vm484_vm4, 0.0, %v958_v12 }
  0xd4   : > { %6742 = vmatmul.mubr.msk.bf16.gmra.mrb[44].mxu1 %vm1303_vm8, %v9843_v48  ;;  %v8816_v57 = vunpack.i.h.bf16 %v8814_v50  ;;  %v8815_v26 = vunpack.i.l.bf16 %v8814_v50 }
  0xd5   : > { %1471 = vmatprep.mubr.bf16.mxu1 %v9167_v1 }
  0xd6   : > { %v1211_v31 = vsel %vm1210_vm7, %v1178_v37, %v8815_v26  ;;  %v1212_v11 = vsel %vm1210_vm7, %v1178_v37, %v8816_v57 }
  0xd7   : > { %v9995_v2 = vpack.c.bf16 %v1212_v11, %v1211_v31 }
  0xd9   : > { %13150 = vst [vmem:[#allocation15_spill] sm:$0xff] %v9995_v2 }
  0xdc   : > { %6743 = vmatmul.mubr.msk.bf16.gmra.mrb[48].mxu1 %vm1303_vm8, %v9856_v15 }
  0xdd   : > { %1481 = vmatprep.mubr.bf16.mxu1 %v9167_v1 }
  0xe4   : > { %6744 = vmatmul.mubr.msk.bf16.gmra.mrb[52].mxu1 %vm1303_vm8, %v9866_v10 }
  0xe5   : > { %1491 = vmatprep.mubr.bf16.mxu1 %v9167_v1 }
  0xec   : > { %6745 = vmatmul.mubr.msk.bf16.gmra.mrb[56].mxu1 %vm1303_vm8, %v9879_v22 }
  0xed   : > { %1501 = vmatprep.mubr.bf16.mxu1 %v9167_v1 }
  0xf4   : > { %6746 = vmatmul.mubr.msk.bf16.gmra.mrb[60].mxu1 %vm1303_vm8, %v9889_v63 }
  0xf5   : > { %1511 = vmatprep.mubr.bf16.mxu1 %v9167_v1 }
  0xf6   : > { %v9961_v45 = vpop.f32.mrb[0].mxu1 }
  0xf7   : > { %13142 = vst [vmem:[#allocation7_spill] sm:$0xff] %v9961_v45  ;;  %v9963_v55 = vpop.f32.mrb[1].mxu1 }
  0xf8   : > { %13143 = vst [vmem:[#allocation8_spill] sm:$0xff] %v9963_v55  ;;  %v9967_v33 = vpop.f32.mrb[2].mxu1 }
  0xf9   : > { %13144 = vst [vmem:[#allocation9_spill] sm:$0xff] %v9967_v33  ;;  %v9969_v52 = vpop.f32.mrb[3].mxu1 }
  0xfa   : > { %13145 = vst [vmem:[#allocation10_spill] sm:$0xff] %v9969_v52 }
  0xfc   : > { %6747 = vmatmul.mubr.msk.bf16.gmra.mrb[64].mxu1 %vm1303_vm8, %v9899_v59 }
  0xfd   : > { %1521 = vmatprep.mubr.bf16.mxu1 %v9167_v1 }
  0xfe   : > { %v9978_v23 = vpop.f32.mrb[4].mxu1 }
  0xff   : > { %13146 = vst [vmem:[#allocation11_spill] sm:$0xff] %v9978_v23  ;;  %v9980_v27 = vpop.f32.mrb[5].mxu1 }
 0x100   : > { %13147 = vst [vmem:[#allocation12_spill] sm:$0xff] %v9980_v27  ;;  %v9983_v25 = vpop.f32.mrb[6].mxu1 }
 0x101   : > { %13148 = vst [vmem:[#allocation13_spill] sm:$0xff] %v9983_v25  ;;  %v9985_v32 = vpop.f32.mrb[7].mxu1 }
 0x102   : > { %13149 = vst [vmem:[#allocation14_spill] sm:$0xff] %v9985_v32 }
 0x104   : > { %6748 = vmatmul.mubr.msk.bf16.gmra.mrb[68].mxu1 %vm1303_vm8, %v9942_v42 }
 0x105   : > { %1531 = vmatprep.mubr.bf16.mxu1 %v9167_v1 }
 0x106   : > { %v9997_v4 = vpop.f32.mrb[8].mxu1 }
 0x107   : > { %13151 = vst [vmem:[#allocation16_spill] sm:$0xff] %v9997_v4  ;;  %v9999_v5 = vpop.f32.mrb[9].mxu1 }
 0x108   : > { %13152 = vst [vmem:[#allocation17_spill] sm:$0xff] %v9999_v5  ;;  %v10002_v62 = vpop.f32.mrb[10].mxu1 }
 0x109   : > { %13153 = vst [vmem:[#allocation18_spill] sm:$0xff] %v10002_v62  ;;  %v10004_v46 = vpop.f32.mrb[11].mxu1 }
 0x10a   : > { %13154 = vst [vmem:[#allocation19_spill] sm:$0xff] %v10004_v46 }
 0x10c   : > { %6749 = vmatmul.mubr.msk.bf16.gmra.mrb[72].mxu1 %vm1303_vm8, %v9959_v36 }
 0x10d   : > { %1541 = vmatprep.mubr.bf16.mxu1 %v9167_v1 }
 0x10e   : > { %v10009_v49 = vpop.f32.mrb[12].mxu1 }
 0x10f   : > { %13155 = vst [vmem:[#allocation20_spill] sm:$0xff] %v10009_v49  ;;  %v10011_v54 = vpop.f32.mrb[13].mxu1 }
 0x110   : > { %13156 = vst [vmem:[#allocation21_spill] sm:$0xff] %v10011_v54  ;;  %v10013_v21 = vpop.f32.mrb[14].mxu1 }
 0x111   : > { %13157 = vst [vmem:[#allocation22_spill] sm:$0xff] %v10013_v21  ;;  %v10015_v56 = vpop.f32.mrb[15].mxu1 }
 0x112   : > { %13158 = vst [vmem:[#allocation23_spill] sm:$0xff] %v10015_v56 }
 0x114   : > { %6750 = vmatmul.mubr.msk.bf16.gmra.mrb[76].mxu1 %vm1303_vm8, %v9976_v24 }
 0x115   : > { %1601 = vmatprep.mubr.bf16.mxu1 %v9167_v1 }
 0x11c   : > { %6754 = vmatmul.mubr.msk.bf16.vlgmr.msra.gmra.mrb[16].mxu1 %vm1303_vm8, %v9995_v2 }
 0x11d   : > { %1780 = vmatpush1.bf16.msra.mxu1 %v1774_v58  ;;  %1611 = vmatprep.mubr.bf16.mxu1 %v9167_v1 }
 0x124   : > { %6755 = vmatmul.mubr.msk.bf16.gmra.mrb[20].mxu1 %vm1303_vm8, %v9763_v30  ;;  %v9093_v30 = vld [vmem:[%s9285_s29] sm:$0xff]  }
 0x125   : > { %1621 = vmatprep.mubr.bf16.mxu1 %v9167_v1  ;;  %7585 = vmatprep.mubr.msk.bf16.mxu0 %vm484_vm4, %v9093_v30 }
 0x12c   : > { %6756 = vmatmul.mubr.msk.bf16.gmra.mrb[24].mxu1 %vm1303_vm8, %v9773_v34 }
 0x12d   : > { %1631 = vmatprep.mubr.bf16.mxu1 %v9167_v1 }
 0x134   : > { %6757 = vmatmul.mubr.msk.bf16.gmra.mrb[28].mxu1 %vm1303_vm8, %v9787_v20 }
 0x135   : > { %1641 = vmatprep.mubr.bf16.mxu1 %v9167_v1 }
 0x13c   : > { %6758 = vmatmul.mubr.msk.bf16.gmra.mrb[32].mxu1 %vm1303_vm8, %v9797_v18 }
 0x13d   : > { %1651 = vmatprep.mubr.bf16.mxu1 %v9167_v1 }
 0x144   : > { %6759 = vmatmul.mubr.msk.bf16.gmra.mrb[36].mxu1 %vm1303_vm8, %v9810_v43 }
 0x145   : > { %1661 = vmatprep.mubr.bf16.mxu1 %v9167_v1 }
 0x14c   : > { %6760 = vmatmul.mubr.msk.bf16.gmra.mrb[40].mxu1 %vm1303_vm8, %v9820_v17 }
 0x14d   : > { %1671 = vmatprep.mubr.bf16.mxu1 %v9167_v1 }
 0x154   : > { %6761 = vmatmul.mubr.msk.bf16.gmra.mrb[44].mxu1 %vm1303_vm8, %v9833_v14 }
 0x155   : > { %1681 = vmatprep.mubr.bf16.mxu1 %v9167_v1 }
 0x15c   : > { %6762 = vmatmul.mubr.msk.bf16.gmra.mrb[48].mxu1 %vm1303_vm8, %v9843_v48 }
 0x15d   : > { %1691 = vmatprep.mubr.bf16.mxu1 %v9167_v1 }
 0x164   : > { %6763 = vmatmul.mubr.msk.bf16.gmra.mrb[52].mxu1 %vm1303_vm8, %v9856_v15 }
 0x165   : > { %1701 = vmatprep.mubr.bf16.mxu1 %v9167_v1 }
 0x16c   : > { %6764 = vmatmul.mubr.msk.bf16.gmra.mrb[56].mxu1 %vm1303_vm8, %v9866_v10 }
 0x16d   : > { %1711 = vmatprep.mubr.bf16.mxu1 %v9167_v1 }
 0x174   : > { %6765 = vmatmul.mubr.msk.bf16.gmra.mrb[60].mxu1 %vm1303_vm8, %v9879_v22 }
 0x175   : > { %1721 = vmatprep.mubr.bf16.mxu1 %v9167_v1 }
 0x17c   : > { %6766 = vmatmul.mubr.msk.bf16.gmra.mrb[64].mxu1 %vm1303_vm8, %v9889_v63 }
 0x17d   : > { %1731 = vmatprep.mubr.bf16.mxu1 %v9167_v1 }
 0x184   : > { %6767 = vmatmul.mubr.msk.bf16.gmra.mrb[68].mxu1 %vm1303_vm8, %v9899_v59 }
 0x185   : > { %1741 = vmatprep.mubr.bf16.mxu1 %v9167_v1 }
 0x18c   : > { %6768 = vmatmul.mubr.msk.bf16.gmra.mrb[72].mxu1 %vm1303_vm8, %v9942_v42 }
 0x18d   : > { %1751 = vmatprep.mubr.bf16.mxu1 %v9167_v1 }
 0x194   : > { %6769 = vmatmul.mubr.msk.bf16.gmra.mrb[76].mxu1 %vm1303_vm8, %v9959_v36 }
 0x195   : > { %1811 = vmatprep.mubr.bf16.mxu1 %v9167_v1 }
 0x19c   : > { %6775 = vmatmul.mubr.msk.bf16.vlgmr.msra.gmra.mrb[16].mxu1 %vm1303_vm8, %v9773_v34  ;;  %v9094_v34 = vld [vmem:[%s9285_s29 + $0x8] sm:$0xff]  }
 0x19d   : > { %1821 = vmatprep.mubr.bf16.mxu1 %v9167_v1  ;;  %7586 = vmatmul.mubr.msk.bf16.vlgmr.msra.gmra.mrb[0].mxu0 %vm484_vm4, %v9094_v34 }
 0x1a4   : > { %6776 = vmatmul.mubr.msk.bf16.gmra.mrb[20].mxu1 %vm1303_vm8, %v9787_v20  ;;  %v8996_v20 = vld [vmem:[%s13090_s5 + $0x40] sm:$0xff]  }
 0x1a5   : > { %1831 = vmatprep.mubr.bf16.mxu1 %v9167_v1  ;;  %7617 = vmatprep.subr.bf16.mxu0 %v8996_v20 }
 0x1a6   : > { %7618 = vmatpush3.bf16.msra.mxu0 %v8996_v20 }
 0x1ac   : > { %6777 = vmatmul.mubr.msk.bf16.gmra.mrb[24].mxu1 %vm1303_vm8, %v9797_v18  ;;  %v2043_v18 = vsub.s32 1, %v9276_v3 }
 0x1ad   : > { %1841 = vmatprep.mubr.bf16.mxu1 %v9167_v1 }
 0x1b4   : > { %6778 = vmatmul.mubr.msk.bf16.gmra.mrb[28].mxu1 %vm1303_vm8, %v9810_v43  ;;  %v8997_v43 = vld [vmem:[%s13090_s5 + $0x48] sm:$0xff]  }
 0x1b5   : > { %1851 = vmatprep.mubr.bf16.mxu1 %v9167_v1  ;;  %7619 = vmatprep.subr.bf16.mxu0 %v8997_v43 }
 0x1b6   : > { %7620 = vmatpush3.bf16.msra.mxu0 %v8997_v43 }
 0x1bc   : > { %6779 = vmatmul.mubr.msk.bf16.gmra.mrb[32].mxu1 %vm1303_vm8, %v9820_v17  ;;  %v9095_v17 = vld [vmem:[%s9285_s29 + $0x10] sm:$0xff]  }
 0x1bd   : > { %1861 = vmatprep.mubr.bf16.mxu1 %v9167_v1  ;;  %7589 = vmatprep.mubr.msk.bf16.mxu0 %vm484_vm4, %v9095_v17 }
 0x1c4   : > { %6780 = vmatmul.mubr.msk.bf16.gmra.mrb[36].mxu1 %vm1303_vm8, %v9833_v14  ;;  %v9096_v14 = vld [vmem:[%s9285_s29 + $0x18] sm:$0xff]  }
 0x1c5   : > { %1871 = vmatprep.mubr.bf16.mxu1 %v9167_v1  ;;  %7590 = vmatmul.mubr.msk.bf16.gmra.mrb[4].mxu0 %vm484_vm4, %v9096_v14 }
 0x1c6   : > { %7593 = vmatprep.mubr.msk.bf16.mxu0 %vm484_vm4, %v9097_v19 }
 0x1cc   : > { %6781 = vmatmul.mubr.msk.bf16.gmra.mrb[40].mxu1 %vm1303_vm8, %v9843_v48  ;;  %v2039_v48 = vsub.s32 0, %v9276_v3 }
 0x1cd   : > { %1881 = vmatprep.mubr.bf16.mxu1 %v9167_v1  ;;  %7594 = vmatmul.mubr.msk.bf16.gmra.mrb[8].mxu0 %vm484_vm4, %v9098_v0 }
 0x1d4   : > { %6782 = vmatmul.mubr.msk.bf16.gmra.mrb[44].mxu1 %vm1303_vm8, %v9856_v15 }
 0x1d5   : > { %1891 = vmatprep.mubr.bf16.mxu1 %v9167_v1 }
 0x1dc   : > { %6783 = vmatmul.mubr.msk.bf16.gmra.mrb[48].mxu1 %vm1303_vm8, %v9866_v10 }
 0x1dd   : > { %1901 = vmatprep.mubr.bf16.mxu1 %v9167_v1 }
 0x1e4   : > { %6784 = vmatmul.mubr.msk.bf16.gmra.mrb[52].mxu1 %vm1303_vm8, %v9879_v22 }
 0x1e5   : > { %1911 = vmatprep.mubr.bf16.mxu1 %v9167_v1 }
 0x1ec   : > { %6785 = vmatmul.mubr.msk.bf16.gmra.mrb[56].mxu1 %vm1303_vm8, %v9889_v63  ;;  %v9000_v63 = vld [vmem:[%s13090_s5 + $0x50] sm:$0xff]  }
 0x1ed   : > { %1921 = vmatprep.mubr.bf16.mxu1 %v9167_v1  ;;  %7621 = vmatprep.subr.bf16.mxu0 %v9000_v63 }
 0x1ee   : > { %7622 = vmatpush3.bf16.msra.mxu0 %v9000_v63 }
 0x1ef   : > { %7623 = vmatprep.subr.bf16.mxu0 %v9001_v35 }
 0x1f2   : > { %7624 = vmatpush3.bf16.msra.mxu0 %v9001_v35 }
 0x1f4   : > { %6786 = vmatmul.mubr.msk.bf16.gmra.mrb[60].mxu1 %vm1303_vm8, %v9899_v59 }
 0x1f5   : > { %1931 = vmatprep.mubr.bf16.mxu1 %v9167_v1 }
 0x1fc   : > { %6787 = vmatmul.mubr.msk.bf16.gmra.mrb[64].mxu1 %vm1303_vm8, %v9942_v42 }
 0x1fd   : > { %1941 = vmatprep.mubr.bf16.mxu1 %v9167_v1 }
 0x204   : > { %6788 = vmatmul.mubr.msk.bf16.gmra.mrb[68].mxu1 %vm1303_vm8, %v9959_v36 }
 0x205   : > { %1951 = vmatprep.mubr.bf16.mxu1 %v9167_v1 }
 0x20c   : > { %6789 = vmatmul.mubr.msk.bf16.gmra.mrb[72].mxu1 %vm1303_vm8, %v9976_v24 }
 0x20d   : > { %1961 = vmatprep.mubr.bf16.mxu1 %v9167_v1  ;;  %v730_v1 = vld [vmem:[%s13089_s4] sm:$0x3] }
 0x20e   : > { %v10126_v15 = vrot.slane %v730_v1, %v2043_v18  ;;  %v10133_v59 = vrot.slane %v730_v1, %v2039_v48 }
 0x214   : > { %6790 = vmatmul.mubr.msk.bf16.gmra.mrb[76].mxu1 %vm1303_vm8, %v9995_v2 }
 0x26f   : > { %v1813_v10 = vpop.f32.mrb[16].mxu1 }
 0x270   : > { %v1815_v22 = vpop.f32.mrb[17].mxu1  ;;  %v2047_v7 = vadd.f32 %v10133_v59, %v1813_v10 }
 0x271   : > { %v2048_v42 = vadd.f32 %v10126_v15, %v1815_v22  ;;  %v1817_v44 = vpop.f32.mrb[18].mxu1 }
 0x272   : > { %v1819_v28 = vpop.f32.mrb[19].mxu1  ;;  %v2049_v9 = vadd.f32 %v10133_v59, %v1817_v44  ;;  %v2111_v8 = vmax.f32 %v2047_v7, 0.0 }
 0x273   : > { %v2112_v29 = vmax.f32 %v2048_v42, 0.0  ;;  %v2050_v16 = vadd.f32 %v10126_v15, %v1819_v28 }
 0x274   : > { %v2113_v60 = vmax.f32 %v2049_v9, 0.0 }
 0x275   : > { %v2114_v47 = vmax.f32 %v2050_v16, 0.0  ;;  %v2303_v13 = vrot.slane %v2112_v29, 1 }
 0x277   : > { %v2319_v40 = vrot.slane %v2114_v47, 1  ;;  %v1823_v41 = vpop.f32.mrb[20].mxu1 }
 0x278   : > { %v2051_v36 = vadd.f32 %v10133_v59, %v1823_v41  ;;  %v1825_v53 = vpop.f32.mrb[21].mxu1 }
 0x279   : > { %v2335_v61 = vsel %vm861_vm2, %v2303_v13, %v2319_v40  ;;  %v2351_v51 = vsel %vm861_vm2, %v2319_v40, %v2303_v13  ;;  %v2052_v39 = vadd.f32 %v10126_v15, %v1825_v53  ;;  %v1827_v38 = vpop.f32.mrb[22].mxu1 }
 0x27a   : > { %v2368_v50 = vsel %vm737_vm3, %v2351_v51, 0.0  ;;  %v2399_v12 = vmax.f32 %v2112_v29, %v2335_v61  ;;  %v2115_v24 = vmax.f32 %v2051_v36, 0.0  ;;  %v2053_v57 = vadd.f32 %v10133_v59, %v1827_v38  ;;  %v1829_v26 = vpop.f32.mrb[23].mxu1 }
 0x27b   : > { %v2400_v37 = vmax.f32 %v2114_v47, %v2368_v50  ;;  %v2116_v31 = vmax.f32 %v2052_v39, 0.0  ;;  %v2054_v11 = vadd.f32 %v10126_v15, %v1829_v26 }
 0x27c   : > { %v2431_v58 = vrot.slane %v2399_v12, 2  ;;  %v10157_v30 = vmax.f32 %v2111_v8, %v2115_v24  ;;  %v2117_v34 = vmax.f32 %v2053_v57, 0.0 }
 0x27d   : > { %v2447_v20 = vrot.slane %v2400_v37, 2  ;;  %v2118_v18 = vmax.f32 %v2054_v11, 0.0  ;;  %v2304_v14 = vrot.slane %v2116_v31, 1 }
 0x27e   : > { %v10161_v1 = vmax.f32 %v2113_v60, %v2117_v34 }
 0x27f   : > { %v2464_v43 = vsel %vm2463_vm9, %v2431_v58, %v2447_v20  ;;  %v2480_v17 = vsel %vm2463_vm9, %v2447_v20, %v2431_v58  ;;  %v2320_v48 = vrot.slane %v2118_v18, 1  ;;  %v1833_v10 = vpop.f32.mrb[24].mxu1 }
 0x280   : > { %v2499_v22 = vsel %vm2497_vm10, %v2480_v17, 0.0  ;;  %v2530_v63 = vmax.f32 %v2399_v12, %v2464_v43  ;;  %v2055_v42 = vadd.f32 %v10133_v59, %v1833_v10  ;;  %v1835_v44 = vpop.f32.mrb[25].mxu1 }
 0x281   : > { %v2531_v28 = vmax.f32 %v2400_v37, %v2499_v22  ;;  %v2336_v29 = vsel %vm861_vm2, %v2304_v14, %v2320_v48  ;;  %v2352_v16 = vsel %vm861_vm2, %v2320_v48, %v2304_v14  ;;  %v2056_v35 = vadd.f32 %v10126_v15, %v1835_v44  ;;  %v1837_v19 = vpop.f32.mrb[26].mxu1 }
 0x282   : > { %v2562_v7 = vrot.slane %v2530_v63, 4  ;;  %v2370_v47 = vsel %vm737_vm3, %v2352_v16, 0.0  ;;  %v2401_v0 = vmax.f32 %v2116_v31, %v2336_v29  ;;  %v2119_v13 = vmax.f32 %v2055_v42, 0.0  ;;  %v1839_v40 = vpop.f32.mrb[27].mxu1 }
 0x283   : > { %v2578_v41 = vrot.slane %v2531_v28, 4  ;;  %v2402_v9 = vmax.f32 %v2118_v18, %v2370_v47  ;;  %v2120_v36 = vmax.f32 %v2056_v35, 0.0  ;;  %v10179_v53 = vadd.f32 %v10133_v59, %v1837_v19 }
 0x284   : > { %v2432_v8 = vrot.slane %v2401_v0, 2  ;;  %v10181_v61 = vmax.f32 %v2115_v24, %v2119_v13  ;;  %v2058_v51 = vadd.f32 %v10126_v15, %v1839_v40  ;;  %v9004_v24 = vld [vmem:[%s13090_s5 + $0x60] sm:$0xff]  }
 0x285   : > { %v2595_v39 = vsel %vm2594_vm11, %v2562_v7, %v2578_v41  ;;  %v2611_v38 = vsel %vm2594_vm11, %v2578_v41, %v2562_v7  ;;  %v2448_v50 = vrot.slane %v2402_v9, 2  ;;  %v2121_v26 = vmax.f32 %v10179_v53, 0.0  ;;  %7625 = vmatprep.subr.bf16.mxu0 %v9004_v24 }
 0x286   : > { %v2630_v12 = vsel %vm2628_vm12, %v2611_v38, 0.0  ;;  %v2661_v57 = vmax.f32 %v2530_v63, %v2595_v39  ;;  %v2122_v37 = vmax.f32 %v2058_v51, 0.0  ;;  %v2305_v58 = vrot.slane %v2120_v36, 1  ;;  %7626 = vmatpush3.bf16.msra.mxu0 %v9004_v24 }
 0x287   : > { %v10194_v31 = vmax.f32 %v2531_v28, %v2630_v12  ;;  %v2465_v11 = vsel %vm2463_vm9, %v2432_v8, %v2448_v50  ;;  %v2481_v60 = vsel %vm2463_vm9, %v2448_v50, %v2432_v8  ;;  %v1843_v20 = vpop.f32.mrb[28].mxu1  ;;  %v10202_v17 = vmax.f32 %v2117_v34, %v2121_v26 }
 0x288   : > { %v2501_v18 = vsel %vm2497_vm10, %v2481_v60, 0.0  ;;  %v2532_v43 = vmax.f32 %v2401_v0, %v2465_v11  ;;  %v2321_v14 = vrot.slane %v2122_v37, 1  ;;  %v1845_v48 = vpop.f32.mrb[29].mxu1  ;;  %v2059_v63 = vadd.f32 %v10133_v59, %v1843_v20 }
 0x289   : > { %13159 = vst [vmem:[#allocation24_spill] sm:$0xff] %v10194_v31  ;;  %v10205_v10 = vmax.f32 %v2661_v57, %v10194_v31  ;;  %v2533_v22 = vmax.f32 %v2402_v9, %v2501_v18  ;;  %v1847_v42 = vpop.f32.mrb[30].mxu1  ;;  %v2060_v34 = vadd.f32 %v10126_v15, %v1845_v48  ;;  %v9005_v57 = vld [vmem:[%s13090_s5 + $0x68] sm:$0xff]  }
 0x28a   : > { %v2563_v44 = vrot.slane %v2532_v43, 4  ;;  %v2337_v28 = vsel %vm861_vm2, %v2305_v58, %v2321_v14  ;;  %v2353_v29 = vsel %vm861_vm2, %v2321_v14, %v2305_v58  ;;  %v1849_v16 = vpop.f32.mrb[31].mxu1  ;;  %v2123_v47 = vmax.f32 %v2059_v63, 0.0  ;;  %7627 = vmatprep.subr.bf16.mxu0 %v9005_v57  ;;  %v9099_v14 = vld [vmem:[%s9285_s29 + $0x30] sm:$0xff]  }
 0x28b   : > { %v2579_v35 = vrot.slane %v2533_v22, 4  ;;  %v2372_v19 = vsel %vm737_vm3, %v2353_v29, 0.0  ;;  %v2403_v7 = vmax.f32 %v2120_v36, %v2337_v28  ;;  %v2124_v40 = vmax.f32 %v2060_v34, 0.0  ;;  %7628 = vmatpush3.bf16.msra.mxu0 %v9005_v57  ;;  %7597 = vmatprep.mubr.msk.bf16.mxu0 %vm484_vm4, %v9099_v14 }
 0x28c   : > { %v2404_v0 = vmax.f32 %v2122_v37, %v2372_v19  ;;  %v10216_v41 = vadd.f32 %v10133_v59, %v1847_v42  ;;  %v2062_v9 = vadd.f32 %v10126_v15, %v1849_v16  ;;  %v10223_v39 = vmax.f32 %v2119_v13, %v2123_v47  ;;  %v9008_v19 = vld [vmem:[%s13090_s5 + $0x70] sm:$0xff]  }
 0x28d   : > { %v2596_v53 = vsel %vm2594_vm11, %v2563_v44, %v2579_v35  ;;  %v2612_v8 = vsel %vm2594_vm11, %v2579_v35, %v2563_v44  ;;  %v2433_v51 = vrot.slane %v2403_v7, 2  ;;  %v2306_v42 = vrot.slane %v2124_v40, 1  ;;  %7629 = vmatprep.subr.bf16.mxu0 %v9008_v19 }
 0x28e   : > { %v2632_v38 = vsel %vm2628_vm12, %v2612_v8, 0.0  ;;  %v2663_v50 = vmax.f32 %v2532_v43, %v2596_v53  ;;  %v2449_v12 = vrot.slane %v2404_v0, 2  ;;  %v2125_v13 = vmax.f32 %v10216_v41, 0.0 }
 0x28f   : > { %v10231_v37 = vmax.f32 %v2533_v22, %v2632_v38  ;;  %v2126_v11 = vmax.f32 %v2062_v9, 0.0  ;;  %v1853_v60 = vpop.f32.mrb[32].mxu1  ;;  %7630 = vmatpush3.bf16.msra.mxu0 %v9008_v19 }
 0x290   : > { %v2466_v58 = vsel %vm2463_vm9, %v2433_v51, %v2449_v12  ;;  %v2482_v20 = vsel %vm2463_vm9, %v2449_v12, %v2433_v51  ;;  %v10241_v18 = vadd.f32 %v10133_v59, %v1853_v60  ;;  %v1855_v43 = vpop.f32.mrb[33].mxu1  ;;  %v10249_v29 = vmax.f32 %v2121_v26, %v2125_v13 }
 0x291   : > { %13160 = vst [vmem:[#allocation25_spill] sm:$0xff] %v10231_v37  ;;  %v10245_v48 = vmax.f32 %v2663_v50, %v10231_v37  ;;  %v2503_v22 = vsel %vm2497_vm10, %v2482_v20, 0.0  ;;  %v2534_v63 = vmax.f32 %v2403_v7, %v2466_v58  ;;  %v1857_v44 = vpop.f32.mrb[34].mxu1  ;;  %v2322_v34 = vrot.slane %v2126_v11, 1 }
 0x292   : > { %v2535_v28 = vmax.f32 %v2404_v0, %v2503_v22  ;;  %v2127_v16 = vmax.f32 %v10241_v18, 0.0  ;;  %v1859_v35 = vpop.f32.mrb[35].mxu1  ;;  %v2064_v9 = vadd.f32 %v10126_v15, %v1855_v43  ;;  %v10258_v7 = vadd.f32 %v10133_v59, %v1857_v44  ;;  %v9009_v43 = vld [vmem:[%s13090_s5 + $0x78] sm:$0xff]  }
 0x293   : > { %v2564_v41 = vrot.slane %v2534_v63, 4  ;;  %v2066_v0 = vadd.f32 %v10126_v15, %v1859_v35  ;;  %v2338_v8 = vsel %vm861_vm2, %v2306_v42, %v2322_v34  ;;  %v2354_v51 = vsel %vm861_vm2, %v2322_v34, %v2306_v42  ;;  %7631 = vmatprep.subr.bf16.mxu0 %v9009_v43 }
 0x294   : > { %v2580_v26 = vrot.slane %v2535_v28, 4  ;;  %v2374_v38 = vsel %vm737_vm3, %v2354_v51, 0.0  ;;  %v2405_v50 = vmax.f32 %v2124_v40, %v2338_v8  ;;  %v10269_v12 = vmax.f32 %v2123_v47, %v2127_v16  ;;  %7632 = vmatpush3.bf16.msra.mxu0 %v9009_v43 }
 0x295   : > { %v2128_v57 = vmax.f32 %v2064_v9, 0.0  ;;  %v2406_v20 = vmax.f32 %v2126_v11, %v2374_v38  ;;  %v2129_v18 = vmax.f32 %v10258_v7, 0.0  ;;  %v13169_v27 = vmax.f32 %v10161_v1, %v10249_v29 }
 0x296   : > { %v2597_v60 = vsel %vm2594_vm11, %v2564_v41, %v2580_v26  ;;  %v2613_v58 = vsel %vm2594_vm11, %v2580_v26, %v2564_v41  ;;  %v2434_v14 = vrot.slane %v2405_v50, 2  ;;  %v2130_v41 = vmax.f32 %v2066_v0, 0.0  ;;  %v9100_v26 = vld [vmem:[%s9285_s29 + $0x38] sm:$0xff]   ;;  %s6694_s29 = sshll.u32 %s323_s27, 8 }
 0x297   : > { %v2634_v47 = vsel %vm2628_vm12, %v2613_v58, 0.0  ;;  %v2665_v40 = vmax.f32 %v2534_v63, %v2597_v60  ;;  %v1863_v42 = vpop.f32.mrb[36].mxu1  ;;  %v2450_v11 = vrot.slane %v2406_v20, 2  ;;  %v10286_v35 = vmax.f32 %v2125_v13, %v2129_v18  ;;  %7598 = vmatmul.mubr.msk.bf16.gmra.mrb[12].mxu0 %vm484_vm4, %v9100_v26  ;;  %s12970_s16 = scalar_lea.vmem [#allocation2], %s6694_s29  ;;  %s9107_s29 = scalar_lea.vmem %s9106_s14, 8192 }
 0x298   : > { %v10284_v34 = vmax.f32 %v2535_v28, %v2634_v47  ;;  %v1865_v19 = vpop.f32.mrb[37].mxu1  ;;  %v10289_v9 = vadd.f32 %v10133_v59, %v1863_v42  ;;  %v2307_v51 = vrot.slane %v2128_v57, 1  ;;  %v2323_v47 = vrot.slane %v2130_v41, 1  ;;  %s6628_s23 = sshll.u32 %s12970_s16, 4  ;;  %s13037_s23 = int_to_ptr.vmem [resolvable:$true] %s6628_s23 }
 0x299   : > { %v2068_v63 = vadd.f32 %v10126_v15, %v1865_v19  ;;  %v1867_v7 = vpop.f32.mrb[38].mxu1  ;;  %v2467_v28 = vsel %vm2463_vm9, %v2434_v14, %v2450_v11  ;;  %v2483_v13 = vsel %vm2463_vm9, %v2450_v11, %v2434_v14  ;;  %s9101_s26 = scalar_lea.vmem %s13037_s23, 4096  ;;  %p9108_p0 = scmp.lt.s32.totalorder %s13037_s23, %s9106_s14 }
 0x29a   : > { %13161 = vst [vmem:[#allocation26_spill] sm:$0xff] %v10284_v34  ;;  %v10294_v8 = vmax.f32 %v2665_v40, %v10284_v34  ;;  %v1869_v38 = vpop.f32.mrb[39].mxu1  ;;  %v2505_v0 = vsel %vm2497_vm10, %v2483_v13, 0.0  ;;  %v2536_v60 = vmax.f32 %v2405_v50, %v2467_v28  ;;  %v2131_v40 = vmax.f32 %v10289_v9, 0.0  ;;  %p9102_p11 = scmp.ne.s32.totalorder %s13037_s23, %s9101_s26  ;;  %p9109_p1 = scmp.lt.s32.totalorder %s9107_s29, %s9101_s26 }
 0x29b   : > { %v2537_v43 = vmax.f32 %v2406_v20, %v2505_v0  ;;  %v2132_v42 = vmax.f32 %v2068_v63, 0.0  ;;  %v10307_v19 = vadd.f32 %v10133_v59, %v1867_v7  ;;  %v2339_v11 = vsel %vm861_vm2, %v2307_v51, %v2323_v47 }
 0x29c   : > { %v2565_v14 = vrot.slane %v2536_v60, 4  ;;  %v2355_v50 = vsel %vm861_vm2, %v2323_v47, %v2307_v51  ;;  %v2070_v28 = vadd.f32 %v10126_v15, %v1869_v38  ;;  %v2407_v20 = vmax.f32 %v2128_v57, %v2339_v11  ;;  %p9103_p12 = pnand %p9102_p11, %p9261_p5  ;;  %p9110_p2 = por %p9109_p1, %p9108_p0 }
 0x29d   : > { %v2581_v13 = vrot.slane %v2537_v43, 4  ;;  %v2376_v26 = vsel %vm737_vm3, %v2355_v50, 0.0  ;;  %v10316_v0 = vmax.f32 %v2127_v16, %v2131_v40  ;;  %v2308_v63 = vrot.slane %v2132_v42, 1 }
 0x29e   : > { %v2408_v9 = vmax.f32 %v2130_v41, %v2376_v26  ;;  %v2133_v7 = vmax.f32 %v10307_v19, 0.0  ;;  %v2134_v44 = vmax.f32 %v2070_v28, 0.0  ;;  %v2435_v38 = vrot.slane %v2407_v20, 2  ;;  %p9104_p13 = pneg %p9103_p12 }
 0x29f   : > { %v1873_v36 = vpop.f32.mrb[40].mxu1  ;;  %v2598_v58 = vsel %vm2594_vm11, %v2565_v14, %v2581_v13  ;;  %v2614_v51 = vsel %vm2594_vm11, %v2581_v13, %v2565_v14 }
 0x2a0   : > { %v1875_v50 = vpop.f32.mrb[41].mxu1  ;;  %v2636_v16 = vsel %vm2628_vm12, %v2614_v51, 0.0  ;;  %v2667_v57 = vmax.f32 %v2536_v60, %v2598_v58  ;;  %v2451_v41 = vrot.slane %v2408_v9, 2  ;;  %v10327_v11 = vmax.f32 %v2129_v18, %v2133_v7  ;;  %p9111_p3 = pnand %p9110_p2, %p9104_p13 }
 0x2a1   : > { %v1877_v19 = vpop.f32.mrb[42].mxu1  ;;  %v10329_v28 = vmax.f32 %v2537_v43, %v2636_v16  ;;  %v2324_v26 = vrot.slane %v2134_v44, 1  ;;  %v2071_v22 = vadd.f32 %v10133_v59, %v1873_v36  ;;  %v2072_v14 = vadd.f32 %v10126_v15, %v1875_v50 }
 0x2a2   : > { %v1879_v13 = vpop.f32.mrb[43].mxu1  ;;  %v2468_v47 = vsel %vm2463_vm9, %v2435_v38, %v2451_v41  ;;  %v2484_v53 = vsel %vm2463_vm9, %v2451_v41, %v2435_v38  ;;  %v10340_v18 = vadd.f32 %v10133_v59, %v1877_v19  ;;  %v10355_v19 = vld [vmem:[%s13090_s5] sm:$0xff]  }
 0x2a3   : > { %13162 = vst [vmem:[#allocation27_spill] sm:$0xff] %v10329_v28  ;;  %v10344_v43 = vmax.f32 %v2667_v57, %v10329_v28  ;;  %v2507_v36 = vsel %vm2497_vm10, %v2484_v53, 0.0  ;;  %v2538_v51 = vmax.f32 %v2407_v20, %v2468_v47  ;;  %v2340_v16 = vsel %vm861_vm2, %v2308_v63, %v2324_v26  ;;  %13163 = vst [vmem:[#allocation28_spill] sm:$0xff] %v10355_v19 }
 0x2a4   : > { %v2539_v50 = vmax.f32 %v2408_v9, %v2507_v36  ;;  %v2356_v38 = vsel %vm861_vm2, %v2324_v26, %v2308_v63  ;;  %v2135_v41 = vmax.f32 %v2071_v22, 0.0  ;;  %v2409_v60 = vmax.f32 %v2132_v42, %v2340_v16  ;;  %7665 = vmatprep.subr.bf16.mxu0 %v10355_v19 }
 0x2a5   : > { %v2566_v58 = vrot.slane %v2538_v51, 4  ;;  %v2378_v57 = vsel %vm737_vm3, %v2356_v38, 0.0  ;;  %v2136_v53 = vmax.f32 %v2072_v14, 0.0  ;;  %v13097_v36 = vmax.f32 %v10340_v18, 0.0 }
 0x2a6   : > { %v2582_v20 = vrot.slane %v2539_v50, 4  ;;  %v2410_v9 = vmax.f32 %v2134_v44, %v2378_v57  ;;  %v10359_v47 = vmax.f32 %v2131_v40, %v2135_v41  ;;  %v2436_v22 = vrot.slane %v2409_v60, 2 }
 0x2a7   : > { %v1883_v24 = vpop.f32.mrb[44].mxu1  ;;  %v2309_v63 = vrot.slane %v2136_v53, 1  ;;  %v2074_v26 = vadd.f32 %v10126_v15, %v1879_v13 }
 0x2a8   : > { %v10365_v2 = vadd.f32 %v10133_v59, %v1883_v24  ;;  %v1885_v56 = vpop.f32.mrb[45].mxu1  ;;  %v2599_v42 = vsel %vm2594_vm11, %v2566_v58, %v2582_v20  ;;  %v2615_v44 = vsel %vm2594_vm11, %v2582_v20, %v2566_v58  ;;  %v2452_v40 = vrot.slane %v2410_v9, 2 }
 0x2a9   : > { %v1887_v16 = vpop.f32.mrb[46].mxu1  ;;  %v2638_v38 = vsel %vm2628_vm12, %v2615_v44, 0.0  ;;  %v2669_v57 = vmax.f32 %v2538_v51, %v2599_v42  ;;  %v10377_v24 = vmax.f32 %v2133_v7, %v13097_v36  ;;  %v2138_v13 = vmax.f32 %v2074_v26, 0.0 }
 0x2aa   : > { %v1889_v21 = vpop.f32.mrb[47].mxu1  ;;  %v10379_v54 = vmax.f32 %v2539_v50, %v2638_v38  ;;  %v2469_v58 = vsel %vm2463_vm9, %v2436_v22, %v2452_v40  ;;  %v2485_v20 = vsel %vm2463_vm9, %v2452_v40, %v2436_v22  ;;  %v2139_v14 = vmax.f32 %v10365_v2, 0.0 }
 0x2ab   : > { %v2509_v44 = vsel %vm2497_vm10, %v2485_v20, 0.0  ;;  %v2540_v51 = vmax.f32 %v2409_v60, %v2469_v58  ;;  %v2325_v42 = vrot.slane %v2138_v13, 1  ;;  %v2076_v60 = vadd.f32 %v10126_v15, %v1885_v56 }
 0x2ac   : > { %13164 = vst [vmem:[#allocation29_spill] sm:$0xff] %v10379_v54  ;;  %v10392_v50 = vmax.f32 %v2669_v57, %v10379_v54  ;;  %v2541_v38 = vmax.f32 %v2410_v9, %v2509_v44  ;;  %v10394_v36 = vmax.f32 %v2135_v41, %v2139_v14  ;;  %v2077_v26 = vadd.f32 %v10133_v59, %v1887_v16 }
 0x2ad   : > { %v2567_v49 = vrot.slane %v2540_v51, 4  ;;  %v2341_v2 = vsel %vm861_vm2, %v2309_v63, %v2325_v42  ;;  %v2357_v22 = vsel %vm861_vm2, %v2325_v42, %v2309_v63  ;;  %v2140_v44 = vmax.f32 %v2076_v60, 0.0 }
 0x2ae   : > { %v2583_v40 = vrot.slane %v2541_v38, 4  ;;  %v2380_v58 = vsel %vm737_vm3, %v2357_v22, 0.0  ;;  %v2411_v20 = vmax.f32 %v2136_v53, %v2341_v2  ;;  %v10405_v57 = vmax.f32 %v10316_v0, %v10394_v36 }
 0x2af   : > { %v1893_v41 = vpop.f32.mrb[48].mxu1  ;;  %v2412_v9 = vmax.f32 %v2138_v13, %v2380_v58  ;;  %v2078_v7 = vadd.f32 %v10126_v15, %v1889_v21  ;;  %v13165_v53 = vmax.f32 %v10157_v30, %v10223_v39  ;;  %v2141_v5 = vmax.f32 %v2077_v26, 0.0 }
 0x2b0   : > { %v1895_v46 = vpop.f32.mrb[49].mxu1  ;;  %v2600_v56 = vsel %vm2594_vm11, %v2567_v49, %v2583_v40  ;;  %v2616_v63 = vsel %vm2594_vm11, %v2583_v40, %v2567_v49  ;;  %v2437_v42 = vrot.slane %v2411_v20, 2  ;;  %v10425_v40 = vadd.f32 %v10133_v59, %v1893_v41 }
 0x2b1   : > { %v10417_v2 = vmax.f32 %v13165_v53, %v10405_v57  ;;  %v1897_v13 = vpop.f32.mrb[50].mxu1  ;;  %v2640_v21 = vsel %vm2628_vm12, %v2616_v63, 0.0  ;;  %v2671_v16 = vmax.f32 %v2540_v51, %v2600_v56  ;;  %v2453_v60 = vrot.slane %v2412_v9, 2 }
 0x2b2   : > { %v1899_v58 = vpop.f32.mrb[51].mxu1  ;;  %v10422_v62 = vmax.f32 %v2541_v38, %v2640_v21  ;;  %v2142_v49 = vmax.f32 %v2078_v7, 0.0  ;;  %v2310_v22 = vrot.slane %v2140_v44, 1  ;;  %v10432_v4 = vadd.f32 %v10133_v59, %v1897_v13 }
 0x2b3   : > { %v2470_v30 = vsel %vm2463_vm9, %v2437_v42, %v2453_v60  ;;  %v2486_v53 = vsel %vm2463_vm9, %v2453_v60, %v2437_v42  ;;  %v2080_v38 = vadd.f32 %v10126_v15, %v1895_v46  ;;  %v13167_v56 = vmax.f32 %v10340_v18, 0.0 }
 0x2b4   : > { %13166 = vst [vmem:[#allocation30_spill] sm:$0xff] %v10422_v62  ;;  %v10435_v51 = vmax.f32 %v2671_v16, %v10422_v62  ;;  %v2511_v26 = vsel %vm2497_vm10, %v2486_v53, 0.0  ;;  %v2542_v7 = vmax.f32 %v2411_v20, %v2470_v30  ;;  %v2326_v21 = vrot.slane %v2142_v49, 1 }
 0x2b5   : > { %v2543_v41 = vmax.f32 %v2412_v9, %v2511_v26  ;;  %v10442_v63 = vmax.f32 %v13167_v56, %v2141_v5  ;;  %v2143_v42 = vmax.f32 %v10425_v40, 0.0  ;;  %v2145_v16 = vmax.f32 %v10432_v4, 0.0 }
 0x2b6   : > { %v2568_v60 = vrot.slane %v2542_v7, 4  ;;  %v2082_v32 = vadd.f32 %v10126_v15, %v1899_v58  ;;  %v2342_v18 = vsel %vm861_vm2, %v2310_v22, %v2326_v21  ;;  %v2358_v20 = vsel %vm861_vm2, %v2326_v21, %v2310_v22 }
 0x2b7   : > { %v1903_v25 = vpop.f32.mrb[52].mxu1  ;;  %v2584_v53 = vrot.slane %v2543_v41, 4  ;;  %v10450_v46 = vmax.f32 %v10327_v11, %v10442_v63  ;;  %v2382_v40 = vsel %vm737_vm3, %v2358_v20, 0.0  ;;  %v2413_v30 = vmax.f32 %v2140_v44, %v2342_v18 }
 0x2b8   : > { %v1905_v9 = vpop.f32.mrb[53].mxu1  ;;  %v10458_v4 = vmax.f32 %v2139_v14, %v2143_v42  ;;  %v2144_v58 = vmax.f32 %v2080_v38, 0.0  ;;  %v2414_v21 = vmax.f32 %v2142_v49, %v2382_v40  ;;  %v2146_v52 = vmax.f32 %v2082_v32, 0.0 }
 0x2b9   : > { %13168 = vst [vmem:[#allocation31_spill] sm:$0xff] %v10450_v46  ;;  %v1907_v26 = vpop.f32.mrb[54].mxu1  ;;  %v2601_v56 = vsel %vm2594_vm11, %v2568_v60, %v2584_v53  ;;  %v2617_v13 = vsel %vm2594_vm11, %v2584_v53, %v2568_v60  ;;  %v10468_v22 = vmax.f32 %v13169_v27, %v10450_v46  ;;  %v2438_v38 = vrot.slane %v2413_v30, 2 }
 0x2ba   : > { %v1909_v23 = vpop.f32.mrb[55].mxu1  ;;  %v2642_v14 = vsel %vm2628_vm12, %v2617_v13, 0.0  ;;  %v2673_v44 = vmax.f32 %v2542_v7, %v2601_v56  ;;  %v10474_v18 = vmax.f32 %v10359_v47, %v10458_v4  ;;  %v2454_v60 = vrot.slane %v2414_v21, 2 }
 0x2bb   : > { %v10476_v20 = vmax.f32 %v2543_v41, %v2642_v14  ;;  %v10478_v53 = vmax.f32 %v2141_v5, %v2145_v16  ;;  %v13171_v27 = vmax.f32 %v10181_v61, %v10269_v12  ;;  %v2311_v49 = vrot.slane %v2144_v58, 1 }
 0x2bc   : > { %v10487_v7 = vadd.f32 %v10133_v59, %v1903_v25  ;;  %v10490_v13 = vadd.f32 %v10133_v59, %v1907_v26  ;;  %v2471_v5 = vsel %vm2463_vm9, %v2438_v38, %v2454_v60  ;;  %v2487_v32 = vsel %vm2463_vm9, %v2454_v60, %v2438_v38 }
 0x2bd   : > { %13170 = vst [vmem:[#allocation32_spill] sm:$0xff] %v10476_v20  ;;  %v10484_v1 = vmax.f32 %v13171_v27, %v10474_v18  ;;  %v10493_v41 = vmax.f32 %v2673_v44, %v10476_v20  ;;  %v10500_v61 = vadd.f32 %v10126_v15, %v1905_v9  ;;  %v2513_v40 = vsel %vm2497_vm10, %v2487_v32, 0.0 }
 0x2be   : > { %v2544_v25 = vmax.f32 %v2413_v30, %v2471_v5  ;;  %v10506_v26 = vmax.f32 %v10377_v24, %v10478_v53  ;;  %v2327_v56 = vrot.slane %v2146_v52, 1  ;;  %v2545_v27 = vmax.f32 %v2414_v21, %v2513_v40 }
 0x2bf   : > { %v1913_v14 = vpop.f32.mrb[56].mxu1  ;;  %v2147_v33 = vmax.f32 %v10487_v7, 0.0  ;;  %v13173_v32 = vmax.f32 %v10202_v17, %v10286_v35  ;;  %v2148_v17 = vmax.f32 %v10500_v61, 0.0  ;;  %v2086_v62 = vadd.f32 %v10126_v15, %v1909_v23 }
 0x2c0   : > { %13172 = vst [vmem:[#allocation33_spill] sm:$0xff] %v10506_v26  ;;  %v1915_v60 = vpop.f32.mrb[57].mxu1  ;;  %v2569_v9 = vrot.slane %v2544_v25, 4  ;;  %v2343_v5 = vsel %vm861_vm2, %v2311_v49, %v2327_v56  ;;  %v2359_v55 = vsel %vm861_vm2, %v2327_v56, %v2311_v49  ;;  %v2585_v21 = vrot.slane %v2545_v27, 4 }
 0x2c1   : > { %v10515_v30 = vmax.f32 %v13173_v32, %v10506_v26  ;;  %v1917_v44 = vpop.f32.mrb[58].mxu1  ;;  %v2384_v7 = vsel %vm737_vm3, %v2359_v55, 0.0  ;;  %v2415_v40 = vmax.f32 %v2144_v58, %v2343_v5  ;;  %v10523_v38 = vmax.f32 %v2143_v42, %v2147_v33 }
 0x2c2   : > { %v1919_v45 = vpop.f32.mrb[59].mxu1  ;;  %v2416_v19 = vmax.f32 %v2146_v52, %v2384_v7  ;;  %v13175_v32 = vmax.f32 %v10490_v13, 0.0  ;;  %v2602_v49 = vsel %vm2594_vm11, %v2569_v9, %v2585_v21  ;;  %v2618_v56 = vsel %vm2594_vm11, %v2585_v21, %v2569_v9 }
 0x2c3   : > { %13174 = vst [vmem:[#allocation34_spill] sm:$0xff] %v10515_v30  ;;  %v2439_v55 = vrot.slane %v2415_v40, 2  ;;  %v10537_v42 = vmax.f32 %v10394_v36, %v10523_v38  ;;  %v2644_v52 = vsel %vm2628_vm12, %v2618_v56, 0.0  ;;  %v2675_v58 = vmax.f32 %v2544_v25, %v2602_v49 }
 0x2c4   : > { %v10528_v20 = vmax.f32 %v2145_v16, %v13175_v32  ;;  %v2455_v61 = vrot.slane %v2416_v19, 2  ;;  %v10545_v23 = vmax.f32 %v2545_v27, %v2644_v52  ;;  %v13177_v9 = vmax.f32 %v10223_v39, %v10316_v0 }
 0x2c5   : > { %v2150_v21 = vmax.f32 %v2086_v62, 0.0  ;;  %v2087_v36 = vadd.f32 %v10133_v59, %v1913_v14  ;;  %v10565_v32 = vadd.f32 %v10126_v15, %v1915_v60  ;;  %v2312_v49 = vrot.slane %v2148_v17, 1 }
 0x2c6   : > { %v10543_v16 = vmax.f32 %v10442_v63, %v10528_v20  ;;  %13176 = vst [vmem:[#allocation35_spill] sm:$0xff] %v10545_v23  ;;  %v10551_v5 = vmax.f32 %v13177_v9, %v10537_v42  ;;  %v2472_v7 = vsel %vm2463_vm9, %v2439_v55, %v2455_v61  ;;  %v2488_v25 = vsel %vm2463_vm9, %v2455_v61, %v2439_v55 }
 0x2c7   : > { %v13178_v63 = vmax.f32 %v10249_v29, %v10327_v11  ;;  %v1923_v39 = vpop.f32.mrb[60].mxu1  ;;  %v10568_v62 = vmax.f32 %v2675_v58, %v10545_v23  ;;  %v2515_v0 = vsel %vm2497_vm10, %v2488_v25, 0.0  ;;  %v2546_v14 = vmax.f32 %v2415_v40, %v2472_v7 }
 0x2c8   : > { %v1925_v56 = vpop.f32.mrb[61].mxu1  ;;  %v2547_v52 = vmax.f32 %v2416_v19, %v2515_v0  ;;  %v2328_v61 = vrot.slane %v2150_v21, 1  ;;  %v2151_v29 = vmax.f32 %v2087_v36, 0.0  ;;  %v2152_v60 = vmax.f32 %v10565_v32, 0.0 }
 0x2c9   : > { %v10562_v27 = vmax.f32 %v13178_v63, %v10543_v16  ;;  %v1927_v11 = vpop.f32.mrb[62].mxu1  ;;  %v2570_v9 = vrot.slane %v2546_v14, 4  ;;  %v2089_v63 = vadd.f32 %v10133_v59, %v1917_v44  ;;  %v2090_v58 = vadd.f32 %v10126_v15, %v1919_v45 }
 0x2ca   : > { %v1929_v54 = vpop.f32.mrb[63].mxu1  ;;  %v2586_v28 = vrot.slane %v2547_v52, 4  ;;  %v2344_v40 = vsel %vm861_vm2, %v2312_v49, %v2328_v61  ;;  %v2360_v7 = vsel %vm861_vm2, %v2328_v61, %v2312_v49  ;;  %v10580_v25 = vmax.f32 %v2147_v33, %v2151_v29 }
 0x2cb   : > { %13179 = vst [vmem:[#allocation36_spill] sm:$0xff] %v10562_v27  ;;  %v2386_v19 = vsel %vm737_vm3, %v2360_v7, 0.0  ;;  %v2417_v36 = vmax.f32 %v2148_v17, %v2344_v40  ;;  %v2153_v0 = vmax.f32 %v2089_v63, 0.0  ;;  %v10585_v32 = vadd.f32 %v10133_v59, %v1923_v39 }
 0x2cc   : > { %v2603_v45 = vsel %vm2594_vm11, %v2570_v9, %v2586_v28  ;;  %v2619_v44 = vsel %vm2594_vm11, %v2586_v28, %v2570_v9  ;;  %v2418_v55 = vmax.f32 %v2150_v21, %v2386_v19  ;;  %v10593_v49 = vmax.f32 %v10458_v4, %v10580_v25 }
 0x2cd   : > { %v2646_v33 = vsel %vm2628_vm12, %v2619_v44, 0.0  ;;  %v2677_v61 = vmax.f32 %v2546_v14, %v2603_v45  ;;  %v2440_v17 = vrot.slane %v2417_v36, 2  ;;  %v13180_v63 = vmax.f32 %v10490_v13, 0.0 }
 0x2ce   : > { %v10601_v40 = vmax.f32 %v2547_v52, %v2646_v33  ;;  %v2456_v7 = vrot.slane %v2418_v55, 2  ;;  %v13182_v28 = vmax.f32 %v10269_v12, %v10359_v47  ;;  %v2154_v4 = vmax.f32 %v2090_v58, 0.0 }
 0x2cf   : > { %v10599_v39 = vmax.f32 %v13180_v63, %v2153_v0  ;;  %v1933_v9 = vpop.f32.mrb[64].mxu1  ;;  %v2092_v13 = vadd.f32 %v10126_v15, %v1925_v56  ;;  %v10616_v52 = vadd.f32 %v10133_v59, %v1927_v11  ;;  %v2313_v58 = vrot.slane %v2152_v60, 1 }
 0x2d0   : > { %13181 = vst [vmem:[#allocation37_spill] sm:$0xff] %v10601_v40  ;;  %v10607_v21 = vmax.f32 %v13182_v28, %v10593_v49  ;;  %v1935_v45 = vpop.f32.mrb[65].mxu1  ;;  %v10619_v44 = vmax.f32 %v2677_v61, %v10601_v40  ;;  %v2473_v12 = vsel %vm2463_vm9, %v2440_v17, %v2456_v7  ;;  %v2489_v47 = vsel %vm2463_vm9, %v2456_v7, %v2440_v17 }
 0x2d1   : > { %v10611_v19 = vmax.f32 %v10478_v53, %v10599_v39  ;;  %v1937_v53 = vpop.f32.mrb[66].mxu1  ;;  %v2517_v33 = vsel %vm2497_vm10, %v2489_v47, 0.0  ;;  %v2548_v63 = vmax.f32 %v2417_v36, %v2473_v12  ;;  %v13184_v56 = vmax.f32 %v10286_v35, %v10377_v24 }
 0x2d2   : > { %13183 = vst [vmem:[#allocation38_spill] sm:$0xff] %v10619_v44  ;;  %v2329_v61 = vrot.slane %v2154_v4, 1  ;;  %v1939_v28 = vpop.f32.mrb[67].mxu1  ;;  %v2549_v14 = vmax.f32 %v2418_v55, %v2517_v33  ;;  %v13186_v44 = vmax.f32 %v10585_v32, 0.0  ;;  %v2156_v17 = vmax.f32 %v2092_v13, 0.0 }
 0x2d3   : > { %v10631_v11 = vmax.f32 %v13184_v56, %v10611_v19  ;;  %v2157_v7 = vmax.f32 %v10616_v52, 0.0  ;;  %v2571_v34 = vrot.slane %v2548_v63, 4  ;;  %v2094_v35 = vadd.f32 %v10126_v15, %v1929_v54 }
 0x2d4   : > { %v10635_v23 = vmax.f32 %v2151_v29, %v13186_v44  ;;  %v2345_v36 = vsel %vm861_vm2, %v2313_v58, %v2329_v61  ;;  %v2361_v12 = vsel %vm861_vm2, %v2329_v61, %v2313_v58  ;;  %v2587_v24 = vrot.slane %v2549_v14, 4 }
 0x2d5   : > { %13185 = vst [vmem:[#allocation39_spill] sm:$0xff] %v10631_v11  ;;  %v2388_v55 = vsel %vm737_vm3, %v2361_v12, 0.0  ;;  %v2419_v47 = vmax.f32 %v2152_v60, %v2345_v36  ;;  %v2314_v52 = vrot.slane %v2156_v17, 1  ;;  %v10649_v44 = vmax.f32 %v2153_v0, %v2157_v7 }
 0x2d6   : > { %v10647_v29 = vmax.f32 %v10523_v38, %v10635_v23  ;;  %v2420_v13 = vmax.f32 %v2154_v4, %v2388_v55  ;;  %v2158_v33 = vmax.f32 %v2094_v35, 0.0  ;;  %v2604_v56 = vsel %vm2594_vm11, %v2571_v34, %v2587_v24 }
 0x2d7   : > { %v2620_v54 = vsel %vm2594_vm11, %v2587_v24, %v2571_v34  ;;  %v2441_v58 = vrot.slane %v2419_v47, 2  ;;  %v1943_v60 = vpop.f32.mrb[68].mxu1  ;;  %v2679_v36 = vmax.f32 %v2548_v63, %v2604_v56  ;;  %v10661_v0 = vmax.f32 %v10528_v20, %v10649_v44 }
 0x2d8   : > { %v2648_v38 = vsel %vm2628_vm12, %v2620_v54, 0.0  ;;  %v2457_v4 = vrot.slane %v2420_v13, 2  ;;  %v10663_v12 = vpop.f32.mrb[69].mxu1  ;;  %v2330_v55 = vrot.slane %v2158_v33, 1  ;;  %v2095_v34 = vadd.f32 %v10133_v59, %v1933_v9 }
 0x2d9   : > { %v10665_v35 = vmax.f32 %v2549_v14, %v2648_v38  ;;  %v2096_v24 = vadd.f32 %v10126_v15, %v1935_v45  ;;  %v1947_v61 = vpop.f32.mrb[70].mxu1  ;;  %v10676_v56 = vadd.f32 %v10133_v59, %v1937_v53  ;;  %v13189_v11 = vmax.f32 %v10585_v32, 0.0 }
 0x2da   : > { %v2474_v37 = vsel %vm2463_vm9, %v2441_v58, %v2457_v4  ;;  %v2490_v63 = vsel %vm2463_vm9, %v2457_v4, %v2441_v58  ;;  %v1949_v14 = vpop.f32.mrb[71].mxu1  ;;  %v2346_v58 = vsel %vm861_vm2, %v2314_v52, %v2330_v55  ;;  %v2362_v4 = vsel %vm861_vm2, %v2330_v55, %v2314_v52 }
 0x2db   : > { %13187 = vst [vmem:[#allocation40_spill] sm:$0xff] %v10665_v35  ;;  %v10680_v9 = vmax.f32 %v2679_v36, %v10665_v35  ;;  %v2519_v45 = vsel %vm2497_vm10, %v2490_v63, 0.0  ;;  %v2550_v38 = vmax.f32 %v2419_v47, %v2474_v37  ;;  %v2159_v20 = vmax.f32 %v2095_v34, 0.0 }
 0x2dc   : > { %v2551_v31 = vmax.f32 %v2420_v13, %v2519_v45  ;;  %v2390_v46 = vsel %vm737_vm3, %v2362_v4, 0.0  ;;  %v2421_v54 = vmax.f32 %v2156_v17, %v2346_v58  ;;  %v2160_v40 = vmax.f32 %v2096_v24, 0.0 }
 0x2dd   : > { %13188 = vst [vmem:[#allocation41_spill] sm:$0xff] %v10680_v9  ;;  %v2572_v53 = vrot.slane %v2550_v38, 4  ;;  %v2422_v9 = vmax.f32 %v2158_v33, %v2390_v46  ;;  %v10692_v63 = vmax.f32 %v13189_v11, %v2159_v20  ;;  %v13109_v37 = vmax.f32 %v10676_v56, 0.0 }
 0x2de   : > { %v2588_v36 = vrot.slane %v2551_v31, 4  ;;  %v2442_v47 = vrot.slane %v2421_v54, 2  ;;  %v2315_v13 = vrot.slane %v2160_v40, 1  ;;  %v2098_v45 = vadd.f32 %v10126_v15, %v1939_v28 }
 0x2df   : > { %v10697_v52 = vadd.f32 %v10133_v59, %v1943_v60  ;;  %v1953_v55 = vpop.f32.mrb[72].mxu1  ;;  %v2458_v33 = vrot.slane %v2422_v9, 2  ;;  %v10705_v32 = vmax.f32 %v10580_v25, %v10692_v63  ;;  %v10711_v60 = vmax.f32 %v2157_v7, %v13109_v37 }
 0x2e0   : > { %v2605_v17 = vsel %vm2594_vm11, %v2572_v53, %v2588_v36  ;;  %v2621_v46 = vsel %vm2594_vm11, %v2588_v36, %v2572_v53  ;;  %v1955_v11 = vpop.f32.mrb[73].mxu1  ;;  %v2162_v24 = vmax.f32 %v2098_v45, 0.0  ;;  %v2102_v36 = vadd.f32 %v10126_v15, %v1949_v14 }
 0x2e1   : > { %v2650_v34 = vsel %vm2628_vm12, %v2621_v46, 0.0  ;;  %v2681_v28 = vmax.f32 %v2550_v38, %v2605_v17  ;;  %v1957_v58 = vpop.f32.mrb[74].mxu1  ;;  %v2475_v53 = vsel %vm2463_vm9, %v2442_v47, %v2458_v33  ;;  %v2491_v25 = vsel %vm2463_vm9, %v2458_v33, %v2442_v47 }
 0x2e2   : > { %v10713_v4 = vmax.f32 %v2551_v31, %v2650_v34  ;;  %v1959_v27 = vpop.f32.mrb[75].mxu1  ;;  %v2521_v38 = vsel %vm2497_vm10, %v2491_v25, 0.0  ;;  %v2552_v17 = vmax.f32 %v2421_v54, %v2475_v53  ;;  %v10725_v7 = vmax.f32 %v10599_v39, %v10711_v60 }
 0x2e3   : > { %v2331_v31 = vrot.slane %v2162_v24, 1  ;;  %v2553_v34 = vmax.f32 %v2422_v9, %v2521_v38  ;;  %v2163_v47 = vmax.f32 %v10697_v52, 0.0  ;;  %v2100_v52 = vadd.f32 %v10126_v15, %v10663_v12 }
 0x2e4   : > { %13190 = vst [vmem:[#allocation42_spill] sm:$0xff] %v10713_v4  ;;  %v10729_v46 = vmax.f32 %v2681_v28, %v10713_v4  ;;  %v2573_v33 = vrot.slane %v2552_v17, 4  ;;  %v10745_v38 = vadd.f32 %v10133_v59, %v1947_v61 }
 0x2e5   : > { %v2347_v54 = vsel %vm861_vm2, %v2315_v13, %v2331_v31  ;;  %v2363_v39 = vsel %vm861_vm2, %v2331_v31, %v2315_v13  ;;  %v2589_v53 = vrot.slane %v2553_v34, 4  ;;  %v10740_v28 = vmax.f32 %v2159_v20, %v2163_v47 }
 0x2e6   : > { %13191 = vst [vmem:[#allocation43_spill] sm:$0xff] %v10729_v46  ;;  %v2392_v25 = vsel %vm737_vm3, %v2363_v39, 0.0  ;;  %v2423_v45 = vmax.f32 %v2160_v40, %v2347_v54  ;;  %v2164_v54 = vmax.f32 %v2100_v52, 0.0  ;;  %v2103_v52 = vadd.f32 %v10133_v59, %v1953_v55 }
 0x2e7   : > { %v2424_v9 = vmax.f32 %v2162_v24, %v2392_v25  ;;  %v1963_v37 = vpop.f32.mrb[76].mxu1  ;;  %v2606_v13 = vsel %vm2594_vm11, %v2573_v33, %v2589_v53  ;;  %v2622_v31 = vsel %vm2594_vm11, %v2589_v53, %v2573_v33  ;;  %v10754_v40 = vmax.f32 %v10635_v23, %v10740_v28 }
 0x2e8   : > { %v2443_v39 = vrot.slane %v2423_v45, 2  ;;  %v1965_v20 = vpop.f32.mrb[77].mxu1  ;;  %v2652_v12 = vsel %vm2628_vm12, %v2622_v31, 0.0  ;;  %v2683_v61 = vmax.f32 %v2552_v17, %v2606_v13  ;;  %v2165_v33 = vmax.f32 %v10745_v38, 0.0 }
 0x2e9   : > { %v2459_v24 = vrot.slane %v2424_v9, 2  ;;  %v10758_v14 = vpop.f32.mrb[78].mxu1  ;;  %v10760_v25 = vmax.f32 %v2553_v34, %v2652_v12  ;;  %v2166_v53 = vmax.f32 %v2102_v36, 0.0  ;;  %v2316_v36 = vrot.slane %v2164_v54, 1 }
 0x2ea   : > { %v10765_v35 = vpop.f32.mrb[79].mxu1  ;;  %v13192_v46 = vmax.f32 %v10676_v56, 0.0  ;;  %v2167_v26 = vmax.f32 %v2103_v52, 0.0  ;;  %v10784_v55 = vadd.f32 %v10133_v59, %v1957_v58 }
 0x2eb   : > { %v2476_v31 = vsel %vm2463_vm9, %v2443_v39, %v2459_v24  ;;  %v2492_v17 = vsel %vm2463_vm9, %v2459_v24, %v2443_v39  ;;  %v10774_v34 = vmax.f32 %v2683_v61, %v10760_v25  ;;  %v2332_v4 = vrot.slane %v2166_v53, 1 }
 0x2ec   : > { %v2523_v13 = vsel %vm2497_vm10, %v2492_v17, 0.0  ;;  %v2554_v38 = vmax.f32 %v2423_v45, %v2476_v31  ;;  %v10780_v23 = vmax.f32 %v13192_v46, %v2165_v33  ;;  %v2104_v39 = vadd.f32 %v10126_v15, %v1955_v11 }
 0x2ed   : > { %v2555_v12 = vmax.f32 %v2424_v9, %v2523_v13  ;;  %v2106_v61 = vadd.f32 %v10126_v15, %v1959_v27  ;;  %v2348_v56 = vsel %vm861_vm2, %v2316_v36, %v2332_v4  ;;  %v2364_v46 = vsel %vm861_vm2, %v2332_v4, %v2316_v36 }
 0x2ee   : > { %v2574_v30 = vrot.slane %v2554_v38, 4  ;;  %v10789_v45 = vmax.f32 %v10649_v44, %v10780_v23  ;;  %v2394_v9 = vsel %vm737_vm3, %v2364_v46, 0.0  ;;  %v2425_v11 = vmax.f32 %v2164_v54, %v2348_v56 }
 0x2ef   : > { %v2590_v24 = vrot.slane %v2555_v12, 4  ;;  %v2201_v31 = vmax.f32 %v2163_v47, %v2167_v26  ;;  %v2168_v58 = vmax.f32 %v2104_v39, 0.0  ;;  %v2426_v52 = vmax.f32 %v2166_v53, %v2394_v9 }
 0x2f0   : > { %v2444_v36 = vrot.slane %v2425_v11, 2  ;;  %v13113_v56 = vmax.f32 %v10784_v55, 0.0  ;;  %v2107_v53 = vadd.f32 %v10133_v59, %v1963_v37  ;;  %v10816_v9 = vadd.f32 %v10126_v15, %v1965_v20 }
 0x2f1   : > { %v2607_v27 = vsel %vm2594_vm11, %v2574_v30, %v2590_v24  ;;  %v2623_v17 = vsel %vm2594_vm11, %v2590_v24, %v2574_v30  ;;  %v10806_v46 = vmax.f32 %v10692_v63, %v2201_v31  ;;  %v2460_v39 = vrot.slane %v2426_v52, 2 }
 0x2f2   : > { %v2654_v13 = vsel %vm2628_vm12, %v2623_v17, 0.0  ;;  %v2685_v4 = vmax.f32 %v2554_v38, %v2607_v27  ;;  %v2170_v24 = vmax.f32 %v2106_v61, 0.0  ;;  %v2317_v27 = vrot.slane %v2168_v58, 1 }
 0x2f3   : > { %v10809_v54 = vmax.f32 %v2555_v12, %v2654_v13  ;;  %v2477_v63 = vsel %vm2463_vm9, %v2444_v36, %v2460_v39  ;;  %v2493_v12 = vsel %vm2463_vm9, %v2460_v39, %v2444_v36  ;;  %v10829_v37 = vmax.f32 %v2165_v33, %v13113_v56 }
 0x2f4   : > { %v2525_v17 = vsel %vm2497_vm10, %v2493_v12, 0.0  ;;  %v2556_v13 = vmax.f32 %v2425_v11, %v2477_v63  ;;  %v2333_v20 = vrot.slane %v2170_v24, 1  ;;  %v2171_v47 = vmax.f32 %v2107_v53, 0.0 }
 0x2f5   : > { %v10819_v38 = vmax.f32 %v2685_v4, %v10809_v54  ;;  %v2557_v4 = vmax.f32 %v2426_v52, %v2525_v17  ;;  %v10835_v36 = vmax.f32 %v10711_v60, %v10829_v37  ;;  %v2109_v60 = vadd.f32 %v10133_v59, %v10758_v14 }
 0x2f6   : > { %v2575_v30 = vrot.slane %v2556_v13, 4  ;;  %v2349_v39 = vsel %vm861_vm2, %v2317_v27, %v2333_v20  ;;  %v2365_v11 = vsel %vm861_vm2, %v2333_v20, %v2317_v27  ;;  %v2203_v52 = vmax.f32 %v2167_v26, %v2171_v47 }
 0x2f7   : > { %v2591_v33 = vrot.slane %v2557_v4, 4  ;;  %v2396_v63 = vsel %vm737_vm3, %v2365_v11, 0.0  ;;  %v2427_v12 = vmax.f32 %v2168_v58, %v2349_v39  ;;  %v2205_v61 = vmax.f32 %v2171_v47, 0.0 }
 0x2f8   : > { %v2428_v17 = vmax.f32 %v2170_v24, %v2396_v63  ;;  %v2231_v44 = vmax.f32 %v10740_v28, %v2203_v52  ;;  %v2235_v47 = vmax.f32 %v2203_v52, 0.0 }
 0x2f9   : > { %v2608_v56 = vsel %vm2594_vm11, %v2575_v30, %v2591_v33  ;;  %v2624_v27 = vsel %vm2594_vm11, %v2591_v33, %v2575_v30  ;;  %v2445_v20 = vrot.slane %v2427_v12, 2  ;;  %v2233_v11 = vmax.f32 %v2201_v31, %v2205_v61 }
 0x2fa   : > { %v2656_v26 = vsel %vm2628_vm12, %v2624_v27, 0.0  ;;  %v2687_v58 = vmax.f32 %v2556_v13, %v2608_v56  ;;  %v2461_v39 = vrot.slane %v2428_v17, 2  ;;  %v2237_v63 = vmax.f32 %v2205_v61, 0.0 }
 0x2fb   : > { %v10854_v24 = vmax.f32 %v2557_v4, %v2656_v26  ;;  %v10857_v59 = vmax.f32 %v10647_v29, %v2231_v44  ;;  %v10864_v28 = vmax.f32 %v10705_v32, %v2233_v11  ;;  %v13193_v56 = vmax.f32 %v10816_v9, 0.0 }
 0x2fc   : > { %v2478_v14 = vsel %vm2463_vm9, %v2445_v20, %v2461_v39  ;;  %v2494_v30 = vsel %vm2463_vm9, %v2461_v39, %v2445_v20  ;;  %v2263_v33 = vmax.f32 %v2231_v44, 0.0  ;;  %v10876_v27 = vmax.f32 %v10754_v40, %v2235_v47 }
 0x2fd   : > { %v10868_v13 = vrot.slane %v13193_v56, 1  ;;  %v10871_v31 = vmax.f32 %v2687_v58, %v10854_v24  ;;  %v2527_v61 = vsel %vm2497_vm10, %v2494_v30, 0.0  ;;  %v2558_v4 = vmax.f32 %v2427_v12, %v2478_v14 }
 0x2fe   : > { %v2559_v52 = vmax.f32 %v2428_v17, %v2527_v61  ;;  %v10879_v20 = vmax.f32 %v10806_v46, %v2237_v63  ;;  %v2265_v26 = vmax.f32 %v2233_v11, 0.0  ;;  %v10881_v53 = vmax.f32 %v2235_v47, 0.0  ;;  %v13229_v61 = vld [vmem:[#allocation35_spill] sm:$0xff] }
 0x2ff   : > { %13194 = vst [vmem:[#allocation44_spill] sm:$0xff] %v10871_v31  ;;  %v2576_v39 = vrot.slane %v2558_v4, 4  ;;  %v10883_v56 = vmax.f32 %v2237_v63, 0.0  ;;  %v2271_v58 = vmax.f32 %v10417_v2, %v10857_v59  ;;  %v2273_v44 = vmax.f32 %v10484_v1, %v10864_v28 }
 0x300   : > { %v2592_v31 = vrot.slane %v2559_v52, 4  ;;  %v2275_v12 = vmax.f32 %v10551_v5, %v10876_v27  ;;  %v2277_v17 = vmax.f32 %v10607_v21, %v10879_v20  ;;  %v13195_v11 = vmax.f32 %v10405_v57, %v10647_v29 }
 0x301   : > { %v13196_v63 = vmax.f32 %v10474_v18, %v10705_v32  ;;  %v13197_v2 = vmax.f32 %v10537_v42, %v10754_v40  ;;  %v13198_v1 = vmax.f32 %v10593_v49, %v10806_v46  ;;  %v13228_v46 = vld [vmem:[#allocation28_spill] sm:$0xff]  ;;  %v13230_v40 = vmax.f32 %v13229_v61, 0.0 }
 0x302   : > { %v2279_v47 = vmax.f32 %v13195_v11, %v2263_v33  ;;  %v2609_v57 = vsel %vm2594_vm11, %v2576_v39, %v2592_v31  ;;  %v2625_v29 = vsel %vm2594_vm11, %v2592_v31, %v2576_v39  ;;  %v10920_v11 = vmax.f32 %v2263_v33, 0.0 }
 0x303   : > { %v2281_v14 = vmax.f32 %v13196_v63, %v2265_v26  ;;  %v2283_v30 = vmax.f32 %v13197_v2, %v10881_v53  ;;  %v2285_v5 = vmax.f32 %v13198_v1, %v10883_v56  ;;  %v2658_v32 = vsel %vm2628_vm12, %v2625_v29, 0.0 }
 0x304   : > { %v2689_v42 = vmax.f32 %v2558_v4, %v2609_v57  ;;  %v10917_v49 = vmax.f32 %v2559_v52, %v2658_v32  ;;  %v10922_v63 = vmax.f32 %v2265_v26, 0.0  ;;  %v10926_v39 = vadd.f32 %v10205_v10, %v2271_v58 }
 0x305   : > { %v2173_v2 = vmax.f32 %v2109_v60, 0.0  ;;  %v2110_v4 = vadd.f32 %v10126_v15, %v10765_v35  ;;  %v10935_v57 = vadd.f32 %v10245_v48, %v2273_v44  ;;  %v13199_v29 = vmax.f32 %v10784_v55, 0.0 }
 0x306   : > { %v10931_v1 = vmax.f32 %v2689_v42, %v10917_v49  ;;  %v13114_v60 = vmov 0.0|0.0   ;;  %v10943_v35 = vadd.f32 %v10294_v8, %v2275_v12  ;;  %v10946_v32 = vadd.f32 %v10344_v43, %v2277_v17 }
 0x307   : > { %v2204_v10 = vmax.f32 %v13199_v29, %v2173_v2  ;;  %v2206_v58 = vmax.f32 %v2173_v2, 0.0  ;;  %7633 = vmatprep.mubr.bf16.mxu0 %v13114_v60  ;;  %v2174_v15 = vmax.f32 %v2110_v4, 0.0  ;;  %v10949_v48 = vadd.f32 %v10392_v50, %v2279_v47  ;;  %v13200_v47 = vld [vmem:[#allocation34_spill] sm:$0xff]  ;;  %v13203_v60 = vld [vmem:[#allocation31_spill] sm:$0xff] }
 0x308   : > { %v10954_v52 = vadd.f32 %v10435_v51, %v2281_v14  ;;  %v10957_v4 = vadd.f32 %v10493_v41, %v2283_v30  ;;  %v10960_v8 = vadd.f32 %v10568_v62, %v2285_v5  ;;  %v13201_v30 = vld [vmem:[#allocation36_spill] sm:$0xff]  ;;  %v13204_v26 = vmax.f32 %v13203_v60, %v10661_v0 }
 0x309   : > { %v2232_v44 = vmax.f32 %v10780_v23, %v2204_v10  ;;  %v2234_v42 = vmax.f32 %v10829_v37, %v2206_v58  ;;  %v2236_v55 = vmax.f32 %v2204_v10, 0.0  ;;  %v2238_v29 = vmax.f32 %v2206_v58, 0.0  ;;  %v13202_v10 = vld [vmem:[#allocation39_spill] sm:$0xff] }
 0x30a   : > { %v2334_v2 = vrot.slane %v2174_v15, 1  ;;  %v13243_v21 = vmax.f32 %v10876_v27, 0.0 }
 0x30b   : > { %v2256_v43 = vmax.f32 %v10661_v0, %v2232_v44  ;;  %v10964_v50 = vmax.f32 %v10725_v7, %v2234_v42  ;;  %v10967_v23 = vmax.f32 %v10789_v45, %v2236_v55  ;;  %v10970_v37 = vmax.f32 %v10835_v36, %v2238_v29 }
 0x30c   : > { %v2264_v12 = vmax.f32 %v2232_v44, 0.0  ;;  %v2266_v51 = vmax.f32 %v2234_v42, 0.0  ;;  %v10972_v17 = vmax.f32 %v2236_v55, 0.0  ;;  %v10974_v41 = vmax.f32 %v2238_v29, 0.0  ;;  %v13205_v42 = vld [vmem:[#allocation33_spill] sm:$0xff] }
 0x30d   : > { %v2272_v62 = vmax.f32 %v10468_v22, %v2256_v43  ;;  %v2274_v14 = vmax.f32 %v13200_v47, %v10964_v50  ;;  %v2276_v5 = vmax.f32 %v13201_v30, %v10967_v23  ;;  %v2278_v58 = vmax.f32 %v13202_v10, %v10970_v37 }
 0x30e   : > { %v2280_v44 = vmax.f32 %v13204_v26, %v2264_v12  ;;  %v13206_v55 = vmax.f32 %v13205_v42, %v10725_v7  ;;  %v13207_v22 = vmax.f32 %v10543_v16, %v10789_v45  ;;  %v13208_v47 = vmax.f32 %v10611_v19, %v10835_v36  ;;  %v13209_v16 = vld [vmem:[#allocation24_spill] sm:$0xff] }
 0x30f   : > { %v2288_v31 = vmax.f32 %v2256_v43, 0.0  ;;  %v2290_v0 = vmax.f32 %v10964_v50, 0.0  ;;  %v2292_v26 = vmax.f32 %v10967_v23, 0.0  ;;  %v2294_v7 = vmax.f32 %v10970_v37, 0.0  ;;  %v13211_v43 = vld [vmem:[#allocation25_spill] sm:$0xff] }
 0x310   : > { %v2282_v29 = vmax.f32 %v13206_v55, %v2266_v51  ;;  %v2284_v33 = vmax.f32 %v13207_v22, %v10972_v17  ;;  %v2286_v30 = vmax.f32 %v13208_v47, %v10974_v41  ;;  %v2296_v60 = vmax.f32 %v2264_v12, 0.0 }
 0x311   : > { %v2298_v42 = vmax.f32 %v2266_v51, 0.0  ;;  %v13210_v45 = vmax.f32 %v13209_v16, 0.0  ;;  %v2350_v19 = vsel %vm861_vm2, %v10868_v13, %v2334_v2  ;;  %v2366_v36 = vsel %vm861_vm2, %v2334_v2, %v10868_v13 }
 0x312   : > { %v13212_v50 = vmax.f32 %v13211_v43, 0.0  ;;  %v2398_v37 = vsel %vm737_vm3, %v2366_v36, 0.0  ;;  %v13213_v12 = vmax.f32 %v10816_v9, 0.0  ;;  %v9011_v9 = vld [vmem:[%s13090_s5 + $0x8] sm:$0xff]   ;;  %v13222_v36 = vld [vmem:[#allocation29_spill] sm:$0xff]  ;;  %v11067_v18 = vadd.f32 %v13230_v40, %v2286_v30  ;;  %v9012_v40 = vld [vmem:[%s13090_s5 + $0x10] sm:$0xff]  }
 0x313   : > { %v11004_v22 = vadd.f32 %v13210_v45, %v2272_v62  ;;  %v13214_v62 = vld [vmem:[#allocation26_spill] sm:$0xff]  ;;  %v13216_v45 = vld [vmem:[#allocation27_spill] sm:$0xff] }
 0x314   : > { %v11014_v23 = vadd.f32 %v13212_v50, %v2274_v14  ;;  %v2429_v51 = vmax.f32 %v13213_v12, %v2350_v19  ;;  %v13215_v47 = vmax.f32 %v13214_v62, 0.0  ;;  %v13217_v10 = vmax.f32 %v13216_v45, 0.0  ;;  %v13224_v12 = vld [vmem:[#allocation30_spill] sm:$0xff]  ;;  %v13226_v45 = vld [vmem:[#allocation32_spill] sm:$0xff] }
 0x315   : > { %v2430_v14 = vmax.f32 %v2174_v15, %v2398_v37  ;;  %v11032_v43 = vpack.c.bf16 %v11004_v22, %v10926_v39  ;;  %v13223_v50 = vmax.f32 %v13222_v36, 0.0  ;;  %v13225_v62 = vmax.f32 %v13224_v12, 0.0  ;;  %v13232_v36 = vld [vmem:[#allocation38_spill] sm:$0xff] }
 0x316   : > { %v11022_v16 = vadd.f32 %v13215_v47, %v2276_v5  ;;  %v11026_v55 = vadd.f32 %v13217_v10, %v2278_v58  ;;  %v2446_v19 = vrot.slane %v2429_v51, 2  ;;  %v11039_v5 = vpack.c.bf16 %v11014_v23, %v10935_v57 }
 0x317   : > { %13218 = vst [vmem:[#allocation34_spill] sm:$0xff] %v11032_v43  ;;  %v2462_v10 = vrot.slane %v2430_v14, 2  ;;  %7634 = vmatmul.mubr.bf16.vlgmr.msra.gmra.mrb[16].mxu0 %v11032_v43  ;;  %v11052_v37 = vadd.f32 %v13223_v50, %v2280_v44  ;;  %v11056_v47 = vadd.f32 %v13225_v62, %v2282_v29  ;;  %v13227_v13 = vmax.f32 %v13226_v45, 0.0  ;;  %v13233_v29 = vld [vmem:[#allocation37_spill] sm:$0xff] }
 0x318   : > { %13219 = vst [vmem:[#allocation36_spill] sm:$0xff] %v11039_v5  ;;  %v11043_v58 = vpack.c.bf16 %v11022_v16, %v10943_v35  ;;  %v11047_v15 = vpack.c.bf16 %v11026_v55, %v10946_v32  ;;  %7666 = vmatpush3.bf16.msra.mxu0 %v13228_v46  ;;  %7637 = vmatprep.mubr.bf16.mxu0 %v11039_v5  ;;  %v13231_v44 = vmax.f32 %v10857_v59, 0.0  ;;  %v13234_v12 = vmax.f32 %v13233_v29, 0.0  ;;  %v13244_v5 = vld [vmem:[#allocation43_spill] sm:$0xff] }
 0x319   : > { %v11060_v2 = vadd.f32 %v13227_v13, %v2284_v33  ;;  %v2479_v33 = vsel %vm2463_vm9, %v2446_v19, %v2462_v10  ;;  %v2495_v46 = vsel %vm2463_vm9, %v2462_v10, %v2446_v19  ;;  %7667 = vmatprep.subr.bf16.mxu0 %v9011_v9  ;;  %v11087_v59 = vpack.c.bf16 %v11052_v37, %v10949_v48 }
 0x31a   : > { %13220 = vst [vmem:[#allocation39_spill] sm:$0xff] %v11043_v58  ;;  %13221 = vst [vmem:[#allocation31_spill] sm:$0xff] %v11047_v15  ;;  %v11072_v50 = vadd.f32 %v13232_v36, %v13231_v44  ;;  %v11076_v62 = vadd.f32 %v13234_v12, %v2288_v31  ;;  %v11091_v61 = vpack.c.bf16 %v11056_v47, %v10954_v52  ;;  %v2529_v31 = vsel %vm2497_vm10, %v2495_v46, 0.0  ;;  %v13240_v36 = vld [vmem:[#allocation41_spill] sm:$0xff]  ;;  %v13241_v12 = vld [vmem:[#allocation40_spill] sm:$0xff] }
 0x31b   : > { %13235 = vst [vmem:[#allocation33_spill] sm:$0xff] %v11087_v59  ;;  %v2560_v30 = vmax.f32 %v2429_v51, %v2479_v33  ;;  %v11097_v13 = vpack.c.bf16 %v11060_v2, %v10957_v4  ;;  %v11101_v19 = vpack.c.bf16 %v11067_v18, %v10960_v8  ;;  %v2561_v10 = vmax.f32 %v2430_v14, %v2529_v31  ;;  %v13245_v14 = vld [vmem:[#allocation42_spill] sm:$0xff] }
 0x31c   : > { %13236 = vst [vmem:[#allocation24_spill] sm:$0xff] %v11091_v61  ;;  %v11105_v45 = vpack.c.bf16 %v11076_v62, %v11072_v50  ;;  %v13239_v44 = vmax.f32 %v10864_v28, 0.0  ;;  %v13242_v51 = vmax.f32 %v13241_v12, 0.0  ;;  %7668 = vmatpush3.bf16.msra.mxu0 %v9011_v9  ;;  %v11119_v43 = vadd.f32 %v13244_v5, %v13243_v21  ;;  %v13250_v12 = vld [vmem:[#allocation44_spill] sm:$0xff] }
 0x31d   : > { %13237 = vst [vmem:[#allocation25_spill] sm:$0xff] %v11097_v13  ;;  %13238 = vst [vmem:[#allocation26_spill] sm:$0xff] %v11101_v19  ;;  %v2577_v46 = vrot.slane %v2560_v30, 4  ;;  %v13246_v31 = vmax.f32 %v13245_v14, 0.0  ;;  %v13247_v28 = vmax.f32 %v10879_v20, 0.0  ;;  %7669 = vmatprep.subr.bf16.mxu0 %v9012_v40  ;;  %v13248_v21 = vmax.f32 %v10760_v25, 0.0 }
 0x31e   : > { %v11110_v29 = vadd.f32 %v13240_v36, %v13239_v44  ;;  %v11114_v33 = vadd.f32 %v13242_v51, %v2290_v0  ;;  %v2593_v36 = vrot.slane %v2561_v10, 4  ;;  %v9013_v0 = vld [vmem:[%s13090_s5 + $0x18] sm:$0xff]   ;;  %v11143_v20 = vadd.f32 %v10819_v38, %v10920_v11 }
 0x31f   : > { %v11123_v19 = vadd.f32 %v13246_v31, %v2292_v26  ;;  %v11128_v44 = vadd.f32 %v10774_v34, %v13247_v28  ;;  %v11139_v9 = vadd.f32 %v13248_v21, %v2294_v7  ;;  %v13249_v26 = vmax.f32 %v10809_v54, 0.0  ;;  %7638 = vmatmul.mubr.bf16.gmra.mrb[20].mxu0 %v11043_v58 }
 0x320   : > { %v11135_v27 = vpack.c.bf16 %v11114_v33, %v11110_v29  ;;  %v11155_v51 = vadd.f32 %v13250_v12, %v10922_v63  ;;  %v13251_v25 = vmax.f32 %v10854_v24, 0.0  ;;  %v2610_v38 = vsel %vm2594_vm11, %v2577_v46, %v2593_v36  ;;  %7641 = vmatprep.mubr.bf16.mxu0 %v11047_v15  ;;  %7670 = vmatpush3.bf16.msra.mxu0 %v9012_v40 }
 0x321   : > { %v11147_v34 = vpack.c.bf16 %v11123_v19, %v11119_v43  ;;  %v11151_v5 = vadd.f32 %v13249_v26, %v2296_v60  ;;  %v2626_v11 = vsel %vm2594_vm11, %v2593_v36, %v2577_v46  ;;  %v11168_v54 = vpack.c.bf16 %v11139_v9, %v11128_v44  ;;  %7671 = vmatprep.subr.bf16.mxu0 %v9013_v0 }
 0x322   : > { %v11159_v7 = vadd.f32 %v13251_v25, %v2298_v42  ;;  %v13252_v60 = vmax.f32 %v10881_v53, 0.0  ;;  %v2660_v24 = vsel %vm2628_vm12, %v2626_v11, 0.0  ;;  %v2691_v42 = vmax.f32 %v2560_v30, %v2610_v38  ;;  %v9014_v53 = vld [vmem:[%s13090_s5 + $0x20] sm:$0xff]  }
 0x323   : > { %v11180_v46 = vpack.c.bf16 %v11151_v5, %v11143_v20  ;;  %v2692_v31 = vmax.f32 %v2561_v10, %v2660_v24  ;;  %v13254_v30 = vmax.f32 %v10917_v49, 0.0  ;;  %v13255_v40 = vrot.slane %v11004_v22, 7  ;;  %v13290_v3 = vld [vmem:[#allocation24_spill] sm:$0xff] }
 0x324   : > { %v11173_v63 = vadd.f32 %v10931_v1, %v13252_v60  ;;  %v11184_v14 = vpack.c.bf16 %v11159_v7, %v11155_v51  ;;  %v13253_v1 = vmax.f32 %v10972_v17, 0.0  ;;  %v13256_v36 = vrot.slane %v10926_v39, 7  ;;  %7672 = vmatpush3.bf16.msra.mxu0 %v9013_v0  ;;  %v9015_v0 = vld [vmem:[%s13090_s5 + $0x28] sm:$0xff]  }
 0x325   : > { %v13258_v26 = vmov %v13255_v40  ;;  %v2793_v49 = vrot.slane %v10935_v57, 7  ;;  %v2808_v17 = vrot.slane %v11014_v23, 7  ;;  %v2794_v38 = vrot.slane %v10943_v35, 7  ;;  %7673 = vmatprep.subr.bf16.mxu0 %v9014_v53 }
 0x326   : > { %v11193_v28 = vadd.f32 %v13254_v30, %v13253_v1  ;;  %v2822_v21 = vsel %vm768_vm5, %v13256_v36, %v13255_v40  ;;  %v13257_v10 = vmov %v13256_v36  ;;  %v2757_v11 = vmax.f32 %v2691_v42, %v2692_v31 }
 0x327   : > { %v2837_v12 = vsel %vm768_vm5, %v13258_v26, %v13257_v10  ;;  %v2758_v60 = vmax.f32 %v2692_v31, 0.0  ;;  %v2809_v1 = vrot.slane %v11022_v16, 7  ;;  %v2823_v30 = vsel %vm768_vm5, %v2793_v49, %v2808_v17  ;;  %7642 = vmatmul.mubr.bf16.gmra.mrb[24].mxu0 %v11087_v59 }
 0x328   : > { %v11207_v25 = vpack.c.bf16 %v2822_v21, %v2837_v12  ;;  %v11214_v24 = vpack.c.bf16 %v11193_v28, %v11173_v63  ;;  %v2838_v40 = vsel %vm768_vm5, %v2808_v17, %v2793_v49  ;;  %v2795_v36 = vrot.slane %v10946_v32, 7  ;;  %7645 = vmatprep.mubr.bf16.mxu0 %v11091_v61  ;;  %7674 = vmatpush3.bf16.msra.mxu0 %v9014_v53 }
 0x329   : > { %v2810_v21 = vrot.slane %v11026_v55, 7  ;;  %v13259_v42 = vmax.f32 %v10883_v56, 0.0  ;;  %v13260_v10 = vmax.f32 %v10974_v41, 0.0  ;;  %v11234_v12 = vpack.c.bf16 %v2823_v30, %v2838_v40  ;;  %7675 = vmatprep.subr.bf16.mxu0 %v9015_v0 }
 0x32a   : > { %v2824_v49 = vsel %vm768_vm5, %v2794_v38, %v2809_v1  ;;  %v2839_v17 = vsel %vm768_vm5, %v2809_v1, %v2794_v38  ;;  %v2811_v40 = vrot.slane %v11052_v37, 7  ;;  %v2812_v38 = vrot.slane %v11056_v47, 7 }
 0x32b   : > { %v11225_v31 = vadd.f32 %v2757_v11, %v13259_v42  ;;  %v11229_v26 = vadd.f32 %v2758_v60, %v13260_v10  ;;  %v2825_v56 = vsel %vm768_vm5, %v2795_v36, %v2810_v21  ;;  %v2840_v41 = vsel %vm768_vm5, %v2810_v21, %v2795_v36  ;;  %v9016_v10 = vld [vmem:[%s13090_s5 + $0x30] sm:$0xff]  }
 0x32c   : > { %v2796_v11 = vrot.slane %v10949_v48, 7  ;;  %v11246_v60 = vpack.c.bf16 %v2824_v49, %v2839_v17  ;;  %v11248_v30 = vpack.c.bf16 %v2825_v56, %v2840_v41  ;;  %v2797_v42 = vrot.slane %v10954_v52, 7  ;;  %7676 = vmatpush3.bf16.msra.mxu0 %v9015_v0 }
 0x32d   : > { %v2798_v1 = vrot.slane %v10957_v4, 7  ;;  %v2813_v36 = vrot.slane %v11060_v2, 7  ;;  %v2799_v21 = vrot.slane %v10960_v8, 7  ;;  %v2814_v53 = vrot.slane %v11067_v18, 7  ;;  %7677 = vmatprep.subr.bf16.mxu0 %v9016_v10 }
 0x32e   : > { %v2826_v49 = vsel %vm768_vm5, %v2796_v11, %v2811_v40  ;;  %v2841_v17 = vsel %vm768_vm5, %v2811_v40, %v2796_v11  ;;  %v2800_v56 = vrot.slane %v11072_v50, 7  ;;  %v2827_v61 = vsel %vm768_vm5, %v2797_v42, %v2812_v38 }
 0x32f   : > { %v11266_v41 = vpack.c.bf16 %v2826_v49, %v2841_v17  ;;  %v2842_v59 = vsel %vm768_vm5, %v2812_v38, %v2797_v42  ;;  %v2828_v15 = vsel %vm768_vm5, %v2798_v1, %v2813_v36  ;;  %v2843_v11 = vsel %vm768_vm5, %v2813_v36, %v2798_v1  ;;  %7646 = vmatmul.mubr.bf16.gmra.mrb[28].mxu0 %v11097_v13 }
 0x330   : > { %v11274_v58 = vpack.c.bf16 %v2827_v61, %v2842_v59  ;;  %v2829_v40 = vsel %vm768_vm5, %v2799_v21, %v2814_v53  ;;  %v2844_v49 = vsel %vm768_vm5, %v2814_v53, %v2799_v21  ;;  %v11282_v17 = vpack.c.bf16 %v2828_v15, %v2843_v11  ;;  %v9017_v59 = vld [vmem:[%s13090_s5 + $0x38] sm:$0xff]   ;;  %7678 = vmatpush3.bf16.msra.mxu0 %v9016_v10 }
 0x331   : > { %v11284_v6 = vpack.c.bf16 %v2829_v40, %v2844_v49  ;;  %v2815_v42 = vrot.slane %v11076_v62, 7  ;;  %v2801_v38 = vrot.slane %v11110_v29, 7  ;;  %v2816_v61 = vrot.slane %v11114_v33, 7  ;;  %7679 = vmatprep.subr.bf16.mxu0 %v9017_v59 }
 0x332   : > { %13261 = vst [vmem:[#allocation27_spill] sm:$0xff] %v11274_v58  ;;  %13262 = vst [vmem:[#allocation29_spill] sm:$0xff] %v11282_v17  ;;  %v2802_v1 = vrot.slane %v11119_v43, 7  ;;  %v2817_v36 = vrot.slane %v11123_v19, 7  ;;  %v2803_v15 = vrot.slane %v11128_v44, 7  ;;  %v2818_v53 = vrot.slane %v11139_v9, 7 }
 0x333   : > { %13263 = vst [vmem:[#allocation30_spill] sm:$0xff] %v11284_v6  ;;  %v2830_v0 = vsel %vm768_vm5, %v2800_v56, %v2815_v42  ;;  %v2845_v21 = vsel %vm768_vm5, %v2815_v42, %v2800_v56  ;;  %v2804_v11 = vrot.slane %v11143_v20, 7  ;;  %v2831_v49 = vsel %vm768_vm5, %v2801_v38, %v2816_v61  ;;  %v13264_v58 = vld [vmem:[#allocation26_spill] sm:$0xff] }
 0x334   : > { %v11302_v40 = vpack.c.bf16 %v2830_v0, %v2845_v21  ;;  %v2846_v6 = vsel %vm768_vm5, %v2816_v61, %v2801_v38  ;;  %v2832_v17 = vsel %vm768_vm5, %v2802_v1, %v2817_v36  ;;  %7649 = vmatprep.mubr.bf16.mxu0 %v13264_v58  ;;  %v2847_v42 = vsel %vm768_vm5, %v2817_v36, %v2802_v1  ;;  %v11321_v38 = vld [vmem:[%s13090_s5 + $0x80] sm:$0xff]  }
 0x335   : > { %v11311_v56 = vpack.c.bf16 %v2831_v49, %v2846_v6  ;;  %v2833_v0 = vsel %vm768_vm5, %v2803_v15, %v2818_v53  ;;  %v2819_v21 = vrot.slane %v11151_v5, 7  ;;  %v11323_v61 = vpack.c.bf16 %v2832_v17, %v2847_v42  ;;  %7680 = vmatpush3.bf16.msra.mxu0 %v9017_v59 }
 0x336   : > { %v2848_v6 = vsel %vm768_vm5, %v2818_v53, %v2803_v15  ;;  %v2805_v10 = vrot.slane %v11155_v51, 7  ;;  %v2820_v1 = vrot.slane %v11159_v7, 7  ;;  %v2806_v13 = vrot.slane %v11173_v63, 7  ;;  %7713 = vmatprep.subr.bf16.mxu0 %v11321_v38 }
 0x337   : > { %13265 = vst [vmem:[#allocation32_spill] sm:$0xff] %v11311_v56  ;;  %v11329_v36 = vpack.c.bf16 %v2833_v0, %v2848_v6  ;;  %v2834_v49 = vsel %vm768_vm5, %v2804_v11, %v2819_v21  ;;  %v2849_v58 = vsel %vm768_vm5, %v2819_v21, %v2804_v11  ;;  %v2821_v53 = vrot.slane %v11193_v28, 7  ;;  %7650 = vmatmul.mubr.bf16.gmra.mrb[32].mxu0 %v11105_v45 }
 0x338   : > { %v11336_v56 = vpack.c.bf16 %v2834_v49, %v2849_v58  ;;  %v2835_v17 = vsel %vm768_vm5, %v2805_v10, %v2820_v1  ;;  %v2850_v15 = vsel %vm768_vm5, %v2820_v1, %v2805_v10  ;;  %v13266_v0 = vrot.slane %v11004_v22, 1  ;;  %7653 = vmatprep.mubr.bf16.mxu0 %v11135_v27 }
 0x339   : > { %v11343_v42 = vpack.c.bf16 %v2835_v17, %v2850_v15  ;;  %v13267_v6 = vrot.slane %v10926_v39, 1  ;;  %v2883_v10 = vrot.slane %v10935_v57, 1  ;;  %v2836_v59 = vsel %vm768_vm5, %v2806_v13, %v2821_v53 }
 0x33a   : > { %v13269_v21 = vmov %v13266_v0  ;;  %v2851_v1 = vsel %vm768_vm5, %v2821_v53, %v2806_v13  ;;  %v2898_v15 = vrot.slane %v11014_v23, 1  ;;  %v2884_v22 = vrot.slane %v10943_v35, 1 }
 0x33b   : > { %v2912_v11 = vsel %vm861_vm2, %v13267_v6, %v13266_v0  ;;  %v13268_v58 = vmov %v13267_v6  ;;  %v11366_v39 = vpack.c.bf16 %v2836_v59, %v2851_v1  ;;  %v2899_v0 = vrot.slane %v11022_v16, 1 }
 0x33c   : > { %v2927_v49 = vsel %vm861_vm2, %v13269_v21, %v13268_v58  ;;  %v2885_v57 = vrot.slane %v10946_v32, 1  ;;  %v2913_v6 = vsel %vm861_vm2, %v2883_v10, %v2898_v15  ;;  %v2928_v13 = vsel %vm861_vm2, %v2898_v15, %v2883_v10 }
 0x33d   : > { %v11363_v17 = vpack.c.bf16 %v2927_v49, %v2912_v11  ;;  %v2900_v53 = vrot.slane %v11026_v55, 1  ;;  %v2886_v23 = vrot.slane %v10949_v48, 1  ;;  %v11379_v11 = vpack.c.bf16 %v2928_v13, %v2913_v6 }
 0x33e   : > { %v2914_v35 = vsel %vm861_vm2, %v2884_v22, %v2899_v0  ;;  %v2929_v32 = vsel %vm861_vm2, %v2899_v0, %v2884_v22  ;;  %v2901_v16 = vrot.slane %v11052_v37, 1  ;;  %v2887_v55 = vrot.slane %v10954_v52, 1 }
 0x33f   : > { %v11386_v58 = vpack.c.bf16 %v2929_v32, %v2914_v35  ;;  %v2915_v21 = vsel %vm861_vm2, %v2885_v57, %v2900_v53  ;;  %v2930_v48 = vsel %vm861_vm2, %v2900_v53, %v2885_v57  ;;  %v2902_v37 = vrot.slane %v11056_v47, 1  ;;  %7654 = vmatmul.mubr.bf16.gmra.mrb[36].mxu0 %v11147_v34 }
 0x340   : > { %v11393_v49 = vpack.c.bf16 %v2930_v48, %v2915_v21  ;;  %v2916_v10 = vsel %vm861_vm2, %v2886_v23, %v2901_v16  ;;  %v2931_v59 = vsel %vm861_vm2, %v2901_v16, %v2886_v23  ;;  %v2888_v15 = vrot.slane %v10957_v4, 1  ;;  %7657 = vmatprep.mubr.bf16.mxu0 %v11168_v54 }
 0x341   : > { %v11400_v1 = vpack.c.bf16 %v2931_v59, %v2916_v10  ;;  %v2903_v22 = vrot.slane %v11060_v2, 1  ;;  %v2889_v0 = vrot.slane %v10960_v8, 1  ;;  %v2917_v52 = vsel %vm861_vm2, %v2887_v55, %v2902_v37 }
 0x342   : > { %v2932_v57 = vsel %vm861_vm2, %v2902_v37, %v2887_v55  ;;  %v2904_v6 = vrot.slane %v11067_v18, 1  ;;  %v2890_v13 = vrot.slane %v11072_v50, 1  ;;  %v2905_v8 = vrot.slane %v11076_v62, 1  ;;  %v11438_v55 = vpop.f32.mrb[0].mxu0 }
 0x343   : > { %v11411_v53 = vpack.c.bf16 %v2932_v57, %v2917_v52  ;;  %v2918_v47 = vsel %vm861_vm2, %v2888_v15, %v2903_v22  ;;  %v2933_v4 = vsel %vm861_vm2, %v2903_v22, %v2888_v15  ;;  %v2891_v50 = vrot.slane %v11110_v29, 1 }
 0x344   : > { %v11418_v2 = vpack.c.bf16 %v2933_v4, %v2918_v47  ;;  %v2919_v23 = vsel %vm861_vm2, %v2889_v0, %v2904_v6  ;;  %v2934_v18 = vsel %vm861_vm2, %v2904_v6, %v2889_v0  ;;  %v2920_v32 = vsel %vm861_vm2, %v2890_v13, %v2905_v8 }
 0x345   : > { %v11426_v35 = vpack.c.bf16 %v2934_v18, %v2919_v23  ;;  %v2935_v62 = vsel %vm861_vm2, %v2905_v8, %v2890_v13  ;;  %v2906_v16 = vrot.slane %v11114_v33, 1  ;;  %v2892_v48 = vrot.slane %v11119_v43, 1 }
 0x346   : > { %v11434_v21 = vpack.c.bf16 %v2935_v62, %v2920_v32  ;;  %v2907_v29 = vrot.slane %v11123_v19, 1  ;;  %v2893_v37 = vrot.slane %v11128_v44, 1  ;;  %v2908_v33 = vrot.slane %v11139_v9, 1 }
 0x347   : > { %v2921_v10 = vsel %vm861_vm2, %v2891_v50, %v2906_v16  ;;  %v2936_v59 = vsel %vm861_vm2, %v2906_v16, %v2891_v50  ;;  %v2894_v44 = vrot.slane %v11143_v20, 1  ;;  %v2909_v9 = vrot.slane %v11151_v5, 1  ;;  %7658 = vmatmul.mubr.bf16.gmra.mrb[40].mxu0 %v11180_v46 }
 0x348   : > { %v11446_v15 = vpack.c.bf16 %v2936_v59, %v2921_v10  ;;  %v2922_v22 = vsel %vm861_vm2, %v2892_v48, %v2907_v29  ;;  %v2937_v43 = vsel %vm861_vm2, %v2907_v29, %v2892_v48  ;;  %v2923_v0 = vsel %vm861_vm2, %v2893_v37, %v2908_v33  ;;  %7661 = vmatprep.mubr.bf16.mxu0 %v11184_v14 }
 0x349   : > { %v11452_v19 = vpack.c.bf16 %v2937_v43, %v2922_v22  ;;  %v2938_v52 = vsel %vm861_vm2, %v2908_v33, %v2893_v37  ;;  %v2895_v6 = vrot.slane %v11155_v51, 1  ;;  %v2910_v13 = vrot.slane %v11159_v7, 1 }
 0x34a   : > { %v11459_v57 = vpack.c.bf16 %v2938_v52, %v2923_v0  ;;  %v2896_v47 = vrot.slane %v11173_v63, 1  ;;  %v2911_v4 = vrot.slane %v11193_v28, 1  ;;  %v3727_v8 = vrot.slane %v11225_v31, 7  ;;  %v11479_v63 = vpop.f32.mrb[1].mxu0 }
 0x34b   : > { %v3728_v23 = vrot.slane %v11229_v26, 7  ;;  %v2924_v18 = vsel %vm861_vm2, %v2894_v44, %v2909_v9  ;;  %v2939_v20 = vsel %vm861_vm2, %v2909_v9, %v2894_v44  ;;  %v2925_v5 = vsel %vm861_vm2, %v2895_v6, %v2910_v13  ;;  %v11488_v62 = vpop.f32.mrb[2].mxu0 }
 0x34c   : > { %v2940_v51 = vsel %vm861_vm2, %v2910_v13, %v2895_v6  ;;  %v11477_v7 = vpack.c.bf16 %v2939_v20, %v2924_v18  ;;  %v2926_v50 = vsel %vm861_vm2, %v2896_v47, %v2911_v4  ;;  %v2941_v32 = vsel %vm861_vm2, %v2911_v4, %v2896_v47  ;;  %v11496_v10 = vpop.f32.mrb[3].mxu0  ;;  %v9019_v4 = vld [vmem:[%s13090_s5 + $0x88] sm:$0xff]  }
 0x34d   : > { %v11481_v28 = vpack.c.bf16 %v2940_v51, %v2925_v5  ;;  %v11490_v16 = vpack.c.bf16 %v2941_v32, %v2926_v50  ;;  %v3729_v48 = vsel %vm768_vm5, %v3727_v8, %v3728_v23  ;;  %v3730_v29 = vsel %vm768_vm5, %v3728_v23, %v3727_v8  ;;  %v11505_v22 = vpop.f32.mrb[4].mxu0  ;;  %v9020_v23 = vld [vmem:[%s13090_s5 + $0x90] sm:$0xff]   ;;  %v9022_v5 = vld [vmem:[%s13090_s5 + $0xa0] sm:$0xff]   ;;  %v9023_v51 = vld [vmem:[%s13090_s5 + $0xa8] sm:$0xff]  }
 0x34e   : > { %v11498_v59 = vpack.c.bf16 %v3729_v48, %v3730_v29  ;;  %v11502_v37 = vpack.c.bf16 %v11229_v26, %v11225_v31  ;;  %v3733_v33 = vrot.slane %v11225_v31, 1  ;;  %v3734_v43 = vrot.slane %v11229_v26, 1  ;;  %v11515_v9 = vpop.f32.mrb[5].mxu0  ;;  %v13274_v50 = vld [vmem:[#allocation27_spill] sm:$0xff]  ;;  %v9025_v48 = vld [vmem:[%s13090_s5 + $0xb8] sm:$0xff]  }
 0x34f   : > { %7662 = vmatmul.mubr.bf16.gmra.mrb[44].mxu0 %v11214_v24  ;;  %v13270_v6 = vmov 0.0|0.0   ;;  %v11518_v13 = vpop.f32.mrb[6].mxu0  ;;  %v9024_v32 = vld [vmem:[%s13090_s5 + $0xb0] sm:$0xff]  }
 0x350   : > { %v3735_v0 = vsel %vm861_vm2, %v3733_v33, %v3734_v43  ;;  %v3736_v52 = vsel %vm861_vm2, %v3734_v43, %v3733_v33  ;;  %7681 = vmatprep.mubr.bf16.mxu0 %v13270_v6  ;;  %v11520_v31 = vpop.f32.mrb[7].mxu0  ;;  %v13276_v33 = vld [vmem:[#allocation29_spill] sm:$0xff]  ;;  %v13304_v26 = vld [vmem:[#allocation19_spill] sm:$0xff] }
 0x351   : > { %v11512_v44 = vpack.c.bf16 %v3736_v52, %v3735_v0  ;;  %v11522_v47 = vpop.f32.mrb[8].mxu0  ;;  %v13278_v0 = vld [vmem:[#allocation30_spill] sm:$0xff] }
 0x352   : > { %v11541_v8 = vpop.f32.mrb[9].mxu0 }
 0x353   : > { %v11546_v18 = vpop.f32.mrb[10].mxu0 }
 0x354   : > { %v11548_v20 = vpop.f32.mrb[11].mxu0 }
 0x355   : > { %13273 = vst [vmem:[#allocation28_spill] sm:$0xff] %v11548_v20  ;;  %v13292_v20 = vld [vmem:[#allocation26_spill] sm:$0xff] }
 0x357   : > { %7682 = vmatmul.mubr.msk.bf16.vlgmr.msra.gmra.mrb[16].mxu0 %vm11527_vm14, %v11207_v25 }
 0x358   : > { %7714 = vmatpush3.bf16.msra.mxu0 %v11321_v38  ;;  %7685 = vmatprep.mubr.msk.bf16.mxu0 %vm11527_vm14, %v11234_v12  ;;  %v9021_v38 = vld [vmem:[%s13090_s5 + $0x98] sm:$0xff]  }
 0x359   : > { %7715 = vmatprep.subr.bf16.mxu0 %v9019_v4 }
 0x35c   : > { %7716 = vmatpush3.bf16.msra.mxu0 %v9019_v4  ;;  %v9026_v4 = vld [vmem:[%s13090_s5 + $0xc0] sm:$0xff]  }
 0x35d   : > { %7717 = vmatprep.subr.bf16.mxu0 %v9020_v23 }
 0x35f   : > { %7686 = vmatmul.mubr.msk.bf16.gmra.mrb[20].mxu0 %vm11527_vm14, %v11246_v60 }
 0x360   : > { %7689 = vmatprep.mubr.msk.bf16.mxu0 %vm11527_vm14, %v11248_v30  ;;  %7718 = vmatpush3.bf16.msra.mxu0 %v9020_v23 }
 0x361   : > { %7719 = vmatprep.subr.bf16.mxu0 %v9021_v38 }
 0x364   : > { %7720 = vmatpush3.bf16.msra.mxu0 %v9021_v38  ;;  %v13281_v38 = vld [vmem:[#allocation32_spill] sm:$0xff] }
 0x365   : > { %7721 = vmatprep.subr.bf16.mxu0 %v9022_v5 }
 0x367   : > { %7690 = vmatmul.mubr.msk.bf16.gmra.mrb[24].mxu0 %vm11527_vm14, %v11266_v41 }
 0x368   : > { %7693 = vmatprep.mubr.msk.bf16.mxu0 %vm11527_vm14, %v13274_v50  ;;  %7722 = vmatpush3.bf16.msra.mxu0 %v9022_v5  ;;  %v13289_v5 = vld [vmem:[#allocation33_spill] sm:$0xff] }
 0x369   : > { %7723 = vmatprep.subr.bf16.mxu0 %v9023_v51 }
 0x36a   : > { %v11577_v29 = vpop.f32.mrb[12].mxu0 }
 0x36b   : > { %13275 = vst [vmem:[#allocation35_spill] sm:$0xff] %v11577_v29  ;;  %v11582_v43 = vpop.f32.mrb[13].mxu0  ;;  %v13291_v29 = vld [vmem:[#allocation25_spill] sm:$0xff] }
 0x36c   : > { %7724 = vmatpush3.bf16.msra.mxu0 %v9023_v51  ;;  %13277 = vst [vmem:[#allocation38_spill] sm:$0xff] %v11582_v43  ;;  %v11587_v52 = vpop.f32.mrb[14].mxu0  ;;  %v13288_v43 = vld [vmem:[#allocation31_spill] sm:$0xff] }
 0x36d   : > { %7725 = vmatprep.subr.bf16.mxu0 %v9024_v32  ;;  %13279 = vst [vmem:[#allocation37_spill] sm:$0xff] %v11587_v52  ;;  %v11592_v23 = vpop.f32.mrb[15].mxu0  ;;  %v9044_v52 = vld [vmem:[%s13090_s5 + $0x150] sm:$0xff]  }
 0x36e   : > { %13280 = vst [vmem:[#allocation41_spill] sm:$0xff] %v11592_v23  ;;  %v9029_v23 = vld [vmem:[%s13090_s5 + $0xd8] sm:$0xff]  }
 0x36f   : > { %7694 = vmatmul.mubr.msk.bf16.gmra.mrb[28].mxu0 %vm11527_vm14, %v13276_v33 }
 0x370   : > { %7697 = vmatprep.mubr.msk.bf16.mxu0 %vm11527_vm14, %v13278_v0  ;;  %7726 = vmatpush3.bf16.msra.mxu0 %v9024_v32  ;;  %v9027_v32 = vld [vmem:[%s13090_s5 + $0xc8] sm:$0xff]  }
 0x371   : > { %7727 = vmatprep.subr.bf16.mxu0 %v9025_v48 }
 0x374   : > { %7728 = vmatpush3.bf16.msra.mxu0 %v9025_v48  ;;  %v9028_v48 = vld [vmem:[%s13090_s5 + $0xd0] sm:$0xff]  }
 0x375   : > { %7761 = vmatprep.subr.bf16.mxu0 %v9026_v4 }
 0x377   : > { %7698 = vmatmul.mubr.msk.bf16.gmra.mrb[32].mxu0 %vm11527_vm14, %v11302_v40 }
 0x378   : > { %7701 = vmatprep.mubr.msk.bf16.mxu0 %vm11527_vm14, %v13281_v38 }
 0x37f   : > { %7702 = vmatmul.mubr.msk.bf16.gmra.mrb[36].mxu0 %vm11527_vm14, %v11323_v61 }
 0x380   : > { %7705 = vmatprep.mubr.msk.bf16.mxu0 %vm11527_vm14, %v11329_v36 }
 0x387   : > { %7706 = vmatmul.mubr.msk.bf16.gmra.mrb[40].mxu0 %vm11527_vm14, %v11336_v56 }
 0x388   : > { %7709 = vmatprep.mubr.msk.bf16.mxu0 %vm11527_vm14, %v11343_v42 }
 0x38f   : > { %7710 = vmatmul.mubr.msk.bf16.gmra.mrb[44].mxu0 %vm11527_vm14, %v11366_v39 }
 0x390   : > { %7729 = vmatprep.mubr.bf16.mxu0 %v13270_v6 }
 0x397   : > { %7730 = vmatmul.mubr.msk.bf16.vlgmr.msra.gmra.mrb[16].mxu0 %vm11619_vm15, %v11363_v17 }
 0x398   : > { %7762 = vmatpush3.bf16.msra.mxu0 %v9026_v4  ;;  %7733 = vmatprep.mubr.msk.bf16.mxu0 %vm11619_vm15, %v11379_v11  ;;  %v9030_v4 = vld [vmem:[%s13090_s5 + $0xe0] sm:$0xff]  }
 0x399   : > { %7763 = vmatprep.subr.bf16.mxu0 %v9027_v32 }
 0x39c   : > { %7764 = vmatpush3.bf16.msra.mxu0 %v9027_v32  ;;  %v9031_v32 = vld [vmem:[%s13090_s5 + $0xe8] sm:$0xff]  }
 0x39d   : > { %7765 = vmatprep.subr.bf16.mxu0 %v9028_v48 }
 0x39f   : > { %7734 = vmatmul.mubr.msk.bf16.gmra.mrb[20].mxu0 %vm11619_vm15, %v11386_v58 }
 0x3a0   : > { %7737 = vmatprep.mubr.msk.bf16.mxu0 %vm11619_vm15, %v11393_v49  ;;  %7766 = vmatpush3.bf16.msra.mxu0 %v9028_v48  ;;  %v9032_v48 = vld [vmem:[%s13090_s5 + $0xf0] sm:$0xff]  }
 0x3a1   : > { %7767 = vmatprep.subr.bf16.mxu0 %v9029_v23 }
 0x3a4   : > { %7768 = vmatpush3.bf16.msra.mxu0 %v9029_v23  ;;  %v9033_v23 = vld [vmem:[%s13090_s5 + $0xf8] sm:$0xff]  }
 0x3a5   : > { %7769 = vmatprep.subr.bf16.mxu0 %v9030_v4 }
 0x3a7   : > { %7738 = vmatmul.mubr.msk.bf16.gmra.mrb[24].mxu0 %vm11619_vm15, %v11400_v1 }
 0x3a8   : > { %7741 = vmatprep.mubr.msk.bf16.mxu0 %vm11619_vm15, %v11411_v53  ;;  %7770 = vmatpush3.bf16.msra.mxu0 %v9030_v4  ;;  %v9034_v4 = vld [vmem:[%s13090_s5 + $0x100] sm:$0xff]  }
 0x3a9   : > { %7771 = vmatprep.subr.bf16.mxu0 %v9031_v32 }
 0x3ac   : > { %7772 = vmatpush3.bf16.msra.mxu0 %v9031_v32  ;;  %v9035_v32 = vld [vmem:[%s13090_s5 + $0x108] sm:$0xff]  }
 0x3ad   : > { %7773 = vmatprep.subr.bf16.mxu0 %v9032_v48 }
 0x3af   : > { %7742 = vmatmul.mubr.msk.bf16.gmra.mrb[28].mxu0 %vm11619_vm15, %v11418_v2 }
 0x3b0   : > { %7745 = vmatprep.mubr.msk.bf16.mxu0 %vm11619_vm15, %v11426_v35  ;;  %7774 = vmatpush3.bf16.msra.mxu0 %v9032_v48  ;;  %v9036_v48 = vld [vmem:[%s13090_s5 + $0x110] sm:$0xff]  }
 0x3b1   : > { %7775 = vmatprep.subr.bf16.mxu0 %v9033_v23 }
 0x3b4   : > { %7776 = vmatpush3.bf16.msra.mxu0 %v9033_v23  ;;  %v9038_v23 = vld [vmem:[%s13090_s5 + $0x120] sm:$0xff]  }
 0x3b5   : > { %7809 = vmatprep.subr.bf16.mxu0 %v9034_v4 }
 0x3b7   : > { %7746 = vmatmul.mubr.msk.bf16.gmra.mrb[32].mxu0 %vm11619_vm15, %v11434_v21 }
 0x3b8   : > { %7749 = vmatprep.mubr.msk.bf16.mxu0 %vm11619_vm15, %v11446_v15 }
 0x3bf   : > { %7750 = vmatmul.mubr.msk.bf16.gmra.mrb[36].mxu0 %vm11619_vm15, %v11452_v19 }
 0x3c0   : > { %7753 = vmatprep.mubr.msk.bf16.mxu0 %vm11619_vm15, %v11459_v57 }
 0x3c7   : > { %7754 = vmatmul.mubr.msk.bf16.gmra.mrb[40].mxu0 %vm11619_vm15, %v11477_v7 }
 0x3c8   : > { %7757 = vmatprep.mubr.msk.bf16.mxu0 %vm11619_vm15, %v11481_v28 }
 0x3cf   : > { %7758 = vmatmul.mubr.msk.bf16.gmra.mrb[44].mxu0 %vm11619_vm15, %v11490_v16 }
 0x3d0   : > { %7777 = vmatprep.mubr.msk.bf16.mxu0 %vm11527_vm14, %v11207_v25  ;;  %v9037_v25 = vld [vmem:[%s13090_s5 + $0x118] sm:$0xff]  }
 0x3d7   : > { %7778 = vmatmul.mubr.msk.bf16.vlgmr.msra.gmra.mrb[16].mxu0 %vm11527_vm14, %v11234_v12 }
 0x3d8   : > { %7810 = vmatpush3.bf16.msra.mxu0 %v9034_v4  ;;  %7781 = vmatprep.mubr.msk.bf16.mxu0 %vm11527_vm14, %v11246_v60  ;;  %v9039_v4 = vld [vmem:[%s13090_s5 + $0x128] sm:$0xff]  }
 0x3d9   : > { %7811 = vmatprep.subr.bf16.mxu0 %v9035_v32 }
 0x3dc   : > { %7812 = vmatpush3.bf16.msra.mxu0 %v9035_v32  ;;  %v9040_v32 = vld [vmem:[%s13090_s5 + $0x130] sm:$0xff]  }
 0x3dd   : > { %7813 = vmatprep.subr.bf16.mxu0 %v9036_v48 }
 0x3df   : > { %7782 = vmatmul.mubr.msk.bf16.gmra.mrb[20].mxu0 %vm11527_vm14, %v11248_v30 }
 0x3e0   : > { %7785 = vmatprep.mubr.msk.bf16.mxu0 %vm11527_vm14, %v11266_v41  ;;  %7814 = vmatpush3.bf16.msra.mxu0 %v9036_v48  ;;  %v9041_v48 = vld [vmem:[%s13090_s5 + $0x138] sm:$0xff]  }
 0x3e1   : > { %7815 = vmatprep.subr.bf16.mxu0 %v9037_v25 }
 0x3e4   : > { %7816 = vmatpush3.bf16.msra.mxu0 %v9037_v25  ;;  %v9042_v25 = vld [vmem:[%s13090_s5 + $0x140] sm:$0xff]  }
 0x3e5   : > { %7817 = vmatprep.subr.bf16.mxu0 %v9038_v23 }
 0x3e7   : > { %7786 = vmatmul.mubr.msk.bf16.gmra.mrb[24].mxu0 %vm11527_vm14, %v13274_v50 }
 0x3e8   : > { %7789 = vmatprep.mubr.msk.bf16.mxu0 %vm11527_vm14, %v13276_v33  ;;  %7818 = vmatpush3.bf16.msra.mxu0 %v9038_v23  ;;  %v13285_v23 = vld [vmem:[#allocation34_spill] sm:$0xff] }
 0x3e9   : > { %7819 = vmatprep.subr.bf16.mxu0 %v9039_v4 }
 0x3ec   : > { %7820 = vmatpush3.bf16.msra.mxu0 %v9039_v4  ;;  %v9043_v4 = vld [vmem:[%s13090_s5 + $0x148] sm:$0xff]  }
 0x3ed   : > { %7821 = vmatprep.subr.bf16.mxu0 %v9040_v32 }
 0x3ef   : > { %7790 = vmatmul.mubr.msk.bf16.gmra.mrb[28].mxu0 %vm11527_vm14, %v13278_v0 }
 0x3f0   : > { %7793 = vmatprep.mubr.msk.bf16.mxu0 %vm11527_vm14, %v11302_v40  ;;  %7822 = vmatpush3.bf16.msra.mxu0 %v9040_v32  ;;  %v13286_v32 = vld [vmem:[#allocation36_spill] sm:$0xff] }
 0x3f1   : > { %7823 = vmatprep.subr.bf16.mxu0 %v9041_v48 }
 0x3f4   : > { %7824 = vmatpush3.bf16.msra.mxu0 %v9041_v48  ;;  %v13287_v48 = vld [vmem:[#allocation39_spill] sm:$0xff] }
 0x3f5   : > { %7857 = vmatprep.subr.bf16.mxu0 %v9042_v25 }
 0x3f7   : > { %7794 = vmatmul.mubr.msk.bf16.gmra.mrb[32].mxu0 %vm11527_vm14, %v13281_v38 }
 0x3f8   : > { %7797 = vmatprep.mubr.msk.bf16.mxu0 %vm11527_vm14, %v11323_v61 }
 0x3ff   : > { %7798 = vmatmul.mubr.msk.bf16.gmra.mrb[36].mxu0 %vm11527_vm14, %v11329_v36 }
 0x400   : > { %7801 = vmatprep.mubr.msk.bf16.mxu0 %vm11527_vm14, %v11336_v56 }
 0x407   : > { %7802 = vmatmul.mubr.msk.bf16.gmra.mrb[40].mxu0 %vm11527_vm14, %v11343_v42 }
 0x408   : > { %7805 = vmatprep.mubr.msk.bf16.mxu0 %vm11527_vm14, %v11366_v39 }
 0x40f   : > { %7806 = vmatmul.mubr.msk.bf16.gmra.mrb[44].mxu0 %vm11527_vm14, %v11498_v59 }
 0x410   : > { %7825 = vmatprep.mubr.bf16.mxu0 %v13285_v23  ;;  %v9045_v23 = vld [vmem:[%s13090_s5 + $0x158] sm:$0xff]  }
 0x417   : > { %7826 = vmatmul.mubr.bf16.vlgmr.msra.gmra.mrb[16].mxu0 %v13286_v32 }
 0x418   : > { %7858 = vmatpush3.bf16.msra.mxu0 %v9042_v25  ;;  %7829 = vmatprep.mubr.bf16.mxu0 %v13287_v48  ;;  %v9046_v25 = vld [vmem:[%s13090_s5 + $0x160] sm:$0xff]  }
 0x419   : > { %7859 = vmatprep.subr.bf16.mxu0 %v9043_v4 }
 0x41c   : > { %7860 = vmatpush3.bf16.msra.mxu0 %v9043_v4  ;;  %v9047_v4 = vld [vmem:[%s13090_s5 + $0x168] sm:$0xff]  }
 0x41d   : > { %7861 = vmatprep.subr.bf16.mxu0 %v9044_v52 }
 0x41f   : > { %7830 = vmatmul.mubr.bf16.gmra.mrb[20].mxu0 %v13288_v43 }
 0x420   : > { %7833 = vmatprep.mubr.bf16.mxu0 %v13289_v5  ;;  %7862 = vmatpush3.bf16.msra.mxu0 %v9044_v52  ;;  %v9048_v52 = vld [vmem:[%s13090_s5 + $0x170] sm:$0xff]  }
 0x421   : > { %7863 = vmatprep.subr.bf16.mxu0 %v9045_v23 }
 0x424   : > { %7864 = vmatpush3.bf16.msra.mxu0 %v9045_v23  ;;  %v9049_v23 = vld [vmem:[%s13090_s5 + $0x178] sm:$0xff]  }
 0x425   : > { %7865 = vmatprep.subr.bf16.mxu0 %v9046_v25 }
 0x427   : > { %7834 = vmatmul.mubr.bf16.gmra.mrb[24].mxu0 %v13290_v3 }
 0x428   : > { %7837 = vmatprep.mubr.bf16.mxu0 %v13291_v29  ;;  %7866 = vmatpush3.bf16.msra.mxu0 %v9046_v25  ;;  %v9050_v25 = vld [vmem:[%s13090_s5 + $0x180] sm:$0xff]  }
 0x429   : > { %7867 = vmatprep.subr.bf16.mxu0 %v9047_v4 }
 0x42c   : > { %7868 = vmatpush3.bf16.msra.mxu0 %v9047_v4  ;;  %v9051_v4 = vld [vmem:[%s13090_s5 + $0x188] sm:$0xff]  }
 0x42d   : > { %7869 = vmatprep.subr.bf16.mxu0 %v9048_v52 }
 0x42f   : > { %7838 = vmatmul.mubr.bf16.gmra.mrb[28].mxu0 %v13292_v20 }
 0x430   : > { %7841 = vmatprep.mubr.bf16.mxu0 %v11105_v45  ;;  %7870 = vmatpush3.bf16.msra.mxu0 %v9048_v52  ;;  %v9052_v52 = vld [vmem:[%s13090_s5 + $0x190] sm:$0xff]  }
 0x431   : > { %7871 = vmatprep.subr.bf16.mxu0 %v9049_v23 }
 0x434   : > { %7872 = vmatpush3.bf16.msra.mxu0 %v9049_v23  ;;  %v9054_v23 = vld [vmem:[%s13090_s5 + $0x1a0] sm:$0xff]  }
 0x435   : > { %7905 = vmatprep.subr.bf16.mxu0 %v9050_v25 }
 0x437   : > { %7842 = vmatmul.mubr.bf16.gmra.mrb[32].mxu0 %v11135_v27 }
 0x438   : > { %7845 = vmatprep.mubr.bf16.mxu0 %v11147_v34 }
 0x43f   : > { %7846 = vmatmul.mubr.bf16.gmra.mrb[36].mxu0 %v11168_v54 }
 0x440   : > { %7849 = vmatprep.mubr.bf16.mxu0 %v11180_v46 }
 0x447   : > { %7850 = vmatmul.mubr.bf16.gmra.mrb[40].mxu0 %v11184_v14 }
 0x448   : > { %7853 = vmatprep.mubr.bf16.mxu0 %v11214_v24 }
 0x44f   : > { %7854 = vmatmul.mubr.bf16.gmra.mrb[44].mxu0 %v11502_v37 }
 0x450   : > { %7873 = vmatprep.mubr.msk.bf16.mxu0 %vm11619_vm15, %v11363_v17  ;;  %v9053_v17 = vld [vmem:[%s13090_s5 + $0x198] sm:$0xff]  }
 0x457   : > { %7874 = vmatmul.mubr.msk.bf16.vlgmr.msra.gmra.mrb[16].mxu0 %vm11619_vm15, %v11379_v11 }
 0x458   : > { %7906 = vmatpush3.bf16.msra.mxu0 %v9050_v25  ;;  %7877 = vmatprep.mubr.msk.bf16.mxu0 %vm11619_vm15, %v11386_v58  ;;  %v9055_v25 = vld [vmem:[%s13090_s5 + $0x1a8] sm:$0xff]  }
 0x459   : > { %7907 = vmatprep.subr.bf16.mxu0 %v9051_v4 }
 0x45c   : > { %7908 = vmatpush3.bf16.msra.mxu0 %v9051_v4  ;;  %v9056_v4 = vld [vmem:[%s13090_s5 + $0x1b0] sm:$0xff]  }
 0x45d   : > { %7909 = vmatprep.subr.bf16.mxu0 %v9052_v52 }
 0x45f   : > { %7878 = vmatmul.mubr.msk.bf16.gmra.mrb[20].mxu0 %vm11619_vm15, %v11393_v49 }
 0x460   : > { %7881 = vmatprep.mubr.msk.bf16.mxu0 %vm11619_vm15, %v11400_v1  ;;  %7910 = vmatpush3.bf16.msra.mxu0 %v9052_v52  ;;  %v9057_v52 = vld [vmem:[%s13090_s5 + $0x1b8] sm:$0xff]  }
 0x461   : > { %7911 = vmatprep.subr.bf16.mxu0 %v9053_v17 }
 0x464   : > { %7912 = vmatpush3.bf16.msra.mxu0 %v9053_v17  ;;  %v9058_v17 = vld [vmem:[%s13090_s5 + $0x1c0] sm:$0xff]  }
 0x465   : > { %7913 = vmatprep.subr.bf16.mxu0 %v9054_v23 }
 0x467   : > { %7882 = vmatmul.mubr.msk.bf16.gmra.mrb[24].mxu0 %vm11619_vm15, %v11411_v53 }
 0x468   : > { %7885 = vmatprep.mubr.msk.bf16.mxu0 %vm11619_vm15, %v11418_v2  ;;  %7914 = vmatpush3.bf16.msra.mxu0 %v9054_v23  ;;  %v9059_v23 = vld [vmem:[%s13090_s5 + $0x1c8] sm:$0xff]  }
 0x469   : > { %7915 = vmatprep.subr.bf16.mxu0 %v9055_v25 }
 0x46c   : > { %7916 = vmatpush3.bf16.msra.mxu0 %v9055_v25  ;;  %v9060_v25 = vld [vmem:[%s13090_s5 + $0x1d0] sm:$0xff]  }
 0x46d   : > { %7917 = vmatprep.subr.bf16.mxu0 %v9056_v4 }
 0x46f   : > { %7886 = vmatmul.mubr.msk.bf16.gmra.mrb[28].mxu0 %vm11619_vm15, %v11426_v35 }
 0x470   : > { %7889 = vmatprep.mubr.msk.bf16.mxu0 %vm11619_vm15, %v11434_v21  ;;  %7918 = vmatpush3.bf16.msra.mxu0 %v9056_v4 }
 0x471   : > { %7919 = vmatprep.subr.bf16.mxu0 %v9057_v52 }
 0x474   : > { %7920 = vmatpush3.bf16.msra.mxu0 %v9057_v52 }
 0x475   : > { %7953 = vmatprep.subr.bf16.mxu0 %v9058_v17 }
 0x477   : > { %7890 = vmatmul.mubr.msk.bf16.gmra.mrb[32].mxu0 %vm11619_vm15, %v11446_v15 }
 0x478   : > { %7893 = vmatprep.mubr.msk.bf16.mxu0 %vm11619_vm15, %v11452_v19 }
 0x47f   : > { %7894 = vmatmul.mubr.msk.bf16.gmra.mrb[36].mxu0 %vm11619_vm15, %v11459_v57 }
 0x480   : > { %7897 = vmatprep.mubr.msk.bf16.mxu0 %vm11619_vm15, %v11477_v7 }
 0x487   : > { %7898 = vmatmul.mubr.msk.bf16.gmra.mrb[40].mxu0 %vm11619_vm15, %v11481_v28 }
 0x488   : > { %7901 = vmatprep.mubr.msk.bf16.mxu0 %vm11619_vm15, %v11490_v16 }
 0x48f   : > { %7902 = vmatmul.mubr.msk.bf16.gmra.mrb[44].mxu0 %vm11619_vm15, %v11512_v44 }
 0x490   : > { %7921 = vmatprep.mubr.msk.bf16.mxu0 %vm11527_vm14, %v11234_v12  ;;  %v9061_v12 = vld [vmem:[%s13090_s5 + $0x1d8] sm:$0xff]  }
 0x497   : > { %7922 = vmatmul.mubr.msk.bf16.vlgmr.msra.gmra.mrb[16].mxu0 %vm11527_vm14, %v11246_v60  ;;  %v9062_v60 = vld [vmem:[%s13090_s5 + $0x1e0] sm:$0xff]  }
 0x498   : > { %7954 = vmatpush3.bf16.msra.mxu0 %v9058_v17  ;;  %7925 = vmatprep.mubr.msk.bf16.mxu0 %vm11527_vm14, %v11248_v30  ;;  %v9063_v30 = vld [vmem:[%s13090_s5 + $0x1e8] sm:$0xff]  }
 0x499   : > { %7955 = vmatprep.subr.bf16.mxu0 %v9059_v23 }
 0x49c   : > { %7956 = vmatpush3.bf16.msra.mxu0 %v9059_v23 }
 0x49d   : > { %7957 = vmatprep.subr.bf16.mxu0 %v9060_v25 }
 0x49f   : > { %7926 = vmatmul.mubr.msk.bf16.gmra.mrb[20].mxu0 %vm11527_vm14, %v11266_v41  ;;  %v9064_v41 = vld [vmem:[%s13090_s5 + $0x1f0] sm:$0xff]  }
 0x4a0   : > { %7929 = vmatprep.mubr.msk.bf16.mxu0 %vm11527_vm14, %v13274_v50  ;;  %7958 = vmatpush3.bf16.msra.mxu0 %v9060_v25  ;;  %v9065_v50 = vld [vmem:[%s13090_s5 + $0x1f8] sm:$0xff]  }
 0x4a1   : > { %7959 = vmatprep.subr.bf16.mxu0 %v9061_v12 }
 0x4a4   : > { %7960 = vmatpush3.bf16.msra.mxu0 %v9061_v12 }
 0x4a5   : > { %7961 = vmatprep.subr.bf16.mxu0 %v9062_v60 }
 0x4a7   : > { %7930 = vmatmul.mubr.msk.bf16.gmra.mrb[24].mxu0 %vm11527_vm14, %v13276_v33  ;;  %v9066_v33 = vld [vmem:[%s13090_s5 + $0x200] sm:$0xff]  }
 0x4a8   : > { %7933 = vmatprep.mubr.msk.bf16.mxu0 %vm11527_vm14, %v13278_v0  ;;  %7962 = vmatpush3.bf16.msra.mxu0 %v9062_v60 }
 0x4a9   : > { %7963 = vmatprep.subr.bf16.mxu0 %v9063_v30 }
 0x4ac   : > { %7964 = vmatpush3.bf16.msra.mxu0 %v9063_v30 }
 0x4ad   : > { %7965 = vmatprep.subr.bf16.mxu0 %v9064_v41 }
 0x4af   : > { %7934 = vmatmul.mubr.msk.bf16.gmra.mrb[28].mxu0 %vm11527_vm14, %v11302_v40  ;;  %v9067_v40 = vld [vmem:[%s13090_s5 + $0x208] sm:$0xff]  }
 0x4b0   : > { %7937 = vmatprep.mubr.msk.bf16.mxu0 %vm11527_vm14, %v13281_v38  ;;  %7966 = vmatpush3.bf16.msra.mxu0 %v9064_v41  ;;  %v13305_v38 = vld [vmem:[#allocation20_spill] sm:$0xff] }
 0x4b1   : > { %7967 = vmatprep.subr.bf16.mxu0 %v9065_v50 }
 0x4b4   : > { %7968 = vmatpush3.bf16.msra.mxu0 %v9065_v50  ;;  %v13306_v50 = vld [vmem:[#allocation21_spill] sm:$0xff] }
 0x4b5   : > { %8001 = vmatprep.subr.bf16.mxu0 %v9066_v33 }
 0x4b7   : > { %7938 = vmatmul.mubr.msk.bf16.gmra.mrb[32].mxu0 %vm11527_vm14, %v11323_v61  ;;  %v9069_v61 = vld [vmem:[%s13090_s5 + $0x218] sm:$0xff]  }
 0x4b8   : > { %7941 = vmatprep.mubr.msk.bf16.mxu0 %vm11527_vm14, %v11329_v36  ;;  %v9070_v36 = vld [vmem:[%s13090_s5 + $0x220] sm:$0xff]  }
 0x4bf   : > { %7942 = vmatmul.mubr.msk.bf16.gmra.mrb[36].mxu0 %vm11527_vm14, %v11336_v56  ;;  %v9068_v56 = vld [vmem:[%s13090_s5 + $0x210] sm:$0xff]  }
 0x4c0   : > { %7945 = vmatprep.mubr.msk.bf16.mxu0 %vm11527_vm14, %v11343_v42  ;;  %v9071_v42 = vld [vmem:[%s13090_s5 + $0x228] sm:$0xff]  }
 0x4c7   : > { %7946 = vmatmul.mubr.msk.bf16.gmra.mrb[40].mxu0 %vm11527_vm14, %v11366_v39  ;;  %v9073_v39 = vld [vmem:[%s13090_s5 + $0x238] sm:$0xff]  }
 0x4c8   : > { %7949 = vmatprep.mubr.msk.bf16.mxu0 %vm11527_vm14, %v11498_v59  ;;  %v13302_v59 = vld [vmem:[#allocation17_spill] sm:$0xff] }
 0x4cf   : > { %7950 = vmatmul.mubr.bf16.gmra.mrb[44].mxu0 %v13270_v6 }
 0x4d0   : > { %7969 = vmatprep.mubr.bf16.mxu0 %v13286_v32 }
 0x4d7   : > { %7970 = vmatmul.mubr.bf16.vlgmr.msra.gmra.mrb[16].mxu0 %v13287_v48 }
 0x4d8   : > { %8002 = vmatpush3.bf16.msra.mxu0 %v9066_v33  ;;  %7973 = vmatprep.mubr.bf16.mxu0 %v13288_v43 }
 0x4d9   : > { %8003 = vmatprep.subr.bf16.mxu0 %v9067_v40 }
 0x4dc   : > { %8004 = vmatpush3.bf16.msra.mxu0 %v9067_v40 }
 0x4dd   : > { %8005 = vmatprep.subr.bf16.mxu0 %v9068_v56 }
 0x4df   : > { %7974 = vmatmul.mubr.bf16.gmra.mrb[20].mxu0 %v13289_v5 }
 0x4e0   : > { %7977 = vmatprep.mubr.bf16.mxu0 %v13290_v3  ;;  %8006 = vmatpush3.bf16.msra.mxu0 %v9068_v56  ;;  %v9072_v3 = vld [vmem:[%s13090_s5 + $0x230] sm:$0xff]  }
 0x4e1   : > { %8007 = vmatprep.subr.bf16.mxu0 %v9069_v61  ;;  %v13308_v56 = vld [vmem:[#allocation23_spill] sm:$0xff] }
 0x4e4   : > { %8008 = vmatpush3.bf16.msra.mxu0 %v9069_v61 }
 0x4e5   : > { %8009 = vmatprep.subr.bf16.mxu0 %v9070_v36 }
 0x4e7   : > { %7978 = vmatmul.mubr.bf16.gmra.mrb[24].mxu0 %v13291_v29 }
 0x4e8   : > { %7981 = vmatprep.mubr.bf16.mxu0 %v13292_v20  ;;  %8010 = vmatpush3.bf16.msra.mxu0 %v9070_v36 }
 0x4e9   : > { %8011 = vmatprep.subr.bf16.mxu0 %v9071_v42 }
 0x4ec   : > { %8012 = vmatpush3.bf16.msra.mxu0 %v9071_v42 }
 0x4ed   : > { %8013 = vmatprep.subr.bf16.mxu0 %v9072_v3 }
 0x4ef   : > { %7982 = vmatmul.mubr.bf16.gmra.mrb[28].mxu0 %v11105_v45  ;;  %v9074_v45 = vld [vmem:[%s13092_s7 + $0x8] sm:$0x3f]  }
 0x4f0   : > { %7985 = vmatprep.mubr.bf16.mxu0 %v11135_v27  ;;  %8014 = vmatpush3.bf16.msra.mxu0 %v9072_v3  ;;  %v5976_v27 = vsel %vm1352_vm1, %v9074_v45, 0 }
 0x4f1   : > { %8015 = vmatprep.subr.bf16.mxu0 %v9073_v39  ;;  %8603 = vmatprep.subr.msk.bf16.mxu1 %vm1352_vm1, %v9074_v45 }
 0x4f2   : > { %8050 = vmatpush3.bf16.msra.mxu1 %v5976_v27 }
 0x4f4   : > { %8016 = vmatpush3.bf16.msra.mxu0 %v9073_v39 }
 0x4f7   : > { %7986 = vmatmul.mubr.bf16.gmra.mrb[32].mxu0 %v11147_v34  ;;  %v12037_v34 = vld [vmem:[%s13087_s2] ss:$0 sm:$0xff] }
 0x4f8   : > { %7989 = vmatprep.mubr.bf16.mxu0 %v11168_v54  ;;  %v13293_v54 = vld [vmem:[#allocation7_spill] sm:$0xff]  ;;  %v12085_v20 = vadd.f32 %v12037_v34, %v13304_v26  ;;  %v12092_v5 = vadd.f32 %v13305_v38, %v12037_v34  ;;  %v580_v48 = vadd.f32 %v11438_v55, %v12037_v34  ;;  %v572_v4 = vadd.f32 %v12037_v34, %v11479_v63  ;;  %v12112_v63 = vld [vmem:[%s13091_s6] ss:$0 sm:$0xff] }
 0x4f9   : > { %v583_v25 = vadd.f32 %v11488_v62, %v12037_v34  ;;  %v12117_v33 = vadd.f32 %v12037_v34, %v13306_v50  ;;  %v13307_v62 = vld [vmem:[#allocation22_spill] sm:$0xff]  ;;  %v12125_v61 = vadd.f32 %v12037_v34, %v13308_v56  ;;  %v575_v3 = vadd.f32 %v12037_v34, %v11496_v10 }
 0x4fa   : > { %v12121_v40 = vadd.f32 %v13307_v62, %v12037_v34  ;;  %v700_v36 = vmax.f32 %v580_v48, 0.0  ;;  %v698_v42 = vmax.f32 %v572_v4, 0.0  ;;  %v596_v39 = vadd.f32 %v11505_v22, %v12037_v34 }
 0x4fb   : > { %v701_v27 = vmax.f32 %v583_v25, 0.0  ;;  %v12140_v10 = vadd.f32 %v11522_v47, %v12037_v34  ;;  %v12144_v22 = vadd.f32 %v12037_v34, %v11541_v8 }
 0x4ff   : > { %7990 = vmatmul.mubr.bf16.gmra.mrb[36].mxu0 %v11180_v46  ;;  %v12041_v46 = vadd.f32 %v13293_v54, %v12037_v34  ;;  %v588_v54 = vadd.f32 %v12037_v34, %v11515_v9 }
 0x500   : > { %7993 = vmatprep.mubr.bf16.mxu0 %v11184_v14  ;;  %v13294_v14 = vld [vmem:[#allocation8_spill] sm:$0xff] }
 0x501   : > { %v716_v29 = vmax.f32 %v12041_v46, 0.0  ;;  %v702_v38 = vmax.f32 %v588_v54, 0.0 }
 0x507   : > { %7994 = vmatmul.mubr.bf16.gmra.mrb[40].mxu0 %v11214_v24  ;;  %v12045_v24 = vadd.f32 %v12037_v34, %v13294_v14  ;;  %v599_v14 = vadd.f32 %v11518_v13, %v12037_v34  ;;  %v12149_v13 = vadd.f32 %v11546_v18, %v12037_v34  ;;  %v708_v18 = vmax.f32 %v12140_v10, 0.0 }
 0x508   : > { %7997 = vmatprep.mubr.bf16.mxu0 %v11502_v37  ;;  %v12077_v37 = vadd.f32 %v12037_v34, %v13302_v59  ;;  %v699_v59 = vmax.f32 %v575_v3, 0.0 }
 0x509   : > { %v714_v43 = vmax.f32 %v12045_v24, 0.0  ;;  %v705_v48 = vmax.f32 %v599_v14, 0.0 }
 0x50f   : > { %7998 = vmatmul.mubr.bf16.gmra.mrb[44].mxu0 %v13270_v6 }
 0x510   : > { %8017 = vmatprep.mubr.msk.bf16.mxu0 %vm11619_vm15, %v11379_v11  ;;  %v13295_v11 = vld [vmem:[#allocation9_spill] sm:$0xff] }
 0x517   : > { %8018 = vmatmul.mubr.msk.bf16.vlgmr.msra.gmra.mrb[16].mxu0 %vm11619_vm15, %v11386_v58  ;;  %v12049_v58 = vadd.f32 %v13295_v11, %v12037_v34 }
 0x518   : > { %8021 = vmatprep.mubr.msk.bf16.mxu0 %vm11619_vm15, %v11393_v49  ;;  %v13296_v49 = vld [vmem:[#allocation10_spill] sm:$0xff] }
 0x519   : > { %v717_v0 = vmax.f32 %v12049_v58, 0.0 }
 0x51f   : > { %8022 = vmatmul.mubr.msk.bf16.gmra.mrb[20].mxu0 %vm11619_vm15, %v11400_v1  ;;  %v12053_v1 = vadd.f32 %v12037_v34, %v13296_v49 }
 0x520   : > { %8025 = vmatprep.mubr.msk.bf16.mxu0 %vm11619_vm15, %v11411_v53  ;;  %v13297_v53 = vld [vmem:[#allocation11_spill] sm:$0xff] }
 0x521   : > { %v715_v51 = vmax.f32 %v12053_v1, 0.0 }
 0x527   : > { %8026 = vmatmul.mubr.msk.bf16.gmra.mrb[24].mxu0 %vm11619_vm15, %v11418_v2  ;;  %v12057_v2 = vadd.f32 %v13297_v53, %v12037_v34  ;;  %v591_v53 = vadd.f32 %v12037_v34, %v11520_v31 }
 0x528   : > { %8029 = vmatprep.mubr.msk.bf16.mxu0 %vm11619_vm15, %v11426_v35  ;;  %v13298_v35 = vld [vmem:[#allocation12_spill] sm:$0xff] }
 0x529   : > { %v720_v32 = vmax.f32 %v12057_v2, 0.0  ;;  %v703_v50 = vmax.f32 %v591_v53, 0.0 }
 0x52f   : > { %8030 = vmatmul.mubr.msk.bf16.gmra.mrb[28].mxu0 %vm11619_vm15, %v11434_v21  ;;  %v12061_v21 = vadd.f32 %v12037_v34, %v13298_v35 }
 0x530   : > { %8033 = vmatprep.mubr.msk.bf16.mxu0 %vm11619_vm15, %v11446_v15  ;;  %v13299_v15 = vld [vmem:[#allocation13_spill] sm:$0xff] }
 0x531   : > { %v718_v52 = vmax.f32 %v12061_v21, 0.0 }
 0x537   : > { %8034 = vmatmul.mubr.msk.bf16.gmra.mrb[32].mxu0 %vm11619_vm15, %v11452_v19  ;;  %v12065_v19 = vadd.f32 %v13299_v15, %v12037_v34  ;;  %v13309_v15 = vld [vmem:[#allocation28_spill] sm:$0xff] }
 0x538   : > { %8037 = vmatprep.mubr.msk.bf16.mxu0 %vm11619_vm15, %v11459_v57  ;;  %v13300_v57 = vld [vmem:[#allocation14_spill] sm:$0xff] }
 0x539   : > { %v721_v17 = vmax.f32 %v12065_v19, 0.0 }
 0x53f   : > { %8038 = vmatmul.mubr.msk.bf16.gmra.mrb[36].mxu0 %vm11619_vm15, %v11477_v7  ;;  %v12069_v7 = vadd.f32 %v12037_v34, %v13300_v57  ;;  %v12153_v57 = vadd.f32 %v12037_v34, %v13309_v15 }
 0x540   : > { %8041 = vmatprep.mubr.msk.bf16.mxu0 %vm11619_vm15, %v11481_v28  ;;  %v13301_v28 = vld [vmem:[#allocation16_spill] sm:$0xff] }
 0x541   : > { %v707_v3 = vmax.f32 %v12153_v57, 0.0 }
 0x547   : > { %8042 = vmatmul.mubr.msk.bf16.gmra.mrb[40].mxu0 %vm11619_vm15, %v11490_v16  ;;  %v12073_v16 = vadd.f32 %v13301_v28, %v12037_v34 }
 0x548   : > { %8045 = vmatprep.mubr.msk.bf16.mxu0 %vm11619_vm15, %v11512_v44  ;;  %v13303_v44 = vld [vmem:[#allocation18_spill] sm:$0xff] }
 0x54f   : > { %8046 = vmatmul.mubr.bf16.gmra.mrb[44].mxu0 %v13270_v6  ;;  %v12081_v6 = vadd.f32 %v13303_v44, %v12037_v34  ;;  %v704_v44 = vmax.f32 %v596_v39, 0.0 }
 0x5ea   : > { %v8019_v45 = vpop.f32.mrb[16].mxu0 }
 0x5eb   : > { %v5294_v11 = vadd.f32 %v8019_v45, %v12112_v63  ;;  %v5127_v49 = vpop.f32.mrb[17].mxu0  ;;  %v709_v45 = vmax.f32 %v12149_v13, 0.0 }
 0x5ec   : > { %v5292_v35 = vadd.f32 %v12112_v63, %v5127_v49  ;;  %v8020_v9 = vpop.f32.mrb[18].mxu0 }
 0x5ed   : > { %v5326_v31 = vadd.f32 %v5294_v11, %v700_v36  ;;  %v5295_v28 = vadd.f32 %v8020_v9, %v12112_v63  ;;  %v5130_v47 = vpop.f32.mrb[19].mxu0  ;;  %v706_v36 = vmax.f32 %v12144_v22, 0.0 }
 0x5ee   : > { %v5324_v26 = vadd.f32 %v5292_v35, %v698_v42  ;;  %v5293_v8 = vadd.f32 %v12112_v63, %v5130_v47  ;;  %v13310_v42 = vld [vmem:[#allocation35_spill] sm:$0xff] }
 0x5ef   : > { %v5358_v4 = vmax.f32 %v5326_v31, 0.0  ;;  %v5327_v25 = vadd.f32 %v5295_v28, %v701_v27  ;;  %v12165_v11 = vadd.f32 %v13310_v42, %v12037_v34 }
 0x5f0   : > { %v12158_v62 = vmax.f32 %v5324_v26, 0.0  ;;  %v5325_v56 = vadd.f32 %v5293_v8, %v699_v59 }
 0x5f1   : > { %v5359_v39 = vmax.f32 %v5327_v25, 0.0  ;;  %v5390_v54 = vrot.slane %v5358_v4, 7  ;;  %v5480_v14 = vrot.slane %v5358_v4, 1 }
 0x5f2   : > { %v12167_v27 = vmax.f32 %v5325_v56, 0.0  ;;  %v8023_v49 = vpop.f32.mrb[20].mxu0  ;;  %v5479_v53 = vrot.slane %v12158_v62, 1 }
 0x5f3   : > { %v5495_v35 = vrot.slane %v5359_v39, 1  ;;  %v5298_v9 = vadd.f32 %v8023_v49, %v12112_v63  ;;  %v5143_v15 = vpop.f32.mrb[21].mxu0  ;;  %v8817_v31 = vpack.i.bf16 %v5359_v39, %v5358_v4  ;;  %v5405_v28 = vrot.slane %v5359_v39, 7 }
 0x5f4   : > { %v5494_v47 = vrot.slane %v12167_v27, 1  ;;  %v5296_v59 = vadd.f32 %v12112_v63, %v5143_v15  ;;  %v8024_v26 = vpop.f32.mrb[22].mxu0  ;;  %v8822_v8 = vpack.i.bf16 %v12167_v27, %v12158_v62 }
 0x5f5   : > { %v5330_v25 = vadd.f32 %v5298_v9, %v704_v44  ;;  %v5299_v56 = vadd.f32 %v8024_v26, %v12112_v63  ;;  %8818 = vrot.lane.b32.xlu1 %v8817_v31, %s9165_s17  ;;  %v5146_v42 = vpop.f32.mrb[23].mxu0  ;;  %v5510_v49 = vsel %vm861_vm2, %v5480_v14, %v5495_v35  ;;  %v5525_v4 = vsel %vm861_vm2, %v5495_v35, %v5480_v14 }
 0x5f6   : > { %v5328_v39 = vadd.f32 %v5296_v59, %v702_v38  ;;  %v5297_v55 = vadd.f32 %v12112_v63, %v5146_v42  ;;  %8823 = vrot.lane.b32.xlu0 %v8822_v8, %s9165_s17  ;;  %v5542_v30 = vsel %vm737_vm3, %v5525_v4, 0.0  ;;  %v5509_v44 = vsel %vm861_vm2, %v5479_v53, %v5494_v47  ;;  %v13313_v59 = vld [vmem:[#allocation38_spill] sm:$0xff] }
 0x5f7   : > { %v12187_v9 = vmax.f32 %v5330_v25, 0.0  ;;  %v5331_v31 = vadd.f32 %v5299_v56, %v705_v48  ;;  %v8827_v26 = vpack.i.bf16 %v5542_v30, %v5510_v49  ;;  %v5524_v60 = vsel %vm861_vm2, %v5494_v47, %v5479_v53  ;;  %v13314_v48 = vld [vmem:[#allocation37_spill] sm:$0xff] }
 0x5f8   : > { %v12191_v12 = vmax.f32 %v5328_v39, 0.0  ;;  %v5329_v38 = vadd.f32 %v5297_v55, %v703_v50  ;;  %v5540_v14 = vsel %vm737_vm3, %v5524_v60, 0.0  ;;  %v12197_v35 = vsel %vm768_vm5, %v5390_v54, %v5405_v28  ;;  %v12213_v60 = vld [vmem:[%s13092_s7] sm:$0x3f]  }
 0x5f9   : > { %v12201_v8 = vadd.f32 %v12037_v34, %v13313_v59  ;;  %v12205_v30 = vadd.f32 %v13314_v48, %v12037_v34  ;;  %v12207_v25 = vmax.f32 %v5331_v31, 0.0  ;;  %8828 = vrot.lane.b32.xlu1 %v8827_v26, %s9166_s21  ;;  %v8832_v55 = vpack.i.bf16 %v5540_v14, %v5509_v44  ;;  %v13315_v50 = vld [vmem:[#allocation41_spill] sm:$0xff]  ;;  %8604 = vmatprep.subr.msk.bf16.mxu1 %vm1352_vm1, %v12213_v60 }
 0x5fa   : > { %v12217_v53 = vadd.f32 %v12037_v34, %v13315_v50  ;;  %v5404_v47 = vrot.slane %v12167_v27, 7  ;;  %v12220_v56 = vmax.f32 %v5329_v38, 0.0  ;;  %v8027_v42 = vpop.f32.mrb[24].mxu0  ;;  %v12224_v49 = vsel %vm768_vm5, %v5405_v28, %v5390_v54 }
 0x5fb   : > { %v5482_v4 = vrot.slane %v12187_v9, 1  ;;  %v5497_v39 = vrot.slane %v12207_v25, 1  ;;  %8833 = vrot.lane.b32.xlu0 %v8832_v55, %s9166_s21  ;;  %v5302_v44 = vadd.f32 %v8027_v42, %v12112_v63  ;;  %v5159_v31 = vpop.f32.mrb[25].mxu0  ;;  %v8837_v34 = vpack.i.bf16 %v12207_v25, %v12187_v9 }
 0x5fc   : > { %v5481_v26 = vrot.slane %v12191_v12, 1  ;;  %v5496_v54 = vrot.slane %v12220_v56, 1  ;;  %v5300_v28 = vadd.f32 %v12112_v63, %v5159_v31  ;;  %v8028_v38 = vpop.f32.mrb[26].mxu0  ;;  %v8842_v14 = vpack.i.bf16 %v12220_v56, %v12191_v12 }
 0x5fd   : > { %v5334_v59 = vadd.f32 %v5302_v44, %v708_v18  ;;  %v5303_v48 = vadd.f32 %v8028_v38, %v12112_v63  ;;  %8838 = vrot.lane.b32.xlu1 %v8837_v34, %s9165_s17  ;;  %v5162_v55 = vpop.f32.mrb[27].mxu0  ;;  %v5512_v50 = vsel %vm861_vm2, %v5482_v4, %v5497_v39  ;;  %v5527_v42 = vsel %vm861_vm2, %v5497_v39, %v5482_v4 }
 0x5fe   : > { %v5332_v31 = vadd.f32 %v5300_v28, %v706_v36  ;;  %v5301_v23 = vadd.f32 %v12112_v63, %v5162_v55  ;;  %v5546_v10 = vsel %vm737_vm3, %v5527_v42, 0.0  ;;  %v5511_v18 = vsel %vm861_vm2, %v5481_v26, %v5496_v54 }
 0x5ff   : > { %v12254_v44 = vmax.f32 %v5334_v59, 0.0  ;;  %v5335_v34 = vadd.f32 %v5303_v48, %v709_v45  ;;  %8843 = vrot.lane.b32.xlu0 %v8842_v14, %s9165_s17  ;;  %v8847_v38 = vpack.i.bf16 %v5546_v10, %v5512_v50  ;;  %v5526_v22 = vsel %vm861_vm2, %v5496_v54, %v5481_v26 }
 0x600   : > { %v5389_v36 = vrot.slane %v12158_v62, 7  ;;  %v12262_v4 = vmax.f32 %v5332_v31, 0.0  ;;  %v5333_v39 = vadd.f32 %v5301_v23, %v707_v3  ;;  %v5544_v28 = vsel %vm737_vm3, %v5526_v22, 0.0 }
 0x601   : > { %v712_v59 = vmax.f32 %v12165_v11, 0.0  ;;  %v710_v13 = vmax.f32 %v12201_v8, 0.0  ;;  %v12270_v45 = vmax.f32 %v5335_v34, 0.0  ;;  %8848 = vrot.lane.b32.xlu1 %v8847_v38, %s9166_s21  ;;  %v8852_v14 = vpack.i.bf16 %v5544_v28, %v5511_v18 }
 0x602   : > { %v713_v26 = vmax.f32 %v12205_v30, 0.0  ;;  %v711_v62 = vmax.f32 %v12217_v53, 0.0  ;;  %v12275_v54 = vmax.f32 %v5333_v39, 0.0  ;;  %v8031_v57 = vpop.f32.mrb[28].mxu0  ;;  %v12281_v23 = vsel %vm768_vm5, %v5389_v36, %v5404_v47 }
 0x603   : > { %v5484_v3 = vrot.slane %v12254_v44, 1  ;;  %v5499_v11 = vrot.slane %v12270_v45, 1  ;;  %8853 = vrot.lane.b32.xlu0 %v8852_v14, %s9166_s21  ;;  %v5306_v8 = vadd.f32 %v8031_v57, %v12112_v63  ;;  %v5175_v30 = vpop.f32.mrb[29].mxu0  ;;  %v8857_v53 = vpack.i.bf16 %v12270_v45, %v12254_v44 }
 0x604   : > { %v5483_v48 = vrot.slane %v12262_v4, 1  ;;  %v5498_v55 = vrot.slane %v12275_v54, 1  ;;  %v5304_v50 = vadd.f32 %v12112_v63, %v5175_v30  ;;  %v8032_v42 = vpop.f32.mrb[30].mxu0  ;;  %v8862_v31 = vpack.i.bf16 %v12275_v54, %v12262_v4 }
 0x605   : > { %v5338_v10 = vadd.f32 %v5306_v8, %v712_v59  ;;  %v5307_v18 = vadd.f32 %v8032_v42, %v12112_v63  ;;  %8858 = vrot.lane.b32.xlu1 %v8857_v53, %s9165_s17  ;;  %v5178_v34 = vpop.f32.mrb[31].mxu0  ;;  %v5514_v38 = vsel %vm861_vm2, %v5484_v3, %v5499_v11  ;;  %v5529_v22 = vsel %vm861_vm2, %v5499_v11, %v5484_v3 }
 0x606   : > { %v5336_v39 = vadd.f32 %v5304_v50, %v710_v13  ;;  %v5305_v28 = vadd.f32 %v12112_v63, %v5178_v34  ;;  %v5550_v14 = vsel %vm737_vm3, %v5529_v22, 0.0  ;;  %v5513_v59 = vsel %vm861_vm2, %v5483_v48, %v5498_v55 }
 0x607   : > { %v12305_v57 = vmax.f32 %v5338_v10, 0.0  ;;  %v5339_v8 = vadd.f32 %v5307_v18, %v713_v26  ;;  %8863 = vrot.lane.b32.xlu0 %v8862_v31, %s9165_s17  ;;  %v8867_v30 = vpack.i.bf16 %v5550_v14, %v5514_v38  ;;  %v5528_v53 = vsel %vm861_vm2, %v5498_v55, %v5483_v48 }
 0x608   : > { %v12310_v42 = vmax.f32 %v5336_v39, 0.0  ;;  %v5337_v13 = vadd.f32 %v5305_v28, %v711_v62  ;;  %v5548_v3 = vsel %vm737_vm3, %v5528_v53, 0.0  ;;  %v12318_v11 = vsel %vm768_vm5, %v5404_v47, %v5389_v36 }
 0x609   : > { %v726_v26 = vmax.f32 %v12117_v33, 0.0  ;;  %v729_v50 = vmax.f32 %v12121_v40, 0.0  ;;  %v12322_v31 = vmax.f32 %v5339_v8, 0.0  ;;  %8868 = vrot.lane.b32.xlu1 %v8867_v30, %s9166_s21  ;;  %v8872_v48 = vpack.i.bf16 %v5548_v3, %v5513_v59 }
 0x60a   : > { %v727_v62 = vmax.f32 %v12125_v61, 0.0  ;;  %v5392_v55 = vrot.slane %v12187_v9, 7  ;;  %v5407_v10 = vrot.slane %v12207_v25, 7  ;;  %v12328_v27 = vmax.f32 %v5337_v13, 0.0  ;;  %v8035_v18 = vpop.f32.mrb[32].mxu0 }
 0x60b   : > { %v5486_v47 = vrot.slane %v12305_v57, 1  ;;  %v5501_v36 = vrot.slane %v12322_v31, 1  ;;  %8873 = vrot.lane.b32.xlu0 %v8872_v48, %s9166_s21  ;;  %v5310_v34 = vadd.f32 %v8035_v18, %v12112_v63  ;;  %v5191_v38 = vpop.f32.mrb[33].mxu0  ;;  %v8877_v22 = vpack.i.bf16 %v12322_v31, %v12305_v57 }
 0x60c   : > { %v5485_v39 = vrot.slane %v12310_v42, 1  ;;  %v5500_v9 = vrot.slane %v12328_v27, 1  ;;  %v5308_v25 = vadd.f32 %v12112_v63, %v5191_v38  ;;  %v8036_v28 = vpop.f32.mrb[34].mxu0  ;;  %v8882_v14 = vpack.i.bf16 %v12328_v27, %v12310_v42 }
 0x60d   : > { %v5342_v59 = vadd.f32 %v5310_v34, %v716_v29  ;;  %v5311_v8 = vadd.f32 %v8036_v28, %v12112_v63  ;;  %8878 = vrot.lane.b32.xlu1 %v8877_v22, %s9165_s17  ;;  %v5194_v30 = vpop.f32.mrb[35].mxu0  ;;  %v5516_v53 = vsel %vm861_vm2, %v5486_v47, %v5501_v36  ;;  %v5531_v13 = vsel %vm861_vm2, %v5501_v36, %v5486_v47 }
 0x60e   : > { %v5340_v3 = vadd.f32 %v5308_v25, %v714_v43  ;;  %v5309_v48 = vadd.f32 %v12112_v63, %v5194_v30  ;;  %v5554_v46 = vsel %vm737_vm3, %v5531_v13, 0.0  ;;  %v5515_v29 = vsel %vm861_vm2, %v5485_v39, %v5500_v9 }
 0x60f   : > { %v12356_v18 = vmax.f32 %v5342_v59, 0.0  ;;  %v5343_v34 = vadd.f32 %v5311_v8, %v717_v0  ;;  %8883 = vrot.lane.b32.xlu0 %v8882_v14, %s9165_s17  ;;  %v8887_v38 = vpack.i.bf16 %v5554_v46, %v5516_v53  ;;  %v5530_v24 = vsel %vm861_vm2, %v5500_v9, %v5485_v39 }
 0x610   : > { %v12363_v43 = vmax.f32 %v5340_v3, 0.0  ;;  %v5341_v47 = vadd.f32 %v5309_v48, %v715_v51  ;;  %v5552_v36 = vsel %vm737_vm3, %v5530_v24, 0.0  ;;  %v12371_v22 = vsel %vm768_vm5, %v5392_v55, %v5407_v10 }
 0x611   : > { %v5391_v58 = vrot.slane %v12191_v12, 7  ;;  %v5406_v0 = vrot.slane %v12220_v56, 7  ;;  %v12375_v25 = vmax.f32 %v5343_v34, 0.0  ;;  %8888 = vrot.lane.b32.xlu1 %v8887_v38, %s9166_s21  ;;  %v8892_v39 = vpack.i.bf16 %v5552_v36, %v5515_v29 }
 0x612   : > { %v5394_v9 = vrot.slane %v12254_v44, 7  ;;  %v12380_v51 = vmax.f32 %v5341_v47, 0.0  ;;  %v8039_v28 = vpop.f32.mrb[36].mxu0  ;;  %v12384_v14 = vsel %vm768_vm5, %v5407_v10, %v5392_v55  ;;  %v5488_v59 = vrot.slane %v12356_v18, 1 }
 0x613   : > { %v5503_v8 = vrot.slane %v12375_v25, 1  ;;  %8893 = vrot.lane.b32.xlu0 %v8892_v39, %s9166_s21  ;;  %v5314_v30 = vadd.f32 %v8039_v28, %v12112_v63  ;;  %v5207_v53 = vpop.f32.mrb[37].mxu0  ;;  %v8897_v13 = vpack.i.bf16 %v12375_v25, %v12356_v18  ;;  %v5487_v3 = vrot.slane %v12363_v43, 1 }
 0x614   : > { %v5502_v48 = vrot.slane %v12380_v51, 1  ;;  %v5312_v46 = vadd.f32 %v12112_v63, %v5207_v53  ;;  %v8040_v55 = vpop.f32.mrb[38].mxu0  ;;  %v8902_v10 = vpack.i.bf16 %v12380_v51, %v12363_v43  ;;  %v5412_v12 = vrot.slane %v12380_v51, 7 }
 0x615   : > { %v5346_v29 = vadd.f32 %v5314_v30, %v720_v32  ;;  %v5315_v34 = vadd.f32 %v8040_v55, %v12112_v63  ;;  %8898 = vrot.lane.b32.xlu1 %v8897_v13, %s9165_s17  ;;  %v5210_v38 = vpop.f32.mrb[39].mxu0  ;;  %v5518_v24 = vsel %vm861_vm2, %v5488_v59, %v5503_v8  ;;  %v5533_v47 = vsel %vm861_vm2, %v5503_v8, %v5488_v59 }
 0x616   : > { %v5344_v36 = vadd.f32 %v5312_v46, %v718_v52  ;;  %v5313_v39 = vadd.f32 %v12112_v63, %v5210_v38  ;;  %v5558_v2 = vsel %vm737_vm3, %v5533_v47, 0.0  ;;  %v5517_v32 = vsel %vm861_vm2, %v5487_v3, %v5502_v48 }
 0x617   : > { %v12412_v28 = vmax.f32 %v5346_v29, 0.0  ;;  %v5347_v30 = vadd.f32 %v5315_v34, %v721_v17  ;;  %8903 = vrot.lane.b32.xlu0 %v8902_v10, %s9165_s17  ;;  %v8907_v53 = vpack.i.bf16 %v5558_v2, %v5518_v24  ;;  %v5532_v21 = vsel %vm861_vm2, %v5502_v48, %v5487_v3 }
 0x618   : > { %v5409_v52 = vrot.slane %v12270_v45, 7  ;;  %v12420_v59 = vmax.f32 %v5344_v36, 0.0  ;;  %v13316_v8 = vmax.f32 %v12069_v7, 0.0  ;;  %v5556_v46 = vsel %vm737_vm3, %v5532_v21, 0.0 }
 0x619   : > { %v5408_v55 = vrot.slane %v12275_v54, 7  ;;  %v12428_v17 = vmax.f32 %v5347_v30, 0.0  ;;  %8908 = vrot.lane.b32.xlu1 %v8907_v53, %s9166_s21  ;;  %v8912_v10 = vpack.i.bf16 %v5556_v46, %v5517_v32  ;;  %v12441_v34 = vsel %vm768_vm5, %v5391_v58, %v5406_v0 }
 0x61a   : > { %v5345_v13 = vadd.f32 %v5313_v39, %v13316_v8  ;;  %v8043_v7 = vpop.f32.mrb[40].mxu0  ;;  %v5490_v38 = vrot.slane %v12412_v28, 1  ;;  %v5489_v2 = vrot.slane %v12420_v59, 1  ;;  %v13317_v8 = vmax.f32 %v12073_v16, 0.0 }
 0x61b   : > { %v5505_v24 = vrot.slane %v12428_v17, 1  ;;  %8913 = vrot.lane.b32.xlu0 %v8912_v10, %s9166_s21  ;;  %v5318_v47 = vadd.f32 %v8043_v7, %v12112_v63  ;;  %v5223_v36 = vpop.f32.mrb[41].mxu0  ;;  %v8917_v39 = vpack.i.bf16 %v12428_v17, %v12412_v28  ;;  %v5415_v40 = vrot.slane %v12428_v17, 7 }
 0x61c   : > { %v12433_v29 = vmax.f32 %v5345_v13, 0.0  ;;  %v5316_v30 = vadd.f32 %v12112_v63, %v5223_v36  ;;  %v8044_v53 = vpop.f32.mrb[42].mxu0  ;;  %v13318_v36 = vmax.f32 %v12077_v37, 0.0  ;;  %v12549_v61 = vsel %vm768_vm5, %v5394_v9, %v5409_v52 }
 0x61d   : > { %v5350_v13 = vadd.f32 %v5318_v47, %v13317_v8  ;;  %v5319_v46 = vadd.f32 %v8044_v53, %v12112_v63  ;;  %8918 = vrot.lane.b32.xlu1 %v8917_v39, %s9165_s17  ;;  %v5226_v10 = vpop.f32.mrb[43].mxu0  ;;  %v5520_v7 = vsel %vm861_vm2, %v5490_v38, %v5505_v24  ;;  %v5535_v3 = vsel %vm861_vm2, %v5505_v24, %v5490_v38 }
 0x61e   : > { %v5504_v32 = vrot.slane %v12433_v29, 1  ;;  %v8922_v21 = vpack.i.bf16 %v12433_v29, %v12420_v59  ;;  %v5348_v19 = vadd.f32 %v5316_v30, %v13318_v36  ;;  %v5317_v48 = vadd.f32 %v12112_v63, %v5226_v10 }
 0x61f   : > { %v5562_v16 = vsel %vm737_vm3, %v5535_v3, 0.0  ;;  %v12469_v53 = vmax.f32 %v5350_v13, 0.0  ;;  %v13319_v39 = vmax.f32 %v12081_v6, 0.0  ;;  %v13320_v24 = vmax.f32 %v12085_v20, 0.0 }
 0x620   : > { %v5519_v47 = vsel %vm861_vm2, %v5489_v2, %v5504_v32  ;;  %8923 = vrot.lane.b32.xlu0 %v8922_v21, %s9165_s17  ;;  %v8927_v1 = vpack.i.bf16 %v5562_v16, %v5520_v7  ;;  %v5534_v37 = vsel %vm861_vm2, %v5504_v32, %v5489_v2  ;;  %v12476_v38 = vmax.f32 %v5348_v19, 0.0 }
 0x621   : > { %v5351_v8 = vadd.f32 %v5319_v46, %v13319_v39  ;;  %v5349_v30 = vadd.f32 %v5317_v48, %v13320_v24  ;;  %v5560_v3 = vsel %vm737_vm3, %v5534_v37, 0.0  ;;  %v12488_v6 = vsel %vm768_vm5, %v5406_v0, %v5391_v58 }
 0x622   : > { %v5410_v21 = vrot.slane %v12328_v27, 7  ;;  %v5398_v2 = vrot.slane %v12356_v18, 7  ;;  %8928 = vrot.lane.b32.xlu1 %v8927_v1, %s9166_s21  ;;  %v8932_v20 = vpack.i.bf16 %v5560_v3, %v5519_v47  ;;  %v5397_v48 = vrot.slane %v12363_v43, 7  ;;  %v8047_v13 = vpop.f32.mrb[44].mxu0 }
 0x623   : > { %v12492_v19 = vmax.f32 %v5351_v8, 0.0  ;;  %v5413_v32 = vrot.slane %v12375_v25, 7  ;;  %v12498_v56 = vmax.f32 %v5349_v30, 0.0  ;;  %v5492_v58 = vrot.slane %v12469_v53, 1  ;;  %v5239_v10 = vpop.f32.mrb[45].mxu0 }
 0x624   : > { %8933 = vrot.lane.b32.xlu0 %v8932_v20, %s9166_s21  ;;  %v5322_v46 = vadd.f32 %v8047_v13, %v12112_v63  ;;  %v5491_v7 = vrot.slane %v12476_v38, 1  ;;  %v5320_v16 = vadd.f32 %v12112_v63, %v5239_v10  ;;  %v8048_v47 = vpop.f32.mrb[46].mxu0  ;;  %v13321_v8 = vmax.f32 %v12092_v5, 0.0 }
 0x625   : > { %v5507_v0 = vrot.slane %v12492_v19, 1  ;;  %v8937_v1 = vpack.i.bf16 %v12492_v19, %v12469_v53  ;;  %v5506_v36 = vrot.slane %v12498_v56, 1  ;;  %v8942_v39 = vpack.i.bf16 %v12498_v56, %v12476_v38  ;;  %v5242_v30 = vpop.f32.mrb[47].mxu0 }
 0x626   : > { %v5354_v37 = vadd.f32 %v5322_v46, %v13321_v8  ;;  %v5323_v24 = vadd.f32 %v8048_v47, %v12112_v63  ;;  %v5352_v13 = vadd.f32 %v5320_v16, %v726_v26  ;;  %v5321_v10 = vadd.f32 %v12112_v63, %v5242_v30 }
 0x627   : > { %8938 = vrot.lane.b32.xlu1 %v8937_v1, %s9165_s17  ;;  %v5522_v3 = vsel %vm861_vm2, %v5492_v58, %v5507_v0  ;;  %v5537_v20 = vsel %vm861_vm2, %v5507_v0, %v5492_v58  ;;  %v5521_v46 = vsel %vm861_vm2, %v5491_v7, %v5506_v36  ;;  %v5536_v33 = vsel %vm861_vm2, %v5506_v36, %v5491_v7 }
 0x628   : > { %v5566_v5 = vsel %vm737_vm3, %v5537_v20, 0.0  ;;  %v12526_v47 = vmax.f32 %v5354_v37, 0.0  ;;  %v5355_v1 = vadd.f32 %v5323_v24, %v729_v50  ;;  %8943 = vrot.lane.b32.xlu0 %v8942_v39, %s9165_s17  ;;  %v5400_v26 = vrot.slane %v12412_v28, 7 }
 0x629   : > { %v8947_v8 = vpack.i.bf16 %v5566_v5, %v5522_v3  ;;  %v5384_v63 = vmax.f32 %v5352_v13, 0.0  ;;  %v5353_v58 = vadd.f32 %v5321_v10, %v727_v62  ;;  %v5564_v0 = vsel %vm737_vm3, %v5536_v33, 0.0 }
 0x62a   : > { %v5399_v16 = vrot.slane %v12420_v59, 7  ;;  %v5387_v50 = vmax.f32 %v5355_v1, 0.0  ;;  %v8952_v39 = vpack.i.bf16 %v5564_v0, %v5521_v46  ;;  %v5414_v37 = vrot.slane %v12433_v29, 7 }
 0x62b   : > { %8948 = vrot.lane.b32.xlu1 %v8947_v8, %s9166_s21  ;;  %v5402_v7 = vrot.slane %v12469_v53, 7  ;;  %v5385_v28 = vmax.f32 %v5353_v58, 0.0  ;;  %v5892_v62 = vrot.slane %v12526_v47, 1  ;;  %v12560_v29 = vsel %vm768_vm5, %v5409_v52, %v5394_v9 }
 0x62c   : > { %v5893_v59 = vrot.slane %v5387_v50, 1  ;;  %8953 = vrot.lane.b32.xlu0 %v8952_v39, %s9166_s21  ;;  %v8967_v17 = vpack.i.bf16 %v5387_v50, %v12526_v47  ;;  %v5401_v53 = vrot.slane %v12476_v38, 7  ;;  %v5493_v36 = vrot.slane %v5384_v63, 1 }
 0x62d   : > { %v5508_v24 = vrot.slane %v5385_v28, 1  ;;  %v8957_v30 = vpack.i.bf16 %v5385_v28, %v5384_v63  ;;  %v13322_v44 = vrot.slane %v12262_v4, 7  ;;  %v5417_v38 = vrot.slane %v12492_v19, 7 }
 0x62e   : > { %v5894_v3 = vsel %vm861_vm2, %v5892_v62, %v5893_v59  ;;  %v5895_v20 = vsel %vm861_vm2, %v5893_v59, %v5892_v62  ;;  %v13325_v46 = vrot.slane %v12305_v57, 7  ;;  %v5416_v15 = vrot.slane %v12498_v56, 7 }
 0x62f   : > { %v12573_v45 = vsel %vm768_vm5, %v13322_v44, %v5408_v55  ;;  %v13323_v9 = vmov %v13322_v44  ;;  %v5523_v13 = vsel %vm861_vm2, %v5493_v36, %v5508_v24  ;;  %v5538_v10 = vsel %vm861_vm2, %v5508_v24, %v5493_v36 }
 0x630   : > { %v12581_v52 = vsel %vm768_vm5, %v5408_v55, %v13323_v9  ;;  %v5897_v5 = vsel %vm737_vm3, %v5895_v20, 0.0  ;;  %8958 = vrot.lane.b32.xlu0 %v8957_v30, %s9165_s17  ;;  %v5568_v4 = vsel %vm737_vm3, %v5538_v10, 0.0  ;;  %v13324_v55 = vrot.slane %v12322_v31, 7 }
 0x631   : > { %v8972_v54 = vpack.i.bf16 %v5897_v5, %v5894_v3  ;;  %v13326_v1 = vmov %v13325_v46  ;;  %v8962_v58 = vpack.i.bf16 %v5568_v4, %v5523_v13  ;;  %v13328_v0 = vrot.slane %v12310_v42, 7 }
 0x632   : > { %v12599_v19 = vsel %vm768_vm5, %v13325_v46, %v13324_v55  ;;  %v13327_v8 = vmov %v13324_v55  ;;  %v5418_v31 = vrot.slane %v5385_v28, 7  ;;  %v12632_v56 = vsel %vm768_vm5, %v5398_v2, %v5413_v32 }
 0x633   : > { %v12607_v33 = vsel %vm768_vm5, %v13327_v8, %v13326_v1  ;;  %v12616_v39 = vsel %vm768_vm5, %v13328_v0, %v5410_v21  ;;  %v13329_v62 = vmov %v13328_v0  ;;  %v12640_v42 = vsel %vm768_vm5, %v5413_v32, %v5398_v2  ;;  %8963 = vrot.lane.b32.xlu1 %v8962_v58, %s9166_s21 }
 0x634   : > { %v12624_v57 = vsel %vm768_vm5, %v5410_v21, %v13329_v62  ;;  %v12648_v27 = vsel %vm768_vm5, %v5397_v48, %v5412_v12  ;;  %v5887_v21 = vrot.slane %v5387_v50, 7  ;;  %v12657_v18 = vsel %vm768_vm5, %v5412_v12, %v5397_v48  ;;  %8968 = vrot.lane.b32.xlu0 %v8967_v17, %s9165_s17  ;;  %s13034_s17 = scalar_lea.hbm %s13094_s9, %s7298_s22 }
 0x635   : > { %v12661_v25 = vsel %vm768_vm5, %v5400_v26, %v5415_v40  ;;  %v12665_v2 = vsel %vm768_vm5, %v5415_v40, %v5400_v26  ;;  %v5403_v32 = vrot.slane %v5384_v63, 7  ;;  %v12670_v43 = vsel %vm768_vm5, %v5399_v16, %v5414_v37 }
 0x636   : > { %v12674_v51 = vsel %vm768_vm5, %v5414_v37, %v5399_v16  ;;  %v5886_v48 = vrot.slane %v12526_v47, 7  ;;  %v12679_v12 = vsel %vm768_vm5, %v5402_v7, %v5417_v38  ;;  %v12683_v26 = vsel %vm768_vm5, %v5417_v38, %v5402_v7 }
 0x637   : > { %v12687_v63 = vsel %vm768_vm5, %v5401_v53, %v5416_v15  ;;  %v12691_v40 = vsel %vm768_vm5, %v5416_v15, %v5401_v53  ;;  %v12695_v16 = vsel %vm768_vm5, %v5403_v32, %v5418_v31  ;;  %v12699_v47 = vsel %vm768_vm5, %v5418_v31, %v5403_v32  ;;  %8973 = vrot.lane.b32.xlu1 %v8972_v54, %s9166_s21  ;;  %v12735_v31 = vld [vmem:[%s13092_s7 + $0x10] sm:$0x3f]  }
 0x638   : > { %v12704_v50 = vsel %vm768_vm5, %v5886_v48, %v5887_v21  ;;  %v12708_v37 = vsel %vm768_vm5, %v5887_v21, %v5886_v48  ;;  %v5451_v30 = vsel %vm734_vm6, %v12224_v49, 0.0  ;;  %v5449_v38 = vsel %vm734_vm6, %v12318_v11, 0.0 }
 0x639   : > { %v6145_v62 = vsel %vm1352_vm1, %v12213_v60, 0  ;;  %v5455_v48 = vsel %vm734_vm6, %v12384_v14, 0.0  ;;  %v6317_v41 = vsel %vm1352_vm1, %v12735_v31, 0 }
 0x667   : > { %v8819_v7 = vpop.permute.xlu1 %8818 }
 0x668   : > { %v8824_v28 = vpop.permute.xlu0 %8823  ;;  %v8821_v59 = vunpack.i.h.bf16 %v8819_v7  ;;  %v8820_v17 = vunpack.i.l.bf16 %v8819_v7 }
 0x669   : > { %v8826_v53 = vunpack.i.h.bf16 %v8824_v28  ;;  %v8825_v36 = vunpack.i.l.bf16 %v8824_v28 }
 0x66a   : > { %v5813_v44 = vsel %vm484_vm4, %v5451_v30, %v8820_v17  ;;  %v5814_v9 = vsel %vm484_vm4, %v12197_v35, %v8821_v59  ;;  %v5453_v17 = vsel %vm734_vm6, %v12488_v6, 0.0 }
 0x66b   : > { %v8829_v24 = vpop.permute.xlu1 %8828  ;;  %v5811_v49 = vsel %vm484_vm4, %v5449_v38, %v8825_v36  ;;  %v5812_v55 = vsel %vm484_vm4, %v12281_v23, %v8826_v53 }
 0x66c   : > { %v8831_v3 = vunpack.i.h.bf16 %v8829_v24  ;;  %v8830_v20 = vunpack.i.l.bf16 %v8829_v24 }
 0x66d   : > { %v8834_v13 = vpop.permute.xlu0 %8833 }
 0x66e   : > { %v5843_v10 = vsel %vm1210_vm7, %v5813_v44, %v8830_v20  ;;  %v5844_v5 = vsel %vm1210_vm7, %v5814_v9, %v8831_v3  ;;  %v8836_v4 = vunpack.i.h.bf16 %v8834_v13  ;;  %v8835_v54 = vunpack.i.l.bf16 %v8834_v13 }
 0x66f   : > { %v12724_v46 = vpack.c.bf16 %v5844_v5, %v5843_v10  ;;  %v8839_v1 = vpop.permute.xlu1 %8838 }
 0x670   : > { %v5841_v35 = vsel %vm1210_vm7, %v5811_v49, %v8835_v54  ;;  %v5842_v8 = vsel %vm1210_vm7, %v5812_v55, %v8836_v4  ;;  %v8841_v15 = vunpack.i.h.bf16 %v8839_v1  ;;  %v8840_v58 = vunpack.i.l.bf16 %v8839_v1 }
 0x671   : > { %v12728_v11 = vpack.c.bf16 %v5842_v8, %v5841_v35  ;;  %v8844_v0 = vpop.permute.xlu0 %8843 }
 0x672   : > { %v8846_v23 = vunpack.i.h.bf16 %v8844_v0  ;;  %v8845_v21 = vunpack.i.l.bf16 %v8844_v0  ;;  %v5817_v28 = vsel %vm484_vm4, %v5455_v48, %v8840_v58  ;;  %v5818_v59 = vsel %vm484_vm4, %v12371_v22, %v8841_v15 }
 0x673   : > { %8051 = vmatprep.mubr.msk.bf16.mxu1 %vm1303_vm8, %v12728_v11  ;;  %v8849_v32 = vpop.permute.xlu1 %8848  ;;  %v5457_v15 = vsel %vm734_vm6, %v12581_v52, 0.0 }
 0x674   : > { %8052 = vmatmul.mubr.msk.bf16.vlgmr.msra.gmra.mrb[80].mxu1 %vm1303_vm8, %v12724_v46  ;;  %v8851_v7 = vunpack.i.h.bf16 %v8849_v32  ;;  %v8850_v60 = vunpack.i.l.bf16 %v8849_v32  ;;  %v5815_v3 = vsel %vm484_vm4, %v5453_v17, %v8845_v21  ;;  %v5816_v22 = vsel %vm484_vm4, %v12441_v34, %v8846_v23 }
 0x675   : > { %v8854_v53 = vpop.permute.xlu0 %8853  ;;  %8084 = vmatpush3.bf16.msra.mxu1 %v6145_v62  ;;  %v5459_v34 = vsel %vm734_vm6, %v12560_v29, 0.0 }
 0x676   : > { %v5847_v36 = vsel %vm1210_vm7, %v5817_v28, %v8850_v60  ;;  %v5848_v14 = vsel %vm1210_vm7, %v5818_v59, %v8851_v7  ;;  %v8856_v24 = vunpack.i.h.bf16 %v8854_v53  ;;  %v8855_v30 = vunpack.i.l.bf16 %v8854_v53  ;;  %8605 = vmatprep.subr.msk.bf16.mxu1 %vm1352_vm1, %v12735_v31 }
 0x677   : > { %v12757_v20 = vpack.c.bf16 %v5848_v14, %v5847_v36  ;;  %v8859_v44 = vpop.permute.xlu1 %8858 }
 0x678   : > { %v5845_v6 = vsel %vm1210_vm7, %v5815_v3, %v8855_v30  ;;  %v5846_v9 = vsel %vm1210_vm7, %v5816_v22, %v8856_v24  ;;  %v8861_v13 = vunpack.i.h.bf16 %v8859_v44  ;;  %v8860_v10 = vunpack.i.l.bf16 %v8859_v44 }
 0x679   : > { %v12761_v38 = vpack.c.bf16 %v5846_v9, %v5845_v6  ;;  %v8864_v5 = vpop.permute.xlu0 %8863  ;;  %v5461_v44 = vsel %vm734_vm6, %v12624_v57, 0.0 }
 0x67a   : > { %v8866_v4 = vunpack.i.h.bf16 %v8864_v5  ;;  %v8865_v54 = vunpack.i.l.bf16 %v8864_v5  ;;  %v5821_v35 = vsel %vm484_vm4, %v5459_v34, %v8860_v10  ;;  %v5822_v8 = vsel %vm484_vm4, %v12549_v61, %v8861_v13 }
 0x67b   : > { %8055 = vmatprep.mubr.msk.bf16.mxu1 %vm1303_vm8, %v12761_v38  ;;  %v8869_v49 = vpop.permute.xlu1 %8868 }
 0x67c   : > { %8056 = vmatmul.mubr.msk.bf16.gmra.mrb[84].mxu1 %vm1303_vm8, %v12757_v20  ;;  %v8871_v55 = vunpack.i.h.bf16 %v8869_v49  ;;  %v8870_v1 = vunpack.i.l.bf16 %v8869_v49  ;;  %v5819_v21 = vsel %vm484_vm4, %v5457_v15, %v8865_v54  ;;  %v5820_v32 = vsel %vm484_vm4, %v12573_v45, %v8866_v4 }
 0x67d   : > { %v8874_v58 = vpop.permute.xlu0 %8873  ;;  %v5463_v45 = vsel %vm734_vm6, %v12607_v33, 0.0 }
 0x67e   : > { %v5851_v0 = vsel %vm1210_vm7, %v5821_v35, %v8870_v1  ;;  %v5852_v62 = vsel %vm1210_vm7, %v5822_v8, %v8871_v55  ;;  %v8876_v29 = vunpack.i.h.bf16 %v8874_v58  ;;  %v8875_v23 = vunpack.i.l.bf16 %v8874_v58 }
 0x67f   : > { %v12781_v48 = vpack.c.bf16 %v5852_v62, %v5851_v0  ;;  %v8879_v7 = vpop.permute.xlu1 %8878 }
 0x680   : > { %v5849_v61 = vsel %vm1210_vm7, %v5819_v21, %v8875_v23  ;;  %v5850_v60 = vsel %vm1210_vm7, %v5820_v32, %v8876_v29  ;;  %v8881_v28 = vunpack.i.h.bf16 %v8879_v7  ;;  %v8880_v59 = vunpack.i.l.bf16 %v8879_v7 }
 0x681   : > { %v12785_v52 = vpack.c.bf16 %v5850_v60, %v5849_v61  ;;  %v8884_v17 = vpop.permute.xlu0 %8883  ;;  %v5465_v21 = vsel %vm734_vm6, %v12657_v18, 0.0 }
 0x682   : > { %v8886_v53 = vunpack.i.h.bf16 %v8884_v17  ;;  %v8885_v36 = vunpack.i.l.bf16 %v8884_v17  ;;  %v5825_v3 = vsel %vm484_vm4, %v5463_v45, %v8880_v59  ;;  %v5826_v22 = vsel %vm484_vm4, %v12599_v19, %v8881_v28 }
 0x683   : > { %8059 = vmatprep.mubr.msk.bf16.mxu1 %vm1303_vm8, %v12785_v52  ;;  %v8889_v14 = vpop.permute.xlu1 %8888 }
 0x684   : > { %8060 = vmatmul.mubr.msk.bf16.gmra.mrb[88].mxu1 %vm1303_vm8, %v12781_v48  ;;  %v8891_v24 = vunpack.i.h.bf16 %v8889_v14  ;;  %v8890_v30 = vunpack.i.l.bf16 %v8889_v14  ;;  %v5823_v5 = vsel %vm484_vm4, %v5461_v44, %v8885_v36  ;;  %v5824_v4 = vsel %vm484_vm4, %v12616_v39, %v8886_v53 }
 0x685   : > { %v8894_v6 = vpop.permute.xlu0 %8893  ;;  %v5467_v39 = vsel %vm734_vm6, %v12640_v42, 0.0 }
 0x686   : > { %v5855_v9 = vsel %vm1210_vm7, %v5825_v3, %v8890_v30  ;;  %v5856_v13 = vsel %vm1210_vm7, %v5826_v22, %v8891_v24  ;;  %v8896_v33 = vunpack.i.h.bf16 %v8894_v6  ;;  %v8895_v10 = vunpack.i.l.bf16 %v8894_v6 }
 0x687   : > { %v12805_v54 = vpack.c.bf16 %v5856_v13, %v5855_v9  ;;  %v8899_v49 = vpop.permute.xlu1 %8898 }
 0x688   : > { %v5853_v19 = vsel %vm1210_vm7, %v5823_v5, %v8895_v10  ;;  %v5854_v34 = vsel %vm1210_vm7, %v5824_v4, %v8896_v33  ;;  %v8901_v55 = vunpack.i.h.bf16 %v8899_v49  ;;  %v8900_v1 = vunpack.i.l.bf16 %v8899_v49 }
 0x689   : > { %v12809_v57 = vpack.c.bf16 %v5854_v34, %v5853_v19  ;;  %v8904_v35 = vpop.permute.xlu0 %8903  ;;  %v5469_v33 = vsel %vm734_vm6, %v12674_v51, 0.0 }
 0x68a   : > { %v8906_v8 = vunpack.i.h.bf16 %v8904_v35  ;;  %v8905_v15 = vunpack.i.l.bf16 %v8904_v35  ;;  %v5829_v29 = vsel %vm484_vm4, %v5467_v39, %v8900_v1  ;;  %v5830_v23 = vsel %vm484_vm4, %v12632_v56, %v8901_v55 }
 0x68b   : > { %8063 = vmatprep.mubr.msk.bf16.mxu1 %vm1303_vm8, %v12809_v57  ;;  %v8909_v58 = vpop.permute.xlu1 %8908 }
 0x68c   : > { %8064 = vmatmul.mubr.msk.bf16.gmra.mrb[92].mxu1 %vm1303_vm8, %v12805_v54  ;;  %v8911_v0 = vunpack.i.h.bf16 %v8909_v58  ;;  %v8910_v62 = vunpack.i.l.bf16 %v8909_v58  ;;  %v5827_v28 = vsel %vm484_vm4, %v5465_v21, %v8905_v15  ;;  %v5828_v59 = vsel %vm484_vm4, %v12648_v27, %v8906_v8 }
 0x68d   : > { %v8914_v32 = vpop.permute.xlu0 %8913  ;;  %v5471_v27 = vsel %vm734_vm6, %v12665_v2, 0.0 }
 0x68e   : > { %v5859_v7 = vsel %vm1210_vm7, %v5829_v29, %v8910_v62  ;;  %v5860_v61 = vsel %vm1210_vm7, %v5830_v23, %v8911_v0  ;;  %v8916_v42 = vunpack.i.h.bf16 %v8914_v32  ;;  %v8915_v60 = vunpack.i.l.bf16 %v8914_v32 }
 0x68f   : > { %v12829_v17 = vpack.c.bf16 %v5860_v61, %v5859_v7  ;;  %v8919_v53 = vpop.permute.xlu1 %8918  ;;  %v5473_v7 = vsel %vm734_vm6, %v12691_v40, 0.0 }
 0x690   : > { %v5857_v56 = vsel %vm1210_vm7, %v5827_v28, %v8915_v60  ;;  %v5858_v36 = vsel %vm1210_vm7, %v5828_v59, %v8916_v42  ;;  %v8921_v14 = vunpack.i.h.bf16 %v8919_v53  ;;  %v8920_v45 = vunpack.i.l.bf16 %v8919_v53 }
 0x691   : > { %v12833_v18 = vpack.c.bf16 %v5858_v36, %v5857_v56 }
 0x692   : > { %v8924_v24 = vpop.permute.xlu0 %8923  ;;  %v5833_v9 = vsel %vm484_vm4, %v5471_v27, %v8920_v45  ;;  %v5834_v13 = vsel %vm484_vm4, %v12661_v25, %v8921_v14 }
 0x693   : > { %v8926_v30 = vunpack.i.h.bf16 %v8924_v24  ;;  %v8925_v3 = vunpack.i.l.bf16 %v8924_v24  ;;  %8067 = vmatprep.mubr.msk.bf16.mxu1 %vm1303_vm8, %v12833_v18 }
 0x694   : > { %v8929_v22 = vpop.permute.xlu1 %8928  ;;  %8068 = vmatmul.mubr.msk.bf16.gmra.mrb[96].mxu1 %vm1303_vm8, %v12829_v17 }
 0x695   : > { %v8931_v44 = vunpack.i.h.bf16 %v8929_v22  ;;  %v8930_v6 = vunpack.i.l.bf16 %v8929_v22  ;;  %v5831_v19 = vsel %vm484_vm4, %v5469_v33, %v8925_v3  ;;  %v5832_v34 = vsel %vm484_vm4, %v12670_v43, %v8926_v30 }
 0x696   : > { %v8934_v10 = vpop.permute.xlu0 %8933  ;;  %v5475_v43 = vsel %vm734_vm6, %v12683_v26, 0.0  ;;  %v5477_v3 = vsel %vm734_vm6, %v12699_v47, 0.0  ;;  %v5890_v47 = vsel %vm734_vm6, %v12708_v37, 0.0 }
 0x697   : > { %v5863_v5 = vsel %vm1210_vm7, %v5833_v9, %v8930_v6  ;;  %v5864_v4 = vsel %vm1210_vm7, %v5834_v13, %v8931_v44  ;;  %v8936_v2 = vunpack.i.h.bf16 %v8934_v10  ;;  %v8935_v49 = vunpack.i.l.bf16 %v8934_v10 }
 0x698   : > { %v12853_v55 = vpack.c.bf16 %v5864_v4, %v5863_v5 }
 0x699   : > { %v8939_v1 = vpop.permute.xlu1 %8938  ;;  %v5861_v25 = vsel %vm1210_vm7, %v5831_v19, %v8935_v49  ;;  %v5862_v35 = vsel %vm1210_vm7, %v5832_v34, %v8936_v2 }
 0x69a   : > { %v12857_v51 = vpack.c.bf16 %v5862_v35, %v5861_v25  ;;  %v8941_v8 = vunpack.i.h.bf16 %v8939_v1  ;;  %v8940_v15 = vunpack.i.l.bf16 %v8939_v1  ;;  %v8944_v58 = vpop.permute.xlu0 %8943  ;;  %v13330_v35 = vld [vmem:[#allocation15_spill] sm:$0xff] }
 0x69b   : > { %v8946_v39 = vunpack.i.h.bf16 %v8944_v58  ;;  %v8945_v0 = vunpack.i.l.bf16 %v8944_v58 }
 0x69c   : > { %8071 = vmatprep.mubr.msk.bf16.mxu1 %vm1303_vm8, %v12857_v51  ;;  %v5837_v21 = vsel %vm484_vm4, %v5475_v43, %v8940_v15  ;;  %v5838_v32 = vsel %vm484_vm4, %v12679_v12, %v8941_v8 }
 0x69d   : > { %v8949_v62 = vpop.permute.xlu1 %8948  ;;  %8072 = vmatmul.mubr.msk.bf16.gmra.mrb[100].mxu1 %vm1303_vm8, %v12853_v55  ;;  %v5835_v59 = vsel %vm484_vm4, %v5473_v7, %v8945_v0  ;;  %v5836_v53 = vsel %vm484_vm4, %v12687_v63, %v8946_v39 }
 0x69e   : > { %v8951_v29 = vunpack.i.h.bf16 %v8949_v62  ;;  %v8950_v23 = vunpack.i.l.bf16 %v8949_v62  ;;  %v8954_v61 = vpop.permute.xlu0 %8953 }
 0x69f   : > { %v8956_v26 = vunpack.i.h.bf16 %v8954_v61  ;;  %v8955_v28 = vunpack.i.l.bf16 %v8954_v61 }
 0x6a0   : > { %v5867_v42 = vsel %vm1210_vm7, %v5837_v21, %v8950_v23  ;;  %v5868_v60 = vsel %vm1210_vm7, %v5838_v32, %v8951_v29 }
 0x6a1   : > { %v5884_v56 = vpack.c.bf16 %v5868_v60, %v5867_v42  ;;  %v5865_v36 = vsel %vm1210_vm7, %v5835_v59, %v8955_v28  ;;  %v5866_v12 = vsel %vm1210_vm7, %v5836_v53, %v8956_v26 }
 0x6a2   : > { %v5883_v14 = vpack.c.bf16 %v5866_v12, %v5865_v36  ;;  %v8959_v45 = vpop.permute.xlu0 %8958 }
 0x6a3   : > { %v8961_v40 = vunpack.i.h.bf16 %v8959_v45  ;;  %v8960_v24 = vunpack.i.l.bf16 %v8959_v45 }
 0x6a4   : > { %8075 = vmatprep.mubr.msk.bf16.mxu1 %vm1303_vm8, %v5883_v14 }
 0x6a5   : > { %8076 = vmatmul.mubr.msk.bf16.gmra.mrb[104].mxu1 %vm1303_vm8, %v5884_v56  ;;  %v8964_v30 = vpop.permute.xlu1 %8963  ;;  %v5839_v44 = vsel %vm484_vm4, %v5477_v3, %v8960_v24  ;;  %v5840_v6 = vsel %vm484_vm4, %v12695_v16, %v8961_v40 }
 0x6a6   : > { %v8969_v22 = vpop.permute.xlu0 %8968  ;;  %v8966_v63 = vunpack.i.h.bf16 %v8964_v30  ;;  %v8965_v27 = vunpack.i.l.bf16 %v8964_v30 }
 0x6a7   : > { %v8971_v9 = vunpack.i.h.bf16 %v8969_v22  ;;  %v8970_v13 = vunpack.i.l.bf16 %v8969_v22 }
 0x6a8   : > { %v5869_v33 = vsel %vm1210_vm7, %v5839_v44, %v8965_v27  ;;  %v5870_v10 = vsel %vm1210_vm7, %v5840_v6, %v8966_v63 }
 0x6a9   : > { %v5885_v5 = vpack.c.bf16 %v5870_v10, %v5869_v33  ;;  %v8974_v4 = vpop.permute.xlu1 %8973  ;;  %v5918_v19 = vsel %vm484_vm4, %v12704_v50, %v8971_v9  ;;  %v5917_v34 = vsel %vm484_vm4, %v5890_v47, %v8970_v13  ;;  %v12962_v50 = vld [vmem:[%s13093_s8] ss:$0 sm:$0xff] }
 0x6aa   : > { %v8976_v2 = vunpack.i.h.bf16 %v8974_v4  ;;  %v8975_v49 = vunpack.i.l.bf16 %v8974_v4 }
 0x6ab   : > { %8079 = vmatprep.mubr.msk.bf16.mxu1 %vm1303_vm8, %v5885_v5 }
 0x6ac   : > { %v5920_v16 = vsel %vm1210_vm7, %v5918_v19, %v8976_v2  ;;  %v5919_v1 = vsel %vm1210_vm7, %v5917_v34, %v8975_v49 }
 0x6ad   : > { %v5921_v25 = vpack.c.bf16 %v5920_v16, %v5919_v1 }
 0x6af   : > { %8080 = vmatmul.mubr.msk.bf16.gmra.mrb[108].mxu1 %vm1303_vm8, %v5921_v25 }
 0x6b0   : > { %8085 = vmatprep.mubr.msk.bf16.mxu1 %vm1303_vm8, %v13330_v35 }
 0x6b7   : > { %8086 = vmatmul.mubr.msk.bf16.vlgmr.msra.gmra.mrb[80].mxu1 %vm1303_vm8, %v12728_v11 }
 0x6b8   : > { %8118 = vmatpush3.bf16.msra.mxu1 %v6317_v41  ;;  %8089 = vmatprep.mubr.msk.bf16.mxu1 %vm1303_vm8, %v12724_v46 }
 0x6bf   : > { %8090 = vmatmul.mubr.msk.bf16.gmra.mrb[84].mxu1 %vm1303_vm8, %v12761_v38 }
 0x6c0   : > { %8093 = vmatprep.mubr.msk.bf16.mxu1 %vm1303_vm8, %v12757_v20 }
 0x6c7   : > { %8094 = vmatmul.mubr.msk.bf16.gmra.mrb[88].mxu1 %vm1303_vm8, %v12785_v52 }
 0x6c8   : > { %8097 = vmatprep.mubr.msk.bf16.mxu1 %vm1303_vm8, %v12781_v48 }
 0x6cf   : > { %8098 = vmatmul.mubr.msk.bf16.gmra.mrb[92].mxu1 %vm1303_vm8, %v12809_v57 }
 0x6d0   : > { %8101 = vmatprep.mubr.msk.bf16.mxu1 %vm1303_vm8, %v12805_v54 }
 0x6d7   : > { %8102 = vmatmul.mubr.msk.bf16.gmra.mrb[96].mxu1 %vm1303_vm8, %v12833_v18 }
 0x6d8   : > { %8105 = vmatprep.mubr.msk.bf16.mxu1 %vm1303_vm8, %v12829_v17 }
 0x6df   : > { %8106 = vmatmul.mubr.msk.bf16.gmra.mrb[100].mxu1 %vm1303_vm8, %v12857_v51 }
 0x6e0   : > { %8109 = vmatprep.mubr.msk.bf16.mxu1 %vm1303_vm8, %v12853_v55 }
 0x6e7   : > { %8110 = vmatmul.mubr.msk.bf16.gmra.mrb[104].mxu1 %vm1303_vm8, %v5883_v14 }
 0x6e8   : > { %8113 = vmatprep.mubr.msk.bf16.mxu1 %vm1303_vm8, %v5884_v56 }
 0x6ef   : > { %8114 = vmatmul.mubr.msk.bf16.gmra.mrb[108].mxu1 %vm1303_vm8, %v5885_v5 }
 0x6f0   : > { %8119 = vmatprep.mubr.msk.bf16.mxu1 %vm1303_vm8, %v12724_v46 }
 0x6f7   : > { %8120 = vmatmul.mubr.msk.bf16.vlgmr.msra.gmra.mrb[80].mxu1 %vm1303_vm8, %v12761_v38 }
 0x6f8   : > { %8123 = vmatprep.mubr.msk.bf16.mxu1 %vm1303_vm8, %v12757_v20 }
 0x6ff   : > { %8124 = vmatmul.mubr.msk.bf16.gmra.mrb[84].mxu1 %vm1303_vm8, %v12785_v52 }
 0x700   : > { %8127 = vmatprep.mubr.msk.bf16.mxu1 %vm1303_vm8, %v12781_v48 }
 0x707   : > { %8128 = vmatmul.mubr.msk.bf16.gmra.mrb[88].mxu1 %vm1303_vm8, %v12809_v57 }
 0x708   : > { %8131 = vmatprep.mubr.msk.bf16.mxu1 %vm1303_vm8, %v12805_v54 }
 0x70f   : > { %8132 = vmatmul.mubr.msk.bf16.gmra.mrb[92].mxu1 %vm1303_vm8, %v12833_v18 }
 0x710   : > { %8135 = vmatprep.mubr.msk.bf16.mxu1 %vm1303_vm8, %v12829_v17 }
 0x717   : > { %8136 = vmatmul.mubr.msk.bf16.gmra.mrb[96].mxu1 %vm1303_vm8, %v12857_v51 }
 0x718   : > { %8139 = vmatprep.mubr.msk.bf16.mxu1 %vm1303_vm8, %v12853_v55 }
 0x71f   : > { %8140 = vmatmul.mubr.msk.bf16.gmra.mrb[100].mxu1 %vm1303_vm8, %v5883_v14 }
 0x720   : > { %8143 = vmatprep.mubr.msk.bf16.mxu1 %vm1303_vm8, %v5884_v56 }
 0x727   : > { %8144 = vmatmul.mubr.msk.bf16.gmra.mrb[104].mxu1 %vm1303_vm8, %v5885_v5 }
 0x728   : > { %8147 = vmatprep.mubr.msk.bf16.mxu1 %vm1303_vm8, %v5921_v25 }
 0x72f   : > { %8148 = vmatmul.mubr.msk.bf16.gmra.mrb[108].mxu1 %vm1303_vm8, %v13330_v35 }
 0x7ca   : > { %v8121_v37 = vpop.f32.mrb[80].mxu1 }
 0x7cb   : > { %v6520_v46 = vadd.f32 %v8121_v37, %v12962_v50  ;;  %v6353_v11 = vpop.f32.mrb[81].mxu1 }
 0x7cc   : > { %v6518_v31 = vadd.f32 %v12962_v50, %v6353_v11  ;;  %v8122_v20 = vpop.f32.mrb[82].mxu1 }
 0x7cd   : > { %v6552_v38 = vmax.f32 %v6520_v46, 0.0  ;;  %v6521_v48 = vadd.f32 %v8122_v20, %v12962_v50  ;;  %v6356_v52 = vpop.f32.mrb[83].mxu1 }
 0x7ce   : > { %v6550_v54 = vmax.f32 %v6518_v31, 0.0  ;;  %v6519_v57 = vadd.f32 %v12962_v50, %v6356_v52 }
 0x7cf   : > { %6584 = vst [vmem:[%s12970_s16 + $0x10] sm:$0xff] %v6552_v38  ;;  %v6553_v17 = vmax.f32 %v6521_v48, 0.0 }
 0x7d0   : > { %6582 = vst [vmem:[%s12970_s16] sm:$0xff] %v6550_v54  ;;  %v6551_v18 = vmax.f32 %v6519_v57, 0.0 }
 0x7d1   : > { %6585 = vst [vmem:[%s12970_s16 + $0x18] sm:$0xff] %v6553_v17 }
 0x7d2   : > { %6583 = vst [vmem:[%s12970_s16 + $0x8] sm:$0xff] %v6551_v18  ;;  %v8125_v55 = vpop.f32.mrb[84].mxu1 }
 0x7d3   : > { %v6524_v51 = vadd.f32 %v8125_v55, %v12962_v50  ;;  %v6369_v8 = vpop.f32.mrb[85].mxu1 }
 0x7d4   : > { %v6522_v15 = vadd.f32 %v12962_v50, %v6369_v8  ;;  %v8126_v58 = vpop.f32.mrb[86].mxu1 }
 0x7d5   : > { %v6556_v39 = vmax.f32 %v6524_v51, 0.0  ;;  %v6525_v0 = vadd.f32 %v8126_v58, %v12962_v50  ;;  %v6372_v62 = vpop.f32.mrb[87].mxu1 }
 0x7d6   : > { %v6554_v43 = vmax.f32 %v6522_v15, 0.0  ;;  %v6523_v29 = vadd.f32 %v12962_v50, %v6372_v62 }
 0x7d7   : > { %6588 = vst [vmem:[%s12970_s16 + $0x30] sm:$0xff] %v6556_v39  ;;  %v6557_v23 = vmax.f32 %v6525_v0, 0.0 }
 0x7d8   : > { %6586 = vst [vmem:[%s12970_s16 + $0x20] sm:$0xff] %v6554_v43  ;;  %v6555_v21 = vmax.f32 %v6523_v29, 0.0 }
 0x7d9   : > { %6589 = vst [vmem:[%s12970_s16 + $0x38] sm:$0xff] %v6557_v23 }
 0x7da   : > { %6587 = vst [vmem:[%s12970_s16 + $0x28] sm:$0xff] %v6555_v21  ;;  %v8129_v32 = vpop.f32.mrb[88].mxu1 }
 0x7db   : > { %v6528_v7 = vadd.f32 %v8129_v32, %v12962_v50  ;;  %v6385_v61 = vpop.f32.mrb[89].mxu1 }
 0x7dc   : > { %v6526_v42 = vadd.f32 %v12962_v50, %v6385_v61  ;;  %v8130_v60 = vpop.f32.mrb[90].mxu1 }
 0x7dd   : > { %v6560_v26 = vmax.f32 %v6528_v7, 0.0  ;;  %v6529_v28 = vadd.f32 %v8130_v60, %v12962_v50  ;;  %v6388_v59 = vpop.f32.mrb[91].mxu1 }
 0x7de   : > { %v6558_v53 = vmax.f32 %v6526_v42, 0.0  ;;  %v6527_v56 = vadd.f32 %v12962_v50, %v6388_v59 }
 0x7df   : > { %6592 = vst [vmem:[%s12970_s16 + $0x50] sm:$0xff] %v6560_v26  ;;  %v6561_v36 = vmax.f32 %v6529_v28, 0.0 }
 0x7e0   : > { %6590 = vst [vmem:[%s12970_s16 + $0x40] sm:$0xff] %v6558_v53  ;;  %v6559_v12 = vmax.f32 %v6527_v56, 0.0 }
 0x7e1   : > { %6593 = vst [vmem:[%s12970_s16 + $0x58] sm:$0xff] %v6561_v36 }
 0x7e2   : > { %6591 = vst [vmem:[%s12970_s16 + $0x48] sm:$0xff] %v6559_v12  ;;  %v8133_v14 = vpop.f32.mrb[92].mxu1 }
 0x7e3   : > { %v6532_v45 = vadd.f32 %v8133_v14, %v12962_v50  ;;  %v6401_v40 = vpop.f32.mrb[93].mxu1 }
 0x7e4   : > { %v6530_v24 = vadd.f32 %v12962_v50, %v6401_v40  ;;  %v8134_v30 = vpop.f32.mrb[94].mxu1 }
 0x7e5   : > { %v6564_v3 = vmax.f32 %v6532_v45, 0.0  ;;  %v6533_v22 = vadd.f32 %v8134_v30, %v12962_v50  ;;  %v6404_v63 = vpop.f32.mrb[95].mxu1 }
 0x7e6   : > { %v6562_v27 = vmax.f32 %v6530_v24, 0.0  ;;  %v6531_v44 = vadd.f32 %v12962_v50, %v6404_v63 }
 0x7e7   : > { %6596 = vst [vmem:[%s12970_s16 + $0x70] sm:$0xff] %v6564_v3  ;;  %v6565_v6 = vmax.f32 %v6533_v22, 0.0 }
 0x7e8   : > { %6594 = vst [vmem:[%s12970_s16 + $0x60] sm:$0xff] %v6562_v27  ;;  %v6563_v9 = vmax.f32 %v6531_v44, 0.0 }
 0x7e9   : > { %6597 = vst [vmem:[%s12970_s16 + $0x78] sm:$0xff] %v6565_v6 }
 0x7ea   : > { %6595 = vst [vmem:[%s12970_s16 + $0x68] sm:$0xff] %v6563_v9  ;;  %v8137_v13 = vpop.f32.mrb[96].mxu1 }
 0x7eb   : > { %v6536_v33 = vadd.f32 %v8137_v13, %v12962_v50  ;;  %v6417_v10 = vpop.f32.mrb[97].mxu1 }
 0x7ec   : > { %v6534_v5 = vadd.f32 %v12962_v50, %v6417_v10  ;;  %v8138_v4 = vpop.f32.mrb[98].mxu1 }
 0x7ed   : > { %v6568_v47 = vmax.f32 %v6536_v33, 0.0  ;;  %v6537_v2 = vadd.f32 %v8138_v4, %v12962_v50  ;;  %v6420_v49 = vpop.f32.mrb[99].mxu1 }
 0x7ee   : > { %v6566_v19 = vmax.f32 %v6534_v5, 0.0  ;;  %v6535_v34 = vadd.f32 %v12962_v50, %v6420_v49 }
 0x7ef   : > { %6600 = vst [vmem:[%s12970_s16 + $0x90] sm:$0xff] %v6568_v47  ;;  %v6569_v16 = vmax.f32 %v6537_v2, 0.0 }
 0x7f0   : > { %6598 = vst [vmem:[%s12970_s16 + $0x80] sm:$0xff] %v6566_v19  ;;  %v6567_v1 = vmax.f32 %v6535_v34, 0.0 }
 0x7f1   : > { %6601 = vst [vmem:[%s12970_s16 + $0x98] sm:$0xff] %v6569_v16 }
 0x7f2   : > { %6599 = vst [vmem:[%s12970_s16 + $0x88] sm:$0xff] %v6567_v1  ;;  %v8141_v25 = vpop.f32.mrb[100].mxu1 }
 0x7f3   : > { %v6540_v35 = vadd.f32 %v8141_v25, %v12962_v50  ;;  %v6433_v41 = vpop.f32.mrb[101].mxu1 }
 0x7f4   : > { %v6538_v37 = vadd.f32 %v12962_v50, %v6433_v41  ;;  %v8142_v46 = vpop.f32.mrb[102].mxu1 }
 0x7f5   : > { %v6572_v11 = vmax.f32 %v6540_v35, 0.0  ;;  %v6541_v31 = vadd.f32 %v8142_v46, %v12962_v50  ;;  %v6436_v20 = vpop.f32.mrb[103].mxu1 }
 0x7f6   : > { %v6570_v38 = vmax.f32 %v6538_v37, 0.0  ;;  %v6539_v48 = vadd.f32 %v12962_v50, %v6436_v20 }
 0x7f7   : > { %6604 = vst [vmem:[%s12970_s16 + $0xb0] sm:$0xff] %v6572_v11  ;;  %v6573_v52 = vmax.f32 %v6541_v31, 0.0 }
 0x7f8   : > { %6602 = vst [vmem:[%s12970_s16 + $0xa0] sm:$0xff] %v6570_v38  ;;  %v6571_v54 = vmax.f32 %v6539_v48, 0.0 }
 0x7f9   : > { %6605 = vst [vmem:[%s12970_s16 + $0xb8] sm:$0xff] %v6573_v52 }
 0x7fa   : > { %6603 = vst [vmem:[%s12970_s16 + $0xa8] sm:$0xff] %v6571_v54  ;;  %v8145_v57 = vpop.f32.mrb[104].mxu1 }
 0x7fb   : > { %v6544_v17 = vadd.f32 %v8145_v57, %v12962_v50  ;;  %v6449_v18 = vpop.f32.mrb[105].mxu1 }
 0x7fc   : > { %v6542_v55 = vadd.f32 %v12962_v50, %v6449_v18  ;;  %v8146_v51 = vpop.f32.mrb[106].mxu1 }
 0x7fd   : > { %v6576_v8 = vmax.f32 %v6544_v17, 0.0  ;;  %v6545_v15 = vadd.f32 %v8146_v51, %v12962_v50  ;;  %v6452_v58 = vpop.f32.mrb[107].mxu1 }
 0x7fe   : > { %v6574_v39 = vmax.f32 %v6542_v55, 0.0  ;;  %v6543_v0 = vadd.f32 %v12962_v50, %v6452_v58 }
 0x7ff   : > { %6608 = vst [vmem:[%s12970_s16 + $0xd0] sm:$0xff] %v6576_v8  ;;  %v6577_v62 = vmax.f32 %v6545_v15, 0.0 }
 0x800   : > { %6606 = vst [vmem:[%s12970_s16 + $0xc0] sm:$0xff] %v6574_v39  ;;  %v6575_v43 = vmax.f32 %v6543_v0, 0.0 }
 0x801   : > { %6609 = vst [vmem:[%s12970_s16 + $0xd8] sm:$0xff] %v6577_v62 }
 0x802   : > { %6607 = vst [vmem:[%s12970_s16 + $0xc8] sm:$0xff] %v6575_v43  ;;  %v8149_v29 = vpop.f32.mrb[108].mxu1 }
 0x803   : > { %v6548_v23 = vadd.f32 %v8149_v29, %v12962_v50  ;;  %v6465_v21 = vpop.f32.mrb[109].mxu1 }
 0x804   : > { %v6546_v32 = vadd.f32 %v12962_v50, %v6465_v21  ;;  %v8150_v7 = vpop.f32.mrb[110].mxu1 }
 0x805   : > { %v6580_v61 = vmax.f32 %v6548_v23, 0.0  ;;  %v6549_v42 = vadd.f32 %v8150_v7, %v12962_v50  ;;  %v6468_v60 = vpop.f32.mrb[111].mxu1 }
 0x806   : > { %v6578_v26 = vmax.f32 %v6546_v32, 0.0  ;;  %v6547_v28 = vadd.f32 %v12962_v50, %v6468_v60 }
 0x807   : > { %6612 = vst [vmem:[%s12970_s16 + $0xf0] sm:$0xff] %v6580_v61  ;;  %v6581_v59 = vmax.f32 %v6549_v42, 0.0 }
 0x808   : > { %6610 = vst [vmem:[%s12970_s16 + $0xe0] sm:$0xff] %v6578_v26  ;;  %v6579_v53 = vmax.f32 %v6547_v28, 0.0 }
 0x809   : > { %6613 = vst [vmem:[%s12970_s16 + $0xf8] sm:$0xff] %v6581_v59 }
 0x80a   : > { %6611 = vst [vmem:[%s12970_s16 + $0xe8] sm:$0xff] %v6579_v53 }
 0x80b   : > { %9114 = shalt.err (!%p9111_p3)
}
 0x80c   : > { %s9115_s27 = scalar_lea.hbm %s13034_s17, 4096  ;;  %s9119_s24 = scalar_lea.hbm %s13094_s9, 8192 }
 0x80d   : > { %p9116_p4 = scmp.ne.s32.totalorder %s13034_s17, %s9115_s27  ;;  %p9120_p9 = scmp.lt.u32.totalorder %s13034_s17, %s13094_s9 }
 0x80e   : > { %p9121_p10 = scmp.lt.u32.totalorder %s9119_s24, %s9115_s27  ;;  %p9123_p12 = scmp.lt.u32.totalorder %s9115_s27, %s13034_s17 }
 0x80f   : > { %p9117_p7 = pnand %p9116_p4, %p9261_p5 }
 0x810   : > { %p9122_p11 = por %p9121_p10, %p9120_p9 }
 0x811   : > { %p9118_p8 = pneg %p9117_p7 }
 0x812   : > { %p9124_p13 = por %p9123_p12, %p9122_p11 }
 0x814   : > { %p9125_p0 = pnand %p9124_p13, %p9118_p8 }
 0x816   : > { %9128 = shalt.err (!%p9125_p0)
}
 0x817   : > { %s9172_s26 = smov 128  }
 0x818   : > { %8606 = dma.vmem_to_hbm [thread:$0]  (%p9261_p5), %s13037_s23, 4096, %s13034_s17, %s13043_s13, %s9172_s26, %s9172_s26, %s9166_s21  }
 0x819 PF: > { %p8612_p1 = scmp.ge.s32.totalorder %s9163_s12, 2  ;;  %s6643_s14 = sand.u32 1, %s9151_s30  }
 0x81a   : > { %s6644_s29 = scalar_lea.sflag [#allocation3], %s6643_s14 }
 0x81b   : > { %p8609_p2 = pnand %p8612_p1, %p9265_p6 }
 0x81d   : > { %9146 = dma.done.wait (!%p8609_p2), %s6644_s29, 4096  }
 0x81e   : > { %9148 = vsyncadd (!%p8609_p2), %s6644_s29, 4294963200  ;;  %p19_p3 = scmp.ge.s32.totalorder %s9248_s15, 4   ;;  %s13331_s30 = smov %s9155_s10 }
 0x81f   : > { %s13332_s10 = smov %s9159_s11  ;;  %s13333_s11 = smov %s9259_s18 }
 0x820   : > { %s13334_s12 = smov %s9248_s15  ;;  %21 = sbr.rel (!%p19_p3) target bundleno = 3 (0x3), region = 97 }
 0x827   :  { %6649 = vsyncpa [#allocation3], 1 }
 0x828   :  { %6651 = vsyncpa [#allocation3 + $0x1], 1 }

</bundles_post_ra>
